<compile_context>
chip_gen: v7x
topology: tpu7x:2x2x1
jax: 0.10.0
libtpu: 0.0.40
codegen_flags: <defaults>
</compile_context>

<pallas_src>
import functools
import math

import jax
import jax.numpy as jnp
import numpy as np
from jax.experimental import pallas as pl
from jax.experimental.pallas import tpu as pltpu  # noqa: F401  (TPU backend)

# ----- model hyper-parameters (small but consistent with the module) ---------
NUM_ITEMS = 16
NUM_LAYERS = 2
NUM_HEADS = 2
EMB_DIM = 128                  # embedding_dim
FF_DIM = 4 * EMB_DIM           # dim_feedforward = 4 * embedding_dim
LN_EPS = 1e-6
INIT_STD = 0.02
NEG_INF = -1e30                # additive key-padding mask value (exp() == 0 in f32)

SEQ_BUCKET = 15                # static item-sequence bucket
SEQ_TOTAL = SEQ_BUCKET + 1     # + CLS token -> 16, multiple of 8 (sublane aligned)


def _layernorm(x, gamma, beta, eps):
    mean = jnp.mean(x, axis=-1, keepdims=True)
    var = jnp.mean(jnp.square(x - mean), axis=-1, keepdims=True)
    return (x - mean) * jax.lax.rsqrt(var + eps) * gamma + beta


# ----------------------------- fused Pallas kernel ----------------------------
def fused_encoder_kernel(x_ref, bias_ref, wxa_ref, w2h_ref, vec_ref, bh_ref,
                         out_ref, *, num_layers, num_heads, ff_dim, num_batch, eps):
    """Both TransformerEncoder layers + head, both batch elements folded into
    the sublane axis, single grid step.

    Slab layouts (lane offsets are 128-multiples):
      wxa_ref : (L, D, 4D+F) bf16  = [ Wqkv(3D, Q pre-scaled) | Wo(D) | W1(F) ]
      w2h_ref : (L*F + D, D) bf16  = [ W2 layer0 | W2 layer1 | W_head ] (rows)
      vec_ref : (L, 1, 9D+F) f32   = [ bqkv(3D) | bo | ln1_g | ln1_b | b1(F) |
                                       b2 | ln2_g | ln2_b ]
      bh_ref  : (1, D) f32 head bias (lane-padded)
    """
    x = x_ref[...]                      # (B*S, D) f32
    bias = bias_ref[...]                # (B*S, B*S) f32 block-diag key-pad bias
    BS, D = x.shape
    F = ff_dim
    dh = D // num_heads
    s_tot = BS // num_batch

    for l in range(num_layers):
        xb = x.astype(jnp.bfloat16)

        # --- fused Q/K/V projection: one (BS,D)@(D,3D) matmul per layer ---
        qkv = jnp.dot(xb, wxa_ref[l, :, 0:3 * D],
                      preferred_element_type=jnp.float32) + vec_ref[l, :, 0:3 * D]

        # --- multi-head self-attention (heads = static 64-lane slices) ---
        heads = []
        for h in range(num_heads):
            q = qkv[:, h * dh:(h + 1) * dh]                 # already * 1/sqrt(dh)
            k = qkv[:, D + h * dh:D + (h + 1) * dh]
            v = qkv[:, 2 * D + h * dh:2 * D + (h + 1) * dh]

            s = jax.lax.dot_general(
                q.astype(jnp.bfloat16), k.astype(jnp.bfloat16),
                (((1,), (1,)), ((), ())),
                preferred_element_type=jnp.float32)         # (BS, BS)
            s = s + bias                                    # block-diag key mask
            s = s - jnp.max(s, axis=-1, keepdims=True)
            p = jnp.exp(s)
            p = p * pl.reciprocal(jnp.sum(p, axis=-1, keepdims=True), approx=True)

            heads.append(jnp.dot(p.astype(jnp.bfloat16), v.astype(jnp.bfloat16),
                                 preferred_element_type=jnp.float32))  # (BS, dh)

        o = jnp.concatenate(heads, axis=-1).astype(jnp.bfloat16)       # (BS, D)
        attn = jnp.dot(o, wxa_ref[l, :, 3 * D:4 * D],
                       preferred_element_type=jnp.float32) + vec_ref[l, :, 3 * D:4 * D]

        # --- residual + norm1 ---
        h1 = _layernorm(x + attn,
                        vec_ref[l, :, 4 * D:5 * D], vec_ref[l, :, 5 * D:6 * D], eps)

        # --- feed-forward (relu) ---
        ff = jnp.dot(h1.astype(jnp.bfloat16), wxa_ref[l, :, 4 * D:4 * D + F],
                     preferred_element_type=jnp.float32) + vec_ref[l, :, 6 * D:6 * D + F]
        ff = jnp.maximum(ff, 0.0)
        ff = jnp.dot(ff.astype(jnp.bfloat16), w2h_ref[l * F:(l + 1) * F, :],
                     preferred_element_type=jnp.float32) + vec_ref[l, :, 6 * D + F:7 * D + F]

        # --- residual + norm2 ---
        x = _layernorm(h1 + ff,
                       vec_ref[l, :, 7 * D + F:8 * D + F],
                       vec_ref[l, :, 8 * D + F:9 * D + F], eps)

    # --- head over the CLS rows (row 0 of each batch element), lane-dense ---
    cls = jnp.concatenate([x[b * s_tot:b * s_tot + 1, :] for b in range(num_batch)],
                          axis=0)                                       # (B, D)
    wh = w2h_ref[num_layers * F:num_layers * F + D, :]                  # (D, Vp)
    out_ref[...] = (jnp.dot(cls.astype(jnp.bfloat16), wh,
                            preferred_element_type=jnp.float32) + bh_ref[...])


# ------------------------------ wrapper ---------------------------------------
def fused_encoder(x2d, bias, packed, batch):
    Vp = packed["b_head"].shape[-1]
    kernel = functools.partial(fused_encoder_kernel, num_layers=NUM_LAYERS,
                               num_heads=NUM_HEADS, ff_dim=FF_DIM,
                               num_batch=batch, eps=LN_EPS)
    # No grid: a single kernel invocation with every operand resident in VMEM
    # for the whole call (working set < 1 MB, far below scoped VMEM limits).
    return pl.pallas_call(
        kernel,
        out_shape=jax.ShapeDtypeStruct((batch, Vp), jnp.float32),
    )(x2d, bias, packed["w_xa"], packed["w_2h"], packed["vec"], packed["b_head"])


def pack_params(params):
    """Build the consolidated weight slabs ONCE at setup time (not per call).

    Folds the 1/sqrt(dh) softmax scale into the Q projection (power of two ->
    exact), concatenates all per-layer matmul weights into lane-dense bf16
    slabs and all biases / LayerNorm params into one f32 vector slab.
    """
    D, F = EMB_DIM, FF_DIM
    dh = D // NUM_HEADS
    scale = 1.0 / math.sqrt(dh)            # 0.125, exact power of two

    wxa_list, vec_list, w2_list = [], [], []
    for lp in params["layers"]:
        wqkv = lp["wqkv"].at[:, :D].multiply(scale)       # scale Q columns
        bqkv = lp["bqkv"].at[:, :D].multiply(scale)       # scale Q bias
        wxa_list.append(jnp.concatenate([wqkv, lp["wo"], lp["w1"]], axis=-1))
        vec_list.append(jnp.concatenate(
            [bqkv, lp["bo"], lp["ln1_g"], lp["ln1_b"],
             lp["b1"], lp["b2"], lp["ln2_g"], lp["ln2_b"]], axis=-1))
        w2_list.append(lp["w2"])

    V = params["w_head"].shape[-1]
    Vp = ((V + 127) // 128) * 128           # lane-dense head output (pad 17 -> 128)
    assert Vp == D, "w_2h slab layout assumes padded head width == EMB_DIM"
    wh = jnp.zeros((D, Vp), jnp.float32).at[:, :V].set(params["w_head"])
    bh = jnp.zeros((1, Vp), jnp.float32).at[:, :V].set(params["b_head"])

    return {
        "w_xa": jnp.stack(wxa_list).astype(jnp.bfloat16),              # (L, D, 4D+F)
        "vec": jnp.stack(vec_list),                                    # (L, 1, 9D+F) f32
        "w_2h": jnp.concatenate(w2_list + [wh], axis=0).astype(jnp.bfloat16),  # (L*F+D, D)
        "b_head": bh,                                                  # (1, Vp) f32
    }


# ------------------------------ glue (plain JAX, same jit as kernel) ----------
def preprocess(params, item_ids, lengths, price):
    """Embedding + price projection + _create_masked_tensor + LayerNorm + CLS.
    Sequence is padded to the static SEQ_BUCKET so the kernel compiles once."""
    item_emb = params["emb"][item_ids]                                   # (N, D)
    price_emb = price[:, None] * params["w_price"][None, :] + params["b_price"][None, :]
    item_emb = item_emb + price_emb

    B = lengths.shape[0]
    offsets = jnp.concatenate([jnp.zeros((1,), jnp.int32),
                               jnp.cumsum(lengths)[:-1].astype(jnp.int32)])
    pos = jnp.arange(SEQ_BUCKET, dtype=jnp.int32)
    mask = pos[None, :] < lengths[:, None]                               # (B, SEQ_BUCKET)
    idx = jnp.where(mask, offsets[:, None] + pos[None, :], 0)
    padded = item_emb[idx] * mask[..., None].astype(item_emb.dtype)      # padded_embeddings

    padded = _layernorm(padded, params["ln0_g"], params["ln0_b"], LN_EPS)
    # dropout(p=0) is identity; embeddings[~mask] = 0
    padded = padded * mask[..., None].astype(padded.dtype)

    cls = jnp.tile(params["cls"][None, :, :], (B, 1, 1))                 # (B, 1, D)
    x = jnp.concatenate([cls, padded], axis=1).astype(jnp.float32)       # (B, S, D)
    mask_full = jnp.concatenate([jnp.ones((B, 1), bool), mask], axis=1)  # (B, S)
    return x, mask_full


def build_folded_inputs(x, mask_full):
    """Fold batch into the sublane axis + block-diagonal additive key bias so
    batch elements cannot attend to each other."""
    B, S, D = x.shape
    x2d = x.reshape(B * S, D)
    key_bias = jnp.where(mask_full, 0.0, NEG_INF).astype(jnp.float32)    # (B, S)
    same_batch = jnp.eye(B, dtype=bool)                                  # (B, B)
    bias = jnp.where(same_batch[:, None, :, None],
                     key_bias[None, None, :, :], NEG_INF)                # (B,1,B,S)
    bias = jnp.broadcast_to(bias, (B, S, B, S)).reshape(B * S, B * S)
    return x2d, bias


def attention_encoder_forward(params, packed, item_ids, lengths, price):
    x, mask_full = preprocess(params, item_ids, lengths, price)
    x2d, bias = build_folded_inputs(x, mask_full)
    logits_padded = fused_encoder(x2d, bias, packed, batch=x.shape[0])
    return logits_padded[:, :NUM_ITEMS + 1]


# --------------------------- pure-JAX reference -------------------------------
def _ref_layer(x, key_mask, p):
    B, S, D = x.shape
    dh = D // NUM_HEADS
    qkv = x @ p["wqkv"] + p["bqkv"][0]
    q, k, v = qkv[..., :D], qkv[..., D:2 * D], qkv[..., 2 * D:]

    def split(t):
        return t.reshape(B, S, NUM_HEADS, dh).transpose(0, 2, 1, 3)

    qh, kh, vh = split(q), split(k), split(v)
    s = jnp.einsum("bhqd,bhkd->bhqk", qh, kh) / math.sqrt(dh)
    s = jnp.where(key_mask[:, None, None, :], s, NEG_INF)
    pa = jax.nn.softmax(s, axis=-1)
    o = jnp.einsum("bhqk,bhkd->bhqd", pa, vh).transpose(0, 2, 1, 3).reshape(B, S, D)
    o = o @ p["wo"] + p["bo"][0]
    h1 = _layernorm(x + o, p["ln1_g"][0], p["ln1_b"][0], LN_EPS)
    ff = jnp.maximum(h1 @ p["w1"] + p["b1"][0], 0.0) @ p["w2"] + p["b2"][0]
    return _layernorm(h1 + ff, p["ln2_g"][0], p["ln2_b"][0], LN_EPS)


def reference_forward(params, item_ids, lengths, price):
    x, mask_full = preprocess(params, item_ids, lengths, price)
    for lp in params["layers"]:
        x = _ref_layer(x, mask_full, lp)
    return x[:, 0, :] @ params["w_head"] + params["b_head"][0]


# ------------------------------ init ------------------------------------------
def init_params(key):
    D, F, V = EMB_DIM, FF_DIM, NUM_ITEMS + 1

    def trunc(k, shape):
        return jax.random.truncated_normal(k, -2.0, 2.0, shape, jnp.float32) * INIT_STD

    def trunc_mm(k, shape):
        # matmul weights are rounded through bf16 so the f32 reference and the
        # bf16-operand kernel use identical parameter values.
        return trunc(k, shape).astype(jnp.bfloat16).astype(jnp.float32)

    keys = iter(jax.random.split(key, 8))
    params = {
        "emb": trunc(next(keys), (V, D)),
        "w_price": trunc(next(keys), (D,)),
        "b_price": jnp.zeros((D,), jnp.float32),
        "ln0_g": jnp.ones((D,), jnp.float32),
        "ln0_b": jnp.zeros((D,), jnp.float32),
        "cls": trunc(next(keys), (1, D)),
        "w_head": trunc_mm(next(keys), (D, V)),
        "b_head": jnp.zeros((1, V), jnp.float32),
        "layers": [],
    }
    for _ in range(NUM_LAYERS):
        lk = jax.random.split(next(keys), 4)
        params["layers"].append({
            "wqkv": trunc_mm(lk[0], (D, 3 * D)),
            "bqkv": jnp.zeros((1, 3 * D), jnp.float32),
            "wo": trunc_mm(lk[1], (D, D)),
            "bo": jnp.zeros((1, D), jnp.float32),
            "ln1_g": jnp.ones((1, D), jnp.float32),
            "ln1_b": jnp.zeros((1, D), jnp.float32),
            "w1": trunc_mm(lk[2], (D, F)),
            "b1": jnp.zeros((1, F), jnp.float32),
            "w2": trunc_mm(lk[3], (F, D)),
            "b2": jnp.zeros((1, D), jnp.float32),
            "ln2_g": jnp.ones((1, D), jnp.float32),
            "ln2_b": jnp.zeros((1, D), jnp.float32),
        })
    return params


# ------------------------------ main -------------------------------------------
if __name__ == "__main__":
    root = jax.random.PRNGKey(0)
    k_params, k_ids, k_price = jax.random.split(root, 3)

    params = init_params(k_params)
    # Packed / bf16 / slab-consolidated weights computed ONCE, outside the jit.
    packed = jax.block_until_ready(pack_params(params))

    # ragged inputs: batch of 2 sessions with lengths [8, 5]
    lengths = jnp.array([8, 5], dtype=jnp.int32)
    assert int(np.max(np.asarray(lengths))) <= SEQ_BUCKET
    n_total = int(np.sum(np.asarray(lengths)))
    item_ids = jax.random.randint(k_ids, (n_total,), 1, NUM_ITEMS + 1, dtype=jnp.int32)
    price = jax.random.normal(k_price, (n_total,), jnp.float32)

    fwd = jax.jit(attention_encoder_forward)
    logits = jax.block_until_ready(fwd(params, packed, item_ids, lengths, price))

    ref = jax.block_until_ready(reference_forward(params, item_ids, lengths, price))
    # bf16 matmul operands in the kernel vs f32 reference -> relaxed tolerance.
    np.testing.assert_allclose(np.asarray(logits), np.asarray(ref), rtol=2e-2, atol=2e-2)
    assert logits.shape == (2, NUM_ITEMS + 1)

    print("KERNEL_OK")
</pallas_src>

<mosaic_0001>
module attributes {stable_mosaic.version = 11 : i64} {
  func.func @fused_encoder_kernel(%arg0: memref<32x128xf32, #tpu.memory_space<vmem>>, %arg1: memref<32x32xf32, #tpu.memory_space<vmem>>, %arg2: memref<2x128x1024xbf16, #tpu.memory_space<vmem>>, %arg3: memref<1152x128xbf16, #tpu.memory_space<vmem>>, %arg4: memref<2x1x1664xf32, #tpu.memory_space<vmem>>, %arg5: memref<1x128xf32, #tpu.memory_space<vmem>>, %arg6: memref<2x128xf32, #tpu.memory_space<vmem>>) attributes {dimension_semantics = [], scalar_prefetch = 0 : i64, scratch_operands = 0 : i64, tpu.core_type = #tpu.core_type<tc>} {
    %c0 = arith.constant 0 : index
    %c0_0 = arith.constant 0 : index
    %0 = vector.load %arg0[%c0, %c0_0] : memref<32x128xf32, #tpu.memory_space<vmem>>, vector<32x128xf32>
    %c0_1 = arith.constant 0 : index
    %c0_2 = arith.constant 0 : index
    %1 = vector.load %arg1[%c0_1, %c0_2] : memref<32x32xf32, #tpu.memory_space<vmem>>, vector<32x32xf32>
    %2 = arith.truncf %0 : vector<32x128xf32> to vector<32x128xbf16>
    %c0_3 = arith.constant 0 : index
    %c0_4 = arith.constant 0 : index
    %c0_5 = arith.constant 0 : index
    %3 = vector.load %arg2[%c0_3, %c0_4, %c0_5] : memref<2x128x1024xbf16, #tpu.memory_space<vmem>>, vector<1x128x384xbf16>
    %4 = vector.shape_cast %3 : vector<1x128x384xbf16> to vector<128x384xbf16>
    %cst = arith.constant dense<0.000000e+00> : vector<32x384xf32>
    %5 = tpu.matmul %2, %4, %cst {dimension_numbers = #tpu.dot_dimension_numbers<[1], [0], [0], [1], [0, 0, 1, 1], [], []>} : vector<32x128xbf16>, vector<128x384xbf16>, vector<32x384xf32> -> vector<32x384xf32>
    %c0_6 = arith.constant 0 : index
    %c0_7 = arith.constant 0 : index
    %c0_8 = arith.constant 0 : index
    %6 = vector.load %arg4[%c0_6, %c0_7, %c0_8] : memref<2x1x1664xf32, #tpu.memory_space<vmem>>, vector<1x1x384xf32>
    %7 = vector.shape_cast %6 : vector<1x1x384xf32> to vector<1x384xf32>
    %8 = vector.broadcast %7 : vector<1x384xf32> to vector<32x384xf32>
    %9 = arith.addf %5, %8 : vector<32x384xf32>
    %10 = vector.extract_strided_slice %9 {offsets = [0, 0], sizes = [32, 64], strides = [1, 1]} : vector<32x384xf32> to vector<32x64xf32>
    %11 = vector.extract_strided_slice %9 {offsets = [0, 128], sizes = [32, 64], strides = [1, 1]} : vector<32x384xf32> to vector<32x64xf32>
    %12 = vector.extract_strided_slice %9 {offsets = [0, 256], sizes = [32, 64], strides = [1, 1]} : vector<32x384xf32> to vector<32x64xf32>
    %13 = arith.truncf %10 : vector<32x64xf32> to vector<32x64xbf16>
    %14 = arith.truncf %11 : vector<32x64xf32> to vector<32x64xbf16>
    %cst_9 = arith.constant dense<0.000000e+00> : vector<32x32xf32>
    %15 = tpu.matmul %13, %14, %cst_9 {dimension_numbers = #tpu.dot_dimension_numbers<[1], [1], [0], [0], [0, 0, 1, 0], [], []>} : vector<32x64xbf16>, vector<32x64xbf16>, vector<32x32xf32> -> vector<32x32xf32>
    %16 = arith.addf %15, %1 : vector<32x32xf32>
    %cst_10 = arith.constant dense<0xFF800000> : vector<32xf32>
    %17 = vector.multi_reduction <maximumf>, %16, %cst_10 [1] : vector<32x32xf32> to vector<32xf32>
    %18 = vector.shape_cast %17 : vector<32xf32> to vector<32x1xf32>
    %19 = vector.broadcast %18 : vector<32x1xf32> to vector<32x32xf32>
    %20 = arith.subf %16, %19 : vector<32x32xf32>
    %21 = math.exp %20 : vector<32x32xf32>
    %cst_11 = arith.constant dense<0.000000e+00> : vector<32xf32>
    %22 = vector.multi_reduction <add>, %21, %cst_11 [1] : vector<32x32xf32> to vector<32xf32>
    %23 = vector.shape_cast %22 : vector<32xf32> to vector<32x1xf32>
    %24 = tpu.reciprocal %23 {approx = true} : vector<32x1xf32> -> vector<32x1xf32>
    %25 = vector.broadcast %24 : vector<32x1xf32> to vector<32x32xf32>
    %26 = arith.mulf %21, %25 : vector<32x32xf32>
    %27 = arith.truncf %26 : vector<32x32xf32> to vector<32x32xbf16>
    %28 = arith.truncf %12 : vector<32x64xf32> to vector<32x64xbf16>
    %cst_12 = arith.constant dense<0.000000e+00> : vector<32x64xf32>
    %29 = tpu.matmul %27, %28, %cst_12 {dimension_numbers = #tpu.dot_dimension_numbers<[1], [0], [0], [1], [0, 0, 1, 1], [], []>} : vector<32x32xbf16>, vector<32x64xbf16>, vector<32x64xf32> -> vector<32x64xf32>
    %30 = vector.extract_strided_slice %9 {offsets = [0, 64], sizes = [32, 64], strides = [1, 1]} : vector<32x384xf32> to vector<32x64xf32>
    %31 = vector.extract_strided_slice %9 {offsets = [0, 192], sizes = [32, 64], strides = [1, 1]} : vector<32x384xf32> to vector<32x64xf32>
    %32 = vector.extract_strided_slice %9 {offsets = [0, 320], sizes = [32, 64], strides = [1, 1]} : vector<32x384xf32> to vector<32x64xf32>
    %33 = arith.truncf %30 : vector<32x64xf32> to vector<32x64xbf16>
    %34 = arith.truncf %31 : vector<32x64xf32> to vector<32x64xbf16>
    %cst_13 = arith.constant dense<0.000000e+00> : vector<32x32xf32>
    %35 = tpu.matmul %33, %34, %cst_13 {dimension_numbers = #tpu.dot_dimension_numbers<[1], [1], [0], [0], [0, 0, 1, 0], [], []>} : vector<32x64xbf16>, vector<32x64xbf16>, vector<32x32xf32> -> vector<32x32xf32>
    %36 = arith.addf %35, %1 : vector<32x32xf32>
    %cst_14 = arith.constant dense<0xFF800000> : vector<32xf32>
    %37 = vector.multi_reduction <maximumf>, %36, %cst_14 [1] : vector<32x32xf32> to vector<32xf32>
    %38 = vector.shape_cast %37 : vector<32xf32> to vector<32x1xf32>
    %39 = vector.broadcast %38 : vector<32x1xf32> to vector<32x32xf32>
    %40 = arith.subf %36, %39 : vector<32x32xf32>
    %41 = math.exp %40 : vector<32x32xf32>
    %cst_15 = arith.constant dense<0.000000e+00> : vector<32xf32>
    %42 = vector.multi_reduction <add>, %41, %cst_15 [1] : vector<32x32xf32> to vector<32xf32>
    %43 = vector.shape_cast %42 : vector<32xf32> to vector<32x1xf32>
    %44 = tpu.reciprocal %43 {approx = true} : vector<32x1xf32> -> vector<32x1xf32>
    %45 = vector.broadcast %44 : vector<32x1xf32> to vector<32x32xf32>
    %46 = arith.mulf %41, %45 : vector<32x32xf32>
    %47 = arith.truncf %46 : vector<32x32xf32> to vector<32x32xbf16>
    %48 = arith.truncf %32 : vector<32x64xf32> to vector<32x64xbf16>
    %cst_16 = arith.constant dense<0.000000e+00> : vector<32x64xf32>
    %49 = tpu.matmul %47, %48, %cst_16 {dimension_numbers = #tpu.dot_dimension_numbers<[1], [0], [0], [1], [0, 0, 1, 1], [], []>} : vector<32x32xbf16>, vector<32x64xbf16>, vector<32x64xf32> -> vector<32x64xf32>
    %50 = tpu.concatenate %29, %49 in 1 : vector<32x64xf32>, vector<32x64xf32> -> vector<32x128xf32>
    %51 = arith.truncf %50 : vector<32x128xf32> to vector<32x128xbf16>
    %c0_17 = arith.constant 0 : index
    %c0_18 = arith.constant 0 : index
    %c384 = arith.constant 384 : index
    %52 = vector.load %arg2[%c0_17, %c0_18, %c384] : memref<2x128x1024xbf16, #tpu.memory_space<vmem>>, vector<1x128x128xbf16>
    %53 = vector.shape_cast %52 : vector<1x128x128xbf16> to vector<128x128xbf16>
    %cst_19 = arith.constant dense<0.000000e+00> : vector<32x128xf32>
    %54 = tpu.matmul %51, %53, %cst_19 {dimension_numbers = #tpu.dot_dimension_numbers<[1], [0], [0], [1], [0, 0, 1, 1], [], []>} : vector<32x128xbf16>, vector<128x128xbf16>, vector<32x128xf32> -> vector<32x128xf32>
    %c0_20 = arith.constant 0 : index
    %c0_21 = arith.constant 0 : index
    %c384_22 = arith.constant 384 : index
    %55 = vector.load %arg4[%c0_20, %c0_21, %c384_22] : memref<2x1x1664xf32, #tpu.memory_space<vmem>>, vector<1x1x128xf32>
    %56 = vector.shape_cast %55 : vector<1x1x128xf32> to vector<1x128xf32>
    %57 = vector.broadcast %56 : vector<1x128xf32> to vector<32x128xf32>
    %58 = arith.addf %54, %57 : vector<32x128xf32>
    %59 = arith.addf %0, %58 : vector<32x128xf32>
    %c0_23 = arith.constant 0 : index
    %c0_24 = arith.constant 0 : index
    %c512 = arith.constant 512 : index
    %60 = vector.load %arg4[%c0_23, %c0_24, %c512] : memref<2x1x1664xf32, #tpu.memory_space<vmem>>, vector<1x1x128xf32>
    %61 = vector.shape_cast %60 : vector<1x1x128xf32> to vector<1x128xf32>
    %c0_25 = arith.constant 0 : index
    %c0_26 = arith.constant 0 : index
    %c640 = arith.constant 640 : index
    %62 = vector.load %arg4[%c0_25, %c0_26, %c640] : memref<2x1x1664xf32, #tpu.memory_space<vmem>>, vector<1x1x128xf32>
    %63 = vector.shape_cast %62 : vector<1x1x128xf32> to vector<1x128xf32>
    %cst_27 = arith.constant dense<0.000000e+00> : vector<32xf32>
    %64 = vector.multi_reduction <add>, %59, %cst_27 [1] : vector<32x128xf32> to vector<32xf32>
    %65 = vector.shape_cast %64 : vector<32xf32> to vector<32x1xf32>
    %cst_28 = arith.constant 1.280000e+02 : f32
    %66 = vector.broadcast %cst_28 : f32 to vector<32x1xf32>
    %67 = arith.divf %65, %66 : vector<32x1xf32>
    %68 = vector.broadcast %67 : vector<32x1xf32> to vector<32x128xf32>
    %69 = arith.subf %59, %68 : vector<32x128xf32>
    %70 = arith.mulf %69, %69 : vector<32x128xf32>
    %cst_29 = arith.constant dense<0.000000e+00> : vector<32xf32>
    %71 = vector.multi_reduction <add>, %70, %cst_29 [1] : vector<32x128xf32> to vector<32xf32>
    %72 = vector.shape_cast %71 : vector<32xf32> to vector<32x1xf32>
    %cst_30 = arith.constant 1.280000e+02 : f32
    %73 = vector.broadcast %cst_30 : f32 to vector<32x1xf32>
    %74 = arith.divf %72, %73 : vector<32x1xf32>
    %75 = vector.broadcast %67 : vector<32x1xf32> to vector<32x128xf32>
    %76 = arith.subf %59, %75 : vector<32x128xf32>
    %cst_31 = arith.constant 9.99999997E-7 : f32
    %77 = vector.broadcast %cst_31 : f32 to vector<32x1xf32>
    %78 = arith.addf %74, %77 : vector<32x1xf32>
    %79 = math.rsqrt %78 : vector<32x1xf32>
    %80 = vector.broadcast %79 : vector<32x1xf32> to vector<32x128xf32>
    %81 = arith.mulf %76, %80 : vector<32x128xf32>
    %82 = vector.broadcast %61 : vector<1x128xf32> to vector<32x128xf32>
    %83 = arith.mulf %81, %82 : vector<32x128xf32>
    %84 = vector.broadcast %63 : vector<1x128xf32> to vector<32x128xf32>
    %85 = arith.addf %83, %84 : vector<32x128xf32>
    %86 = arith.truncf %85 : vector<32x128xf32> to vector<32x128xbf16>
    %c0_32 = arith.constant 0 : index
    %c0_33 = arith.constant 0 : index
    %c512_34 = arith.constant 512 : index
    %87 = vector.load %arg2[%c0_32, %c0_33, %c512_34] : memref<2x128x1024xbf16, #tpu.memory_space<vmem>>, vector<1x128x512xbf16>
    %88 = vector.shape_cast %87 : vector<1x128x512xbf16> to vector<128x512xbf16>
    %cst_35 = arith.constant dense<0.000000e+00> : vector<32x512xf32>
    %89 = tpu.matmul %86, %88, %cst_35 {dimension_numbers = #tpu.dot_dimension_numbers<[1], [0], [0], [1], [0, 0, 1, 1], [], []>} : vector<32x128xbf16>, vector<128x512xbf16>, vector<32x512xf32> -> vector<32x512xf32>
    %c0_36 = arith.constant 0 : index
    %c0_37 = arith.constant 0 : index
    %c768 = arith.constant 768 : index
    %90 = vector.load %arg4[%c0_36, %c0_37, %c768] : memref<2x1x1664xf32, #tpu.memory_space<vmem>>, vector<1x1x512xf32>
    %91 = vector.shape_cast %90 : vector<1x1x512xf32> to vector<1x512xf32>
    %92 = vector.broadcast %91 : vector<1x512xf32> to vector<32x512xf32>
    %93 = arith.addf %89, %92 : vector<32x512xf32>
    %cst_38 = arith.constant 0.000000e+00 : f32
    %94 = vector.broadcast %cst_38 : f32 to vector<32x512xf32>
    %95 = arith.maximumf %93, %94 : vector<32x512xf32>
    %96 = arith.truncf %95 : vector<32x512xf32> to vector<32x512xbf16>
    %c0_39 = arith.constant 0 : index
    %c0_40 = arith.constant 0 : index
    %97 = vector.load %arg3[%c0_39, %c0_40] : memref<1152x128xbf16, #tpu.memory_space<vmem>>, vector<512x128xbf16>
    %cst_41 = arith.constant dense<0.000000e+00> : vector<32x128xf32>
    %98 = tpu.matmul %96, %97, %cst_41 {dimension_numbers = #tpu.dot_dimension_numbers<[1], [0], [0], [1], [0, 0, 1, 1], [], []>} : vector<32x512xbf16>, vector<512x128xbf16>, vector<32x128xf32> -> vector<32x128xf32>
    %c0_42 = arith.constant 0 : index
    %c0_43 = arith.constant 0 : index
    %c1280 = arith.constant 1280 : index
    %99 = vector.load %arg4[%c0_42, %c0_43, %c1280] : memref<2x1x1664xf32, #tpu.memory_space<vmem>>, vector<1x1x128xf32>
    %100 = vector.shape_cast %99 : vector<1x1x128xf32> to vector<1x128xf32>
    %101 = vector.broadcast %100 : vector<1x128xf32> to vector<32x128xf32>
    %102 = arith.addf %98, %101 : vector<32x128xf32>
    %103 = arith.addf %85, %102 : vector<32x128xf32>
    %c0_44 = arith.constant 0 : index
    %c0_45 = arith.constant 0 : index
    %c1408 = arith.constant 1408 : index
    %104 = vector.load %arg4[%c0_44, %c0_45, %c1408] : memref<2x1x1664xf32, #tpu.memory_space<vmem>>, vector<1x1x128xf32>
    %105 = vector.shape_cast %104 : vector<1x1x128xf32> to vector<1x128xf32>
    %c0_46 = arith.constant 0 : index
    %c0_47 = arith.constant 0 : index
    %c1536 = arith.constant 1536 : index
    %106 = vector.load %arg4[%c0_46, %c0_47, %c1536] : memref<2x1x1664xf32, #tpu.memory_space<vmem>>, vector<1x1x128xf32>
    %107 = vector.shape_cast %106 : vector<1x1x128xf32> to vector<1x128xf32>
    %cst_48 = arith.constant dense<0.000000e+00> : vector<32xf32>
    %108 = vector.multi_reduction <add>, %103, %cst_48 [1] : vector<32x128xf32> to vector<32xf32>
    %109 = vector.shape_cast %108 : vector<32xf32> to vector<32x1xf32>
    %cst_49 = arith.constant 1.280000e+02 : f32
    %110 = vector.broadcast %cst_49 : f32 to vector<32x1xf32>
    %111 = arith.divf %109, %110 : vector<32x1xf32>
    %112 = vector.broadcast %111 : vector<32x1xf32> to vector<32x128xf32>
    %113 = arith.subf %103, %112 : vector<32x128xf32>
    %114 = arith.mulf %113, %113 : vector<32x128xf32>
    %cst_50 = arith.constant dense<0.000000e+00> : vector<32xf32>
    %115 = vector.multi_reduction <add>, %114, %cst_50 [1] : vector<32x128xf32> to vector<32xf32>
    %116 = vector.shape_cast %115 : vector<32xf32> to vector<32x1xf32>
    %cst_51 = arith.constant 1.280000e+02 : f32
    %117 = vector.broadcast %cst_51 : f32 to vector<32x1xf32>
    %118 = arith.divf %116, %117 : vector<32x1xf32>
    %119 = vector.broadcast %111 : vector<32x1xf32> to vector<32x128xf32>
    %120 = arith.subf %103, %119 : vector<32x128xf32>
    %cst_52 = arith.constant 9.99999997E-7 : f32
    %121 = vector.broadcast %cst_52 : f32 to vector<32x1xf32>
    %122 = arith.addf %118, %121 : vector<32x1xf32>
    %123 = math.rsqrt %122 : vector<32x1xf32>
    %124 = vector.broadcast %123 : vector<32x1xf32> to vector<32x128xf32>
    %125 = arith.mulf %120, %124 : vector<32x128xf32>
    %126 = vector.broadcast %105 : vector<1x128xf32> to vector<32x128xf32>
    %127 = arith.mulf %125, %126 : vector<32x128xf32>
    %128 = vector.broadcast %107 : vector<1x128xf32> to vector<32x128xf32>
    %129 = arith.addf %127, %128 : vector<32x128xf32>
    %130 = arith.truncf %129 : vector<32x128xf32> to vector<32x128xbf16>
    %c1 = arith.constant 1 : index
    %c0_53 = arith.constant 0 : index
    %c0_54 = arith.constant 0 : index
    %131 = vector.load %arg2[%c1, %c0_53, %c0_54] : memref<2x128x1024xbf16, #tpu.memory_space<vmem>>, vector<1x128x384xbf16>
    %132 = vector.shape_cast %131 : vector<1x128x384xbf16> to vector<128x384xbf16>
    %cst_55 = arith.constant dense<0.000000e+00> : vector<32x384xf32>
    %133 = tpu.matmul %130, %132, %cst_55 {dimension_numbers = #tpu.dot_dimension_numbers<[1], [0], [0], [1], [0, 0, 1, 1], [], []>} : vector<32x128xbf16>, vector<128x384xbf16>, vector<32x384xf32> -> vector<32x384xf32>
    %c1_56 = arith.constant 1 : index
    %c0_57 = arith.constant 0 : index
    %c0_58 = arith.constant 0 : index
    %134 = vector.load %arg4[%c1_56, %c0_57, %c0_58] : memref<2x1x1664xf32, #tpu.memory_space<vmem>>, vector<1x1x384xf32>
    %135 = vector.shape_cast %134 : vector<1x1x384xf32> to vector<1x384xf32>
    %136 = vector.broadcast %135 : vector<1x384xf32> to vector<32x384xf32>
    %137 = arith.addf %133, %136 : vector<32x384xf32>
    %138 = vector.extract_strided_slice %137 {offsets = [0, 0], sizes = [32, 64], strides = [1, 1]} : vector<32x384xf32> to vector<32x64xf32>
    %139 = vector.extract_strided_slice %137 {offsets = [0, 128], sizes = [32, 64], strides = [1, 1]} : vector<32x384xf32> to vector<32x64xf32>
    %140 = vector.extract_strided_slice %137 {offsets = [0, 256], sizes = [32, 64], strides = [1, 1]} : vector<32x384xf32> to vector<32x64xf32>
    %141 = arith.truncf %138 : vector<32x64xf32> to vector<32x64xbf16>
    %142 = arith.truncf %139 : vector<32x64xf32> to vector<32x64xbf16>
    %cst_59 = arith.constant dense<0.000000e+00> : vector<32x32xf32>
    %143 = tpu.matmul %141, %142, %cst_59 {dimension_numbers = #tpu.dot_dimension_numbers<[1], [1], [0], [0], [0, 0, 1, 0], [], []>} : vector<32x64xbf16>, vector<32x64xbf16>, vector<32x32xf32> -> vector<32x32xf32>
    %144 = arith.addf %143, %1 : vector<32x32xf32>
    %cst_60 = arith.constant dense<0xFF800000> : vector<32xf32>
    %145 = vector.multi_reduction <maximumf>, %144, %cst_60 [1] : vector<32x32xf32> to vector<32xf32>
    %146 = vector.shape_cast %145 : vector<32xf32> to vector<32x1xf32>
    %147 = vector.broadcast %146 : vector<32x1xf32> to vector<32x32xf32>
    %148 = arith.subf %144, %147 : vector<32x32xf32>
    %149 = math.exp %148 : vector<32x32xf32>
    %cst_61 = arith.constant dense<0.000000e+00> : vector<32xf32>
    %150 = vector.multi_reduction <add>, %149, %cst_61 [1] : vector<32x32xf32> to vector<32xf32>
    %151 = vector.shape_cast %150 : vector<32xf32> to vector<32x1xf32>
    %152 = tpu.reciprocal %151 {approx = true} : vector<32x1xf32> -> vector<32x1xf32>
    %153 = vector.broadcast %152 : vector<32x1xf32> to vector<32x32xf32>
    %154 = arith.mulf %149, %153 : vector<32x32xf32>
    %155 = arith.truncf %154 : vector<32x32xf32> to vector<32x32xbf16>
    %156 = arith.truncf %140 : vector<32x64xf32> to vector<32x64xbf16>
    %cst_62 = arith.constant dense<0.000000e+00> : vector<32x64xf32>
    %157 = tpu.matmul %155, %156, %cst_62 {dimension_numbers = #tpu.dot_dimension_numbers<[1], [0], [0], [1], [0, 0, 1, 1], [], []>} : vector<32x32xbf16>, vector<32x64xbf16>, vector<32x64xf32> -> vector<32x64xf32>
    %158 = vector.extract_strided_slice %137 {offsets = [0, 64], sizes = [32, 64], strides = [1, 1]} : vector<32x384xf32> to vector<32x64xf32>
    %159 = vector.extract_strided_slice %137 {offsets = [0, 192], sizes = [32, 64], strides = [1, 1]} : vector<32x384xf32> to vector<32x64xf32>
    %160 = vector.extract_strided_slice %137 {offsets = [0, 320], sizes = [32, 64], strides = [1, 1]} : vector<32x384xf32> to vector<32x64xf32>
    %161 = arith.truncf %158 : vector<32x64xf32> to vector<32x64xbf16>
    %162 = arith.truncf %159 : vector<32x64xf32> to vector<32x64xbf16>
    %cst_63 = arith.constant dense<0.000000e+00> : vector<32x32xf32>
    %163 = tpu.matmul %161, %162, %cst_63 {dimension_numbers = #tpu.dot_dimension_numbers<[1], [1], [0], [0], [0, 0, 1, 0], [], []>} : vector<32x64xbf16>, vector<32x64xbf16>, vector<32x32xf32> -> vector<32x32xf32>
    %164 = arith.addf %163, %1 : vector<32x32xf32>
    %cst_64 = arith.constant dense<0xFF800000> : vector<32xf32>
    %165 = vector.multi_reduction <maximumf>, %164, %cst_64 [1] : vector<32x32xf32> to vector<32xf32>
    %166 = vector.shape_cast %165 : vector<32xf32> to vector<32x1xf32>
    %167 = vector.broadcast %166 : vector<32x1xf32> to vector<32x32xf32>
    %168 = arith.subf %164, %167 : vector<32x32xf32>
    %169 = math.exp %168 : vector<32x32xf32>
    %cst_65 = arith.constant dense<0.000000e+00> : vector<32xf32>
    %170 = vector.multi_reduction <add>, %169, %cst_65 [1] : vector<32x32xf32> to vector<32xf32>
    %171 = vector.shape_cast %170 : vector<32xf32> to vector<32x1xf32>
    %172 = tpu.reciprocal %171 {approx = true} : vector<32x1xf32> -> vector<32x1xf32>
    %173 = vector.broadcast %172 : vector<32x1xf32> to vector<32x32xf32>
    %174 = arith.mulf %169, %173 : vector<32x32xf32>
    %175 = arith.truncf %174 : vector<32x32xf32> to vector<32x32xbf16>
    %176 = arith.truncf %160 : vector<32x64xf32> to vector<32x64xbf16>
    %cst_66 = arith.constant dense<0.000000e+00> : vector<32x64xf32>
    %177 = tpu.matmul %175, %176, %cst_66 {dimension_numbers = #tpu.dot_dimension_numbers<[1], [0], [0], [1], [0, 0, 1, 1], [], []>} : vector<32x32xbf16>, vector<32x64xbf16>, vector<32x64xf32> -> vector<32x64xf32>
    %178 = tpu.concatenate %157, %177 in 1 : vector<32x64xf32>, vector<32x64xf32> -> vector<32x128xf32>
    %179 = arith.truncf %178 : vector<32x128xf32> to vector<32x128xbf16>
    %c1_67 = arith.constant 1 : index
    %c0_68 = arith.constant 0 : index
    %c384_69 = arith.constant 384 : index
    %180 = vector.load %arg2[%c1_67, %c0_68, %c384_69] : memref<2x128x1024xbf16, #tpu.memory_space<vmem>>, vector<1x128x128xbf16>
    %181 = vector.shape_cast %180 : vector<1x128x128xbf16> to vector<128x128xbf16>
    %cst_70 = arith.constant dense<0.000000e+00> : vector<32x128xf32>
    %182 = tpu.matmul %179, %181, %cst_70 {dimension_numbers = #tpu.dot_dimension_numbers<[1], [0], [0], [1], [0, 0, 1, 1], [], []>} : vector<32x128xbf16>, vector<128x128xbf16>, vector<32x128xf32> -> vector<32x128xf32>
    %c1_71 = arith.constant 1 : index
    %c0_72 = arith.constant 0 : index
    %c384_73 = arith.constant 384 : index
    %183 = vector.load %arg4[%c1_71, %c0_72, %c384_73] : memref<2x1x1664xf32, #tpu.memory_space<vmem>>, vector<1x1x128xf32>
    %184 = vector.shape_cast %183 : vector<1x1x128xf32> to vector<1x128xf32>
    %185 = vector.broadcast %184 : vector<1x128xf32> to vector<32x128xf32>
    %186 = arith.addf %182, %185 : vector<32x128xf32>
    %187 = arith.addf %129, %186 : vector<32x128xf32>
    %c1_74 = arith.constant 1 : index
    %c0_75 = arith.constant 0 : index
    %c512_76 = arith.constant 512 : index
    %188 = vector.load %arg4[%c1_74, %c0_75, %c512_76] : memref<2x1x1664xf32, #tpu.memory_space<vmem>>, vector<1x1x128xf32>
    %189 = vector.shape_cast %188 : vector<1x1x128xf32> to vector<1x128xf32>
    %c1_77 = arith.constant 1 : index
    %c0_78 = arith.constant 0 : index
    %c640_79 = arith.constant 640 : index
    %190 = vector.load %arg4[%c1_77, %c0_78, %c640_79] : memref<2x1x1664xf32, #tpu.memory_space<vmem>>, vector<1x1x128xf32>
    %191 = vector.shape_cast %190 : vector<1x1x128xf32> to vector<1x128xf32>
    %cst_80 = arith.constant dense<0.000000e+00> : vector<32xf32>
    %192 = vector.multi_reduction <add>, %187, %cst_80 [1] : vector<32x128xf32> to vector<32xf32>
    %193 = vector.shape_cast %192 : vector<32xf32> to vector<32x1xf32>
    %cst_81 = arith.constant 1.280000e+02 : f32
    %194 = vector.broadcast %cst_81 : f32 to vector<32x1xf32>
    %195 = arith.divf %193, %194 : vector<32x1xf32>
    %196 = vector.broadcast %195 : vector<32x1xf32> to vector<32x128xf32>
    %197 = arith.subf %187, %196 : vector<32x128xf32>
    %198 = arith.mulf %197, %197 : vector<32x128xf32>
    %cst_82 = arith.constant dense<0.000000e+00> : vector<32xf32>
    %199 = vector.multi_reduction <add>, %198, %cst_82 [1] : vector<32x128xf32> to vector<32xf32>
    %200 = vector.shape_cast %199 : vector<32xf32> to vector<32x1xf32>
    %cst_83 = arith.constant 1.280000e+02 : f32
    %201 = vector.broadcast %cst_83 : f32 to vector<32x1xf32>
    %202 = arith.divf %200, %201 : vector<32x1xf32>
    %203 = vector.broadcast %195 : vector<32x1xf32> to vector<32x128xf32>
    %204 = arith.subf %187, %203 : vector<32x128xf32>
    %cst_84 = arith.constant 9.99999997E-7 : f32
    %205 = vector.broadcast %cst_84 : f32 to vector<32x1xf32>
    %206 = arith.addf %202, %205 : vector<32x1xf32>
    %207 = math.rsqrt %206 : vector<32x1xf32>
    %208 = vector.broadcast %207 : vector<32x1xf32> to vector<32x128xf32>
    %209 = arith.mulf %204, %208 : vector<32x128xf32>
    %210 = vector.broadcast %189 : vector<1x128xf32> to vector<32x128xf32>
    %211 = arith.mulf %209, %210 : vector<32x128xf32>
    %212 = vector.broadcast %191 : vector<1x128xf32> to vector<32x128xf32>
    %213 = arith.addf %211, %212 : vector<32x128xf32>
    %214 = arith.truncf %213 : vector<32x128xf32> to vector<32x128xbf16>
    %c1_85 = arith.constant 1 : index
    %c0_86 = arith.constant 0 : index
    %c512_87 = arith.constant 512 : index
    %215 = vector.load %arg2[%c1_85, %c0_86, %c512_87] : memref<2x128x1024xbf16, #tpu.memory_space<vmem>>, vector<1x128x512xbf16>
    %216 = vector.shape_cast %215 : vector<1x128x512xbf16> to vector<128x512xbf16>
    %cst_88 = arith.constant dense<0.000000e+00> : vector<32x512xf32>
    %217 = tpu.matmul %214, %216, %cst_88 {dimension_numbers = #tpu.dot_dimension_numbers<[1], [0], [0], [1], [0, 0, 1, 1], [], []>} : vector<32x128xbf16>, vector<128x512xbf16>, vector<32x512xf32> -> vector<32x512xf32>
    %c1_89 = arith.constant 1 : index
    %c0_90 = arith.constant 0 : index
    %c768_91 = arith.constant 768 : index
    %218 = vector.load %arg4[%c1_89, %c0_90, %c768_91] : memref<2x1x1664xf32, #tpu.memory_space<vmem>>, vector<1x1x512xf32>
    %219 = vector.shape_cast %218 : vector<1x1x512xf32> to vector<1x512xf32>
    %220 = vector.broadcast %219 : vector<1x512xf32> to vector<32x512xf32>
    %221 = arith.addf %217, %220 : vector<32x512xf32>
    %cst_92 = arith.constant 0.000000e+00 : f32
    %222 = vector.broadcast %cst_92 : f32 to vector<32x512xf32>
    %223 = arith.maximumf %221, %222 : vector<32x512xf32>
    %224 = arith.truncf %223 : vector<32x512xf32> to vector<32x512xbf16>
    %c512_93 = arith.constant 512 : index
    %c0_94 = arith.constant 0 : index
    %225 = vector.load %arg3[%c512_93, %c0_94] : memref<1152x128xbf16, #tpu.memory_space<vmem>>, vector<512x128xbf16>
    %cst_95 = arith.constant dense<0.000000e+00> : vector<32x128xf32>
    %226 = tpu.matmul %224, %225, %cst_95 {dimension_numbers = #tpu.dot_dimension_numbers<[1], [0], [0], [1], [0, 0, 1, 1], [], []>} : vector<32x512xbf16>, vector<512x128xbf16>, vector<32x128xf32> -> vector<32x128xf32>
    %c1_96 = arith.constant 1 : index
    %c0_97 = arith.constant 0 : index
    %c1280_98 = arith.constant 1280 : index
    %227 = vector.load %arg4[%c1_96, %c0_97, %c1280_98] : memref<2x1x1664xf32, #tpu.memory_space<vmem>>, vector<1x1x128xf32>
    %228 = vector.shape_cast %227 : vector<1x1x128xf32> to vector<1x128xf32>
    %229 = vector.broadcast %228 : vector<1x128xf32> to vector<32x128xf32>
    %230 = arith.addf %226, %229 : vector<32x128xf32>
    %231 = arith.addf %213, %230 : vector<32x128xf32>
    %c1_99 = arith.constant 1 : index
    %c0_100 = arith.constant 0 : index
    %c1408_101 = arith.constant 1408 : index
    %232 = vector.load %arg4[%c1_99, %c0_100, %c1408_101] : memref<2x1x1664xf32, #tpu.memory_space<vmem>>, vector<1x1x128xf32>
    %233 = vector.shape_cast %232 : vector<1x1x128xf32> to vector<1x128xf32>
    %c1_102 = arith.constant 1 : index
    %c0_103 = arith.constant 0 : index
    %c1536_104 = arith.constant 1536 : index
    %234 = vector.load %arg4[%c1_102, %c0_103, %c1536_104] : memref<2x1x1664xf32, #tpu.memory_space<vmem>>, vector<1x1x128xf32>
    %235 = vector.shape_cast %234 : vector<1x1x128xf32> to vector<1x128xf32>
    %cst_105 = arith.constant dense<0.000000e+00> : vector<32xf32>
    %236 = vector.multi_reduction <add>, %231, %cst_105 [1] : vector<32x128xf32> to vector<32xf32>
    %237 = vector.shape_cast %236 : vector<32xf32> to vector<32x1xf32>
    %cst_106 = arith.constant 1.280000e+02 : f32
    %238 = vector.broadcast %cst_106 : f32 to vector<32x1xf32>
    %239 = arith.divf %237, %238 : vector<32x1xf32>
    %240 = vector.broadcast %239 : vector<32x1xf32> to vector<32x128xf32>
    %241 = arith.subf %231, %240 : vector<32x128xf32>
    %242 = arith.mulf %241, %241 : vector<32x128xf32>
    %cst_107 = arith.constant dense<0.000000e+00> : vector<32xf32>
    %243 = vector.multi_reduction <add>, %242, %cst_107 [1] : vector<32x128xf32> to vector<32xf32>
    %244 = vector.shape_cast %243 : vector<32xf32> to vector<32x1xf32>
    %cst_108 = arith.constant 1.280000e+02 : f32
    %245 = vector.broadcast %cst_108 : f32 to vector<32x1xf32>
    %246 = arith.divf %244, %245 : vector<32x1xf32>
    %247 = vector.broadcast %239 : vector<32x1xf32> to vector<32x128xf32>
    %248 = arith.subf %231, %247 : vector<32x128xf32>
    %cst_109 = arith.constant 9.99999997E-7 : f32
    %249 = vector.broadcast %cst_109 : f32 to vector<32x1xf32>
    %250 = arith.addf %246, %249 : vector<32x1xf32>
    %251 = math.rsqrt %250 : vector<32x1xf32>
    %252 = vector.broadcast %251 : vector<32x1xf32> to vector<32x128xf32>
    %253 = arith.mulf %248, %252 : vector<32x128xf32>
    %254 = vector.broadcast %233 : vector<1x128xf32> to vector<32x128xf32>
    %255 = arith.mulf %253, %254 : vector<32x128xf32>
    %256 = vector.broadcast %235 : vector<1x128xf32> to vector<32x128xf32>
    %257 = arith.addf %255, %256 : vector<32x128xf32>
    %258 = vector.extract_strided_slice %257 {offsets = [0, 0], sizes = [1, 128], strides = [1, 1]} : vector<32x128xf32> to vector<1x128xf32>
    %259 = vector.extract_strided_slice %257 {offsets = [16, 0], sizes = [1, 128], strides = [1, 1]} : vector<32x128xf32> to vector<1x128xf32>
    %260 = tpu.concatenate %258, %259 in 0 : vector<1x128xf32>, vector<1x128xf32> -> vector<2x128xf32>
    %c1024 = arith.constant 1024 : index
    %c0_110 = arith.constant 0 : index
    %261 = vector.load %arg3[%c1024, %c0_110] : memref<1152x128xbf16, #tpu.memory_space<vmem>>, vector<128x128xbf16>
    %262 = arith.truncf %260 : vector<2x128xf32> to vector<2x128xbf16>
    %cst_111 = arith.constant dense<0.000000e+00> : vector<2x128xf32>
    %263 = tpu.matmul %262, %261, %cst_111 {dimension_numbers = #tpu.dot_dimension_numbers<[1], [0], [0], [1], [0, 0, 1, 1], [], []>} : vector<2x128xbf16>, vector<128x128xbf16>, vector<2x128xf32> -> vector<2x128xf32>
    %c0_112 = arith.constant 0 : index
    %c0_113 = arith.constant 0 : index
    %264 = vector.load %arg5[%c0_112, %c0_113] : memref<1x128xf32, #tpu.memory_space<vmem>>, vector<1x128xf32>
    %265 = vector.broadcast %264 : vector<1x128xf32> to vector<2x128xf32>
    %266 = arith.addf %263, %265 : vector<2x128xf32>
    %c0_114 = arith.constant 0 : index
    %c0_115 = arith.constant 0 : index
    %267 = vector.load %arg6[%c0_114, %c0_115] : memref<2x128xf32, #tpu.memory_space<vmem>>, vector<2x128xf32>
    tpu.vector_store %arg6[%c0_114, %c0_115], %266 {strides = array<i32>} : memref<2x128xf32, #tpu.memory_space<vmem>>, vector<2x128xf32>,
    return
  }
}

</mosaic_0001>

<bundles_post_ra>
// kernel: attention_encoder_forward.1
= control target key start
LH: loop header
LB: loop body
LE: loop exit
PB: predicated region body
PF: predicated region fallthrough
CT: control target
= control target key end

     0   :  { %11 = vsyncpa [#allocation3], 0  ;;  %s5310_s0 = inlined_call_operand.vmem [shape: f32[32,128], index: 0, kind: input, shape index: {}]   ;;  %s5311_s1 = inlined_call_operand.vmem [shape: f32[32,32], index: 1, kind: input, shape index: {}]   ;;  %s5312_s2 = inlined_call_operand.vmem [shape: bf16[2,128,1024], index: 2, kind: input, shape index: {}]   ;;  %s5313_s3 = inlined_call_operand.hbm [shape: bf16[1152,128], index: 3, kind: input, shape index: {}]   ;;  %s5314_s4 = inlined_call_operand.hbm [shape: f32[2,1,1664], index: 4, kind: input, shape index: {}]   ;;  %s5315_s5 = inlined_call_operand.vmem [shape: f32[1,128], index: 5, kind: input, shape index: {}]   ;;  %s5316_s6 = inlined_call_operand.hbm [shape: f32[2,128], index: 6, kind: output, shape index: {}]  }
   0x1   :  { %12 = vsyncpa [#allocation6], 0 }
   0x2   :  { %13 = vsyncpa [#allocation4], 0  ;;  %s4354_s21 = smov [#allocation2]   ;;  %s4282_s25 = scalar_lea.hbm %s5313_s3, 9216 }
   0x3   :  { %s25_s22 = sshll.u32 %s4354_s21, 4  ;;  %p4283_p0 = scmp.ne.s32.totalorder %s5313_s3, %s4282_s25  ;;  %s26_s22 = int_to_ptr.vmem [resolvable:$true] %s25_s22 }
   0x4   :  { %p4286_p1 = scmp.lt.u32.totalorder %s4282_s25, %s5313_s3 }
   0x6   :  { %p4288_p2 = pnand %p4286_p1, %p4283_p0 }
   0x8   :  { %4291 = shalt.err (!%p4288_p2)
}
   0x9   :  { %s4292_s30 = scalar_lea.vmem %s26_s22, 9216  ;;  %p4297_p4 = scmp.lt.s32.totalorder %s26_s22, %s26_s22 }
   0xa   :  { %p4293_p3 = scmp.ne.s32.totalorder %s26_s22, %s4292_s30  ;;  %p4298_p5 = scmp.lt.s32.totalorder %s4292_s30, %s4292_s30 }
   0xc   :  { %p4299_p6 = por %p4298_p5, %p4297_p4 }
   0xe   :  { %p4300_p7 = pnand %p4299_p6, %p4293_p3 }
  0x10   :  { %4303 = shalt.err (!%p4300_p7)
}
  0x11   :  { %s4355_s7 = smov 64   ;;  %s4356_s8 = smov 4  }
  0x12   :  { %31 = dma.hbm_to_vmem [thread:$0]  %s5313_s3, 9216, %s26_s22, [#allocation3], %s4355_s7, %s4355_s7, %s4356_s8  }
  0x13   :  { %s4357_s11 = smov [#allocation5]   ;;  %s4304_s15 = scalar_lea.hbm %s5314_s4, 416 }
  0x14   :  { %s37_s12 = sshll.u32 %s4357_s11, 4  ;;  %p4305_p8 = scmp.ne.s32.totalorder %s5314_s4, %s4304_s15  ;;  %s38_s12 = int_to_ptr.vmem [resolvable:$true] %s37_s12 }
  0x15   :  { %p4308_p9 = scmp.lt.u32.totalorder %s4304_s15, %s5314_s4 }
  0x17   :  { %p4310_p10 = pnand %p4308_p9, %p4305_p8 }
  0x19   :  { %4313 = shalt.err (!%p4310_p10)
}
  0x1a   :  { %s4314_s20 = scalar_lea.vmem %s38_s12, 416  ;;  %p4319_p12 = scmp.lt.s32.totalorder %s38_s12, %s38_s12 }
  0x1b   :  { %p4315_p11 = scmp.ne.s32.totalorder %s38_s12, %s4314_s20  ;;  %p4320_p13 = scmp.lt.s32.totalorder %s4314_s20, %s4314_s20 }
  0x1d   :  { %p4321_p0 = por %p4320_p13, %p4319_p12 }
  0x1f   :  { %p4322_p1 = pnand %p4321_p0, %p4315_p11 }
  0x21   :  { %4325 = shalt.err (!%p4322_p1)
}
  0x22   :  { %s4358_s3 = smov 208   ;;  %s4359_s21 = smov 13  }
  0x23   :  { %43 = dma.hbm_to_vmem [thread:$0]  %s5314_s4, 416, %s38_s12, [#allocation6], %s4358_s3, %s4358_s3, %s4359_s21  }
  0x24   :  { %4348 = dma.done.wait [#allocation3], 9216  }
  0x25   :  { %4349 = vsyncadd [#allocation3], 4294958080 }
  0x26   :  { %4350 = dma.done.wait [#allocation6], 416  }
  0x27   :  { %4351 = vsyncadd [#allocation6], 4294966880  ;;  %v4360_v0 = vmov 0   ;;  %v63_v1 = vld [vmem:[%s5312_s2] sm:$0xff]  ;;  %v54_v13 = vld [vmem:[%s5310_s0 + $0x8] sm:$0xff]  ;;  %v97_v39 = vlaneseq  ;;  %vm346_vm0 = vcmask 523264  }
  0x28   :  { %272 = vmatprep.mubr.bf16.mxu0 %v4360_v0  ;;  %v65_v2 = vld [vmem:[%s5312_s2 + $0x20] sm:$0xff]  ;;  %v4483_v36 = vld [vmem:[%s5310_s0 + $0x10] sm:$0xff]  ;;  %v4488_v37 = vld [vmem:[%s5310_s0 + $0x18] sm:$0xff]  ;;  %vm408_vm1 = vcmask 261120   ;;  %vm4362_vm2 = vmmov 0   ;;  %vm3277_vm3 = vcmask 1040384  }
  0x29   :  { %v67_v3 = vld [vmem:[%s5312_s2 + $0x40] sm:$0xff]  ;;  %v3409_v4 = vcombine.high %v63_v1, %v65_v2  ;;  %v3408_v5 = vcombine.low %v63_v1, %v65_v2  ;;  %v4493_v38 = vpack.c.bf16 %v4488_v37, %v4483_v36  ;;  %v4496_v40 = vshrl.u32 %v97_v39, 7  ;;  %s4363_s8 = smov [#allocation7]  }
  0x2a   :  { %v69_v6 = vld [vmem:[%s5312_s2 + $0x60] sm:$0xff]  ;;  %s3398_s9 = sshll.u32 %s4363_s8, 4  ;;  %s3399_s9 = int_to_ptr.vmem [resolvable:$true] %s3398_s9 }
  0x2b   :  { %v3412_v7 = vcombine.high %v67_v3, %v69_v6  ;;  %v71_v8 = vld [vmem:[%s5312_s2 + $0x80] sm:$0xff]  ;;  %240 = vmatprep.subr.bf16.mxu0 %v3409_v4  ;;  %v3411_v10 = vcombine.low %v67_v3, %v69_v6  ;;  %v4499_v41 = vsub.s32 0, %v4496_v40  ;;  %v4504_v43 = vsub.s32 1, %v4496_v40  ;;  %v66_v6 = vld [vmem:[%s5312_s2 + $0x28] sm:$0xf]  ;;  %s4326_s10 = scalar_lea.vmem %s3399_s9, 32  ;;  %p4331_p3 = scmp.lt.s32.totalorder %s3399_s9, %s3399_s9 }
  0x2c   :  { %v73_v9 = vld [vmem:[%s5312_s2 + $0xa0] sm:$0xff]  ;;  %241 = vmatpush1.bf16.msra.mxu0 %v3408_v5  ;;  %v64_v5 = vld [vmem:[%s5312_s2 + $0x8] sm:$0xf]  ;;  %p4327_p2 = scmp.ne.s32.totalorder %s3399_s9, %s4326_s10  ;;  %p4332_p4 = scmp.lt.s32.totalorder %s4326_s10, %s4326_s10 }
  0x2d   :  { %242 = vmatprep.subr.bf16.mxu0 %v3412_v7  ;;  %v3415_v11 = vcombine.high %v71_v8, %v73_v9  ;;  %v53_v12 = vld [vmem:[%s5310_s0] sm:$0xff]  ;;  %v3414_v17 = vcombine.low %v71_v8, %v73_v9  ;;  %v68_v7 = vld [vmem:[%s5312_s2 + $0x48] sm:$0xf]  ;;  %v3410_v8 = vcombine.low %v64_v5, %v66_v6 }
  0x2e   :  { %v75_v14 = vld [vmem:[%s5312_s2 + $0xc0] sm:$0xff]  ;;  %v61_v16 = vpack.c.bf16 %v54_v13, %v53_v12  ;;  %v70_v9 = vld [vmem:[%s5312_s2 + $0x68] sm:$0xf]  ;;  %p4333_p5 = por %p4332_p4, %p4331_p3 }
  0x2f   :  { %v77_v15 = vld [vmem:[%s5312_s2 + $0xe0] sm:$0xff]  ;;  %v74_v12 = vld [vmem:[%s5312_s2 + $0xa8] sm:$0xf]  ;;  %3910 = vmatprep.subr.bf16.mxu1 %v3410_v8 }
  0x30   :  { %243 = vmatpush1.bf16.msra.mxu0 %v3411_v10  ;;  %v79_v18 = vld [vmem:[%s5312_s2 + $0x100] sm:$0xff]  ;;  %3926 = vmatprep.mubr.bf16.mxu1 %v61_v16  ;;  %v3418_v20 = vcombine.high %v75_v14, %v77_v15  ;;  %v3417_v21 = vcombine.low %v75_v14, %v77_v15  ;;  %v3413_v10 = vcombine.low %v68_v7, %v70_v9  ;;  %v76_v14 = vld [vmem:[%s5312_s2 + $0xc8] sm:$0xf]  ;;  %p4334_p6 = pnand %p4333_p5, %p4327_p2 }
  0x31   :  { %v81_v19 = vld [vmem:[%s5312_s2 + $0x120] sm:$0xff]  ;;  %244 = vmatprep.subr.bf16.mxu0 %v3415_v11  ;;  %v72_v11 = vld [vmem:[%s5312_s2 + $0x88] sm:$0xf]  ;;  %3911 = vmatpush3.bf16.msra.mxu1 %v3410_v8 }
  0x32   :  { %v83_v22 = vld [vmem:[%s5312_s2 + $0x140] sm:$0xff]  ;;  %v3421_v24 = vcombine.high %v79_v18, %v81_v19  ;;  %v3420_v25 = vcombine.low %v79_v18, %v81_v19  ;;  %3912 = vmatprep.subr.bf16.mxu1 %v3413_v10  ;;  %v3416_v13 = vcombine.low %v72_v11, %v74_v12  ;;  %v78_v15 = vld [vmem:[%s5312_s2 + $0xe8] sm:$0xf] }
  0x33   :  { %v85_v23 = vld [vmem:[%s5312_s2 + $0x160] sm:$0xff]  ;;  %v82_v18 = vld [vmem:[%s5312_s2 + $0x128] sm:$0xf] }
  0x34   :  { %245 = vmatpush1.bf16.msra.mxu0 %v3414_v17  ;;  %v87_v26 = vld [vmem:[%s5312_s2 + $0x180] sm:$0xff]  ;;  %v3424_v28 = vcombine.high %v83_v22, %v85_v23  ;;  %v3423_v29 = vcombine.low %v83_v22, %v85_v23  ;;  %v80_v17 = vld [vmem:[%s5312_s2 + $0x108] sm:$0xf] }
  0x35   :  { %246 = vmatprep.subr.bf16.mxu0 %v3418_v20  ;;  %v89_v27 = vld [vmem:[%s5312_s2 + $0x1a0] sm:$0xff]  ;;  %3913 = vmatpush3.bf16.msra.mxu1 %v3413_v10  ;;  %v3422_v19 = vcombine.low %v80_v17, %v82_v18  ;;  %v84_v20 = vld [vmem:[%s5312_s2 + $0x148] sm:$0xf] }
  0x36   :  { %v91_v30 = vld [vmem:[%s5312_s2 + $0x1c0] sm:$0xff]  ;;  %v3427_v32 = vcombine.high %v87_v26, %v89_v27  ;;  %v3426_v33 = vcombine.low %v87_v26, %v89_v27  ;;  %3914 = vmatprep.subr.bf16.mxu1 %v3416_v13  ;;  %v88_v23 = vld [vmem:[%s5312_s2 + $0x188] sm:$0xf] }
  0x37   :  { %v93_v31 = vld [vmem:[%s5312_s2 + $0x1e0] sm:$0xff]  ;;  %v92_v26 = vld [vmem:[%s5312_s2 + $0x1c8] sm:$0xf] }
  0x38   :  { %247 = vmatpush1.bf16.msra.mxu0 %v3417_v21  ;;  %v3430_v34 = vcombine.high %v91_v30, %v93_v31  ;;  %v3429_v35 = vcombine.low %v91_v30, %v93_v31  ;;  %v4501_v42 = vld [vmem:[#allocation5] sm:$0x7]  ;;  %v86_v21 = vld [vmem:[%s5312_s2 + $0x168] sm:$0xf] }
  0x39   :  { %248 = vmatprep.subr.bf16.mxu0 %v3421_v24  ;;  %v100_v44 = vrot.slane %v4501_v42, %v4499_v41  ;;  %v104_v46 = vrot.slane %v4501_v42, %v4504_v43  ;;  %3915 = vmatpush3.bf16.msra.mxu1 %v3416_v13  ;;  %v3425_v22 = vcombine.low %v84_v20, %v86_v21  ;;  %v90_v24 = vld [vmem:[%s5312_s2 + $0x1a8] sm:$0xf]  ;;  %v4587_v30 = vld [vmem:[%s5311_s1] sm:$0xff] }
  0x3a   :  { %v94_v27 = vld [vmem:[%s5312_s2 + $0x1e8] sm:$0xf] }
  0x3c   :  { %249 = vmatpush1.bf16.msra.mxu0 %v3420_v25  ;;  %v3428_v25 = vcombine.low %v88_v23, %v90_v24 }
  0x3d   :  { %250 = vmatprep.subr.bf16.mxu0 %v3424_v28  ;;  %v3431_v28 = vcombine.low %v92_v26, %v94_v27 }
  0x40   :  { %251 = vmatpush1.bf16.msra.mxu0 %v3423_v29  ;;  %v4582_v29 = vld [vmem:[%s5311_s1 + $0x10] sm:$0xff] }
  0x41   :  { %252 = vmatprep.subr.bf16.mxu0 %v3427_v32  ;;  %v4592_v32 = vld [vmem:[%s5311_s1 + $0x18] sm:$0xff] }
  0x44   :  { %253 = vmatpush1.bf16.msra.mxu0 %v3426_v33 }
  0x45   :  { %254 = vmatprep.subr.bf16.mxu0 %v3430_v34 }
  0x48   :  { %255 = vmatpush1.bf16.msra.mxu0 %v3429_v35  ;;  %v4598_v35 = vld [vmem:[%s5311_s1 + $0x8] sm:$0xff] }
  0x4b   :  { %273 = vmatmul.mubr.bf16.vlgmr.msra.gmra.mrb[0].mxu0 %v61_v16  ;;  %v3419_v16 = vcombine.low %v76_v14, %v78_v15 }
  0x4c   :  { %282 = vmatprep.mubr.bf16.mxu0 %v4360_v0 }
  0x4d   :  { %3916 = vmatprep.subr.bf16.mxu1 %v3419_v16 }
  0x4e   :  { %3917 = vmatpush3.bf16.msra.mxu1 %v3419_v16 }
  0x4f   :  { %3918 = vmatprep.subr.bf16.mxu1 %v3422_v19 }
  0x52   :  { %3919 = vmatpush3.bf16.msra.mxu1 %v3422_v19 }
  0x53   :  { %283 = vmatmul.mubr.bf16.gmra.mrb[4].mxu0 %v4493_v38  ;;  %3920 = vmatprep.subr.bf16.mxu1 %v3425_v22 }
  0x56   :  { %3921 = vmatpush3.bf16.msra.mxu1 %v3425_v22 }
  0x57   :  { %3922 = vmatprep.subr.bf16.mxu1 %v3428_v25 }
  0x5a   :  { %3923 = vmatpush3.bf16.msra.mxu1 %v3428_v25 }
  0x5b   :  { %3924 = vmatprep.subr.bf16.mxu1 %v3431_v28 }
  0x5e   :  { %3925 = vmatpush3.bf16.msra.mxu1 %v3431_v28 }
  0x61   :  { %3927 = vmatmul.mubr.bf16.vlgmr.msra.gmra.mrb[0].mxu1 %v4493_v38 }
 0x11e   :  { %v274_v45 = vpop.f32.mrb[0].mxu0 }
 0x11f   :  { %v276_v47 = vpop.f32.mrb[1].mxu0  ;;  %v275_v49 = vadd.f32 %v274_v45, %v100_v44 }
 0x120   :  { %v278_v48 = vpop.f32.mrb[2].mxu0  ;;  %v277_v52 = vadd.f32 %v276_v47, %v104_v46 }
 0x121   :  { %v279_v50 = vadd.f32 %v278_v48, %v100_v44  ;;  %v280_v51 = vpop.f32.mrb[3].mxu0 }
 0x122   :  { %v281_v53 = vadd.f32 %v280_v51, %v104_v46  ;;  %v4608_v51 = vsub.s32 2, %v4496_v40 }
 0x123   :  { %v4510_v54 = vpack.c.bf16 %v279_v50, %v275_v49 }
 0x124   :  { %v4512_v55 = vpack.c.bf16 %v281_v53, %v277_v52  ;;  %v108_v52 = vrot.slane %v4501_v42, %v4608_v51 }
 0x125   :  { %3934 = vmatprep.mubr.msk.bf16.mxu0 %vm346_vm0, %v4510_v54 }
 0x126   :  { %v284_v56 = vpop.f32.mrb[4].mxu0  ;;  %4074 = vmatprep.subr.msk.bf16.mxu0 %vm346_vm0, %v4512_v55  ;;  %v354_v57 = vsel %vm346_vm0, %v4512_v55, 0 }
 0x127   :  { %v286_v58 = vpop.f32.mrb[5].mxu0  ;;  %3931 = vmatpush3.bf16.xpose.msra.mxu0 %v354_v57  ;;  %v285_v60 = vadd.f32 %v284_v56, %v100_v44 }
 0x128   :  { %v288_v59 = vpop.f32.mrb[6].mxu0  ;;  %v287_v63 = vadd.f32 %v286_v58, %v104_v46 }
 0x129   :  { %v289_v61 = vadd.f32 %v288_v59, %v100_v44  ;;  %v290_v62 = vpop.f32.mrb[7].mxu0 }
 0x12a   :  { %v291_v1 = vadd.f32 %v290_v62, %v104_v46 }
 0x12b   :  { %v4520_v2 = vpack.c.bf16 %v289_v61, %v285_v60 }
 0x12c   :  { %v4522_v3 = vpack.c.bf16 %v291_v1, %v287_v63 }
 0x12e   :  { %4075 = vmatprep.subr.msk.bf16.mxu0 %vm346_vm0, %v4522_v3  ;;  %v357_v4 = vsel %vm346_vm0, %v4522_v3, 0 }
 0x12f   :  { %3933 = vmatpush3.bf16.xpose.msra.mxu0 %v357_v4 }
 0x134   :  { %v3928_v53 = vpop.f32.mrb[0].mxu1 }
 0x135   :  { %v336_v56 = vadd.f32 %v3928_v53, %v108_v52  ;;  %v327_v57 = vpop.f32.mrb[1].mxu1 }
 0x136   :  { %3935 = vmatmul.mubr.msk.bf16.vlgmr.msra.gmra.mrb[8].mxu0 %vm346_vm0, %v4520_v2  ;;  %v328_v58 = vadd.f32 %v327_v57, %v108_v52  ;;  %v3929_v59 = vpop.f32.mrb[2].mxu1 }
 0x137   :  { %v339_v60 = vadd.f32 %v3929_v59, %v108_v52  ;;  %v330_v61 = vpop.f32.mrb[3].mxu1 }
 0x138   :  { %v331_v62 = vadd.f32 %v330_v61, %v108_v52 }
 0x139   :  { %v4612_v63 = vpack.c.bf16 %v339_v60, %v336_v56 }
 0x13a   :  { %v4614_v1 = vpack.c.bf16 %v331_v62, %v328_v58 }
 0x13c   :  { %3938 = vmatprep.subr.bf16.mxu1 %v4614_v1 }
 0x13d   :  { %3939 = vmatpush3.bf16.msra.mxu1 %v4614_v1 }
 0x13e   :  { %3940 = vmatprep.subr.bf16.mxu1 %v4612_v63 }
 0x141   :  { %3941 = vmatpush3.bf16.msra.mxu1 %v4612_v63 }
 0x209   :  { %v3936_v31 = vpop.f32.mrb[8].mxu0 }
 0x20a   :  { %v402_v33 = vadd.f32 %v3936_v31, %v4582_v29  ;;  %v393_v34 = vpop.f32.mrb[9].mxu0 }
 0x20b   :  { %v394_v38 = vadd.f32 %v393_v34, %v4587_v30  ;;  %v3937_v39 = vpop.f32.mrb[10].mxu0 }
 0x20c   :  { %v405_v44 = vadd.f32 %v3937_v39, %v4592_v32  ;;  %v396_v45 = vpop.f32.mrb[11].mxu0  ;;  %v415_v46 = vsel %vm408_vm1, %v402_v33, -inf }
 0x20d   :  { %v397_v47 = vadd.f32 %v396_v45, %v4598_v35  ;;  %416 = vmax.xlane.f32.xlu1 %v415_v46  ;;  %v409_v48 = vsel %vm408_vm1, %v394_v38, -inf }
 0x20e   :  { %410 = vmax.xlane.f32.xlu0 %v409_v48  ;;  %v418_v49 = vsel %vm408_vm1, %v405_v44, -inf }
 0x20f   :  { %v412_v50 = vsel %vm408_vm1, %v397_v47, -inf }
 0x211   :  { %419 = vmax.xlane.f32.xlu1 %v418_v49 }
 0x212   :  { %413 = vmax.xlane.f32.xlu0 %v412_v50 }
 0x29a   :  { %v417_v42 = vpop.xlane.xlu1 %416 }
 0x29b   :  { %v423_v4 = vsub.f32 %v402_v33, %v417_v42  ;;  %v411_v5 = vpop.xlane.xlu0 %410 }
 0x29c   :  { %v421_v6 = vsub.f32 %v394_v38, %v411_v5 }
 0x29d   :  { %v429_v7 = vmul.f32 1.442695, %v423_v4 }
 0x29e   :  { %v425_v8 = vmul.f32 1.442695, %v421_v6  ;;  %v420_v9 = vpop.xlane.xlu1 %419 }
 0x29f   :  { %4184 = vpow2.f32 %v429_v7  ;;  %v424_v10 = vsub.f32 %v405_v44, %v420_v9  ;;  %v414_v11 = vpop.xlane.xlu0 %413 }
 0x2a0   :  { %v422_v12 = vsub.f32 %v397_v47, %v414_v11  ;;  %4186 = vpow2.f32 %v425_v8 }
 0x2a1   :  { %v431_v13 = vmul.f32 1.442695, %v424_v10 }
 0x2a2   :  { %v427_v14 = vmul.f32 1.442695, %v422_v12 }
 0x2a4   :  { %4188 = vpow2.f32 %v427_v14 }
 0x2a5   :  { %4190 = vpow2.f32 %v431_v13 }
 0x2a9   :  { %v4185_v15 = vpop.eup %4184 }
 0x2aa   :  { %v439_v16 = vsel %vm408_vm1, %v4185_v15, 0.0  ;;  %v4187_v17 = vpop.eup %4186 }
 0x2ab   :  { %440 = vadd.xlane.f32.xlu0 %v439_v16  ;;  %v433_v19 = vsel %vm408_vm1, %v4187_v17, 0.0 }
 0x2ae   :  { %v4189_v18 = vpop.eup %4188 }
 0x2af   :  { %434 = vadd.xlane.f32.xlu0 %v433_v19  ;;  %v436_v20 = vsel %vm408_vm1, %v4189_v18, 0.0  ;;  %v4191_v21 = vpop.eup %4190 }
 0x2b0   :  { %437 = vadd.xlane.f32.xlu1 %v436_v20  ;;  %v442_v22 = vsel %vm408_vm1, %v4191_v21, 0.0 }
 0x2b4   :  { %443 = vadd.xlane.f32.xlu1 %v442_v22 }
 0x2c5   :  { %520 = vrot.lane.b32.xlu0 %v4512_v55, %s4355_s7  ;;  %522 = vrot.lane.b32.xlu1 %v4522_v3, %s4355_s7 }
 0x2c9   :  { %514 = vrot.lane.b32.xlu1 %v4510_v54, %s4355_s7 }
 0x2cd   :  { %516 = vrot.lane.b32.xlu1 %v4520_v2, %s4355_s7 }
 0x338   :  { %v441_v23 = vpop.xlane.xlu0 %440 }
 0x33c   :  { %v435_v24 = vpop.xlane.xlu0 %434 }
 0x33d   :  { %4192 = vrcp.f32 %v435_v24  ;;  %v438_v25 = vpop.xlane.xlu1 %437 }
 0x33e   :  { %4194 = vrcp.f32 %v438_v25 }
 0x33f   :  { %4196 = vrcp.f32 %v441_v23 }
 0x340   :  { %v521_v26 = vpop.permute.xlu0 %520 }
 0x341   :  { %v444_v27 = vpop.xlane.xlu1 %443  ;;  %4076 = vmatprep.subr.msk.bf16.mxu1 %vm346_vm0, %v521_v26  ;;  %v531_v45 = vsel %vm346_vm0, %v521_v26, 0 }
 0x342   :  { %4198 = vrcp.f32 %v444_v27 }
 0x345   :  { %v523_v54 = vpop.permute.xlu1 %522 }
 0x346   :  { %v534_v47 = vsel %vm346_vm0, %v523_v54, 0 }
 0x347   :  { %v4193_v55 = vpop.eup %4192 }
 0x348   :  { %v4195_v28 = vpop.eup %4194  ;;  %v449_v3 = vmul.f32 %v4193_v55, %v4187_v17 }
 0x349   :  { %v450_v31 = vmul.f32 %v4195_v28, %v4189_v18  ;;  %v4197_v33 = vpop.eup %4196  ;;  %v515_v46 = vpop.permute.xlu1 %514 }
 0x34a   :  { %v451_v2 = vmul.f32 %v4197_v33, %v4185_v15 }
 0x34b   :  { %v453_v34 = vpack.c.bf16 %v450_v31, %v449_v3 }
 0x34c   :  { %v4199_v38 = vpop.eup %4198 }
 0x34d   :  { %v452_v39 = vmul.f32 %v4199_v38, %v4191_v21  ;;  %3942 = vmatprep.mubr.msk.bf16.mxu1 %vm408_vm1, %v453_v34  ;;  %v517_v48 = vpop.permute.xlu1 %516 }
 0x34f   :  { %v454_v44 = vpack.c.bf16 %v452_v39, %v451_v2 }
 0x351   :  { %3943 = vmatmul.mubr.msk.bf16.vlgmr.msra.gmra.mrb[4].mxu1 %vm408_vm1, %v454_v44  ;;  %v716_v44 = vld [vmem:[%s5312_s2 + $0xc] sm:$0xf] }
 0x352   :  { %3947 = vmatpush3.bf16.xpose.msra.mxu1 %v531_v45  ;;  %3950 = vmatprep.mubr.msk.bf16.mxu1 %vm346_vm0, %v515_v46  ;;  %v717_v45 = vld [vmem:[%s5312_s2 + $0x2c] sm:$0xf] }
 0x353   :  { %4077 = vmatprep.subr.msk.bf16.mxu1 %vm346_vm0, %v523_v54  ;;  %v718_v46 = vld [vmem:[%s5312_s2 + $0x4c] sm:$0xf] }
 0x35a   :  { %3949 = vmatpush3.bf16.xpose.msra.mxu1 %v534_v47  ;;  %v3441_v47 = vcombine.low %v716_v44, %v717_v45  ;;  %v909_v44 = vld [vmem:[%s5312_s2 + $0x10] sm:$0xff] }
 0x35b   :  { %v911_v45 = vld [vmem:[%s5312_s2 + $0x30] sm:$0xff] }
 0x361   :  { %3951 = vmatmul.mubr.msk.bf16.vlgmr.msra.gmra.mrb[8].mxu1 %vm346_vm0, %v517_v48  ;;  %v719_v48 = vld [vmem:[%s5312_s2 + $0x6c] sm:$0xf] }
 0x362   :  { %1155 = vmatprep.mubr.bf16.mxu1 %v4360_v0 }
 0x424   :  { %v4641_v49 = vpop.f32.mrb[4].mxu1 }
 0x425   :  { %v4643_v50 = vpop.f32.mrb[5].mxu1 }
 0x426   :  { %v4645_v52 = vpop.f32.mrb[6].mxu1 }
 0x427   :  { %v4647_v53 = vpop.f32.mrb[7].mxu1 }
 0x434   :  { %v3952_v56 = vpop.f32.mrb[8].mxu1 }
 0x435   :  { %v570_v57 = vpop.f32.mrb[9].mxu1  ;;  %v579_v61 = vadd.f32 %v3952_v56, %v4582_v29  ;;  %v3442_v56 = vcombine.low %v718_v46, %v719_v48  ;;  %v910_v46 = vld [vmem:[%s5312_s2 + $0x18] sm:$0xff]  ;;  %v3452_v48 = vcombine.high %v909_v44, %v911_v45 }
 0x436   :  { %v571_v58 = vadd.f32 %v570_v57, %v4587_v30  ;;  %v3953_v59 = vpop.f32.mrb[10].mxu1  ;;  %v720_v57 = vld [vmem:[%s5312_s2 + $0x8c] sm:$0xf] }
 0x437   :  { %v573_v60 = vpop.f32.mrb[11].mxu1  ;;  %v582_v5 = vadd.f32 %v3953_v59, %v4592_v32  ;;  %v591_v6 = vsel %vm408_vm1, %v579_v61, -inf  ;;  %1123 = vmatprep.subr.bf16.mxu1 %v3452_v48 }
 0x438   :  { %v574_v62 = vadd.f32 %v573_v60, %v4598_v35  ;;  %v585_v42 = vsel %vm408_vm1, %v571_v58, -inf  ;;  %v722_v60 = vld [vmem:[%s5312_s2 + $0xcc] sm:$0xf] }
 0x439   :  { %586 = vmax.xlane.f32.xlu0 %v585_v42  ;;  %v594_v7 = vsel %vm408_vm1, %v582_v5, -inf  ;;  %v724_v42 = vld [vmem:[%s5312_s2 + $0x10c] sm:$0xf] }
 0x43a   :  { %v588_v4 = vsel %vm408_vm1, %v574_v62, -inf }
 0x43b   :  { %589 = vmax.xlane.f32.xlu1 %v588_v4  ;;  %v725_v4 = vld [vmem:[%s5312_s2 + $0x12c] sm:$0xf] }
 0x43d   :  { %592 = vmax.xlane.f32.xlu0 %v591_v6  ;;  %v726_v6 = vld [vmem:[%s5312_s2 + $0x14c] sm:$0xf] }
 0x441   :  { %595 = vmax.xlane.f32.xlu0 %v594_v7  ;;  %v727_v7 = vld [vmem:[%s5312_s2 + $0x16c] sm:$0xf] }
 0x4c6   :  { %v587_v30 = vpop.xlane.xlu0 %586 }
 0x4c7   :  { %v597_v8 = vsub.f32 %v571_v58, %v587_v30  ;;  %v721_v58 = vld [vmem:[%s5312_s2 + $0xac] sm:$0xf]  ;;  %v3446_v30 = vcombine.low %v726_v6, %v727_v7 }
 0x4c8   :  { %v590_v9 = vpop.xlane.xlu1 %589  ;;  %v3443_v59 = vcombine.low %v720_v57, %v721_v58 }
 0x4c9   :  { %v601_v35 = vmul.f32 1.442695, %v597_v8  ;;  %v598_v11 = vsub.f32 %v574_v62, %v590_v9  ;;  %v728_v8 = vld [vmem:[%s5312_s2 + $0x18c] sm:$0xf] }
 0x4ca   :  { %v593_v29 = vpop.xlane.xlu0 %592  ;;  %v729_v9 = vld [vmem:[%s5312_s2 + $0x1ac] sm:$0xf] }
 0x4cb   :  { %v599_v10 = vsub.f32 %v579_v61, %v593_v29  ;;  %v603_v15 = vmul.f32 1.442695, %v598_v11  ;;  %v723_v61 = vld [vmem:[%s5312_s2 + $0xec] sm:$0xf]  ;;  %v3447_v29 = vcombine.low %v728_v8, %v729_v9 }
 0x4cc   :  { %v3444_v62 = vcombine.low %v722_v60, %v723_v61  ;;  %v914_v60 = vld [vmem:[%s5312_s2 + $0x58] sm:$0xff] }
 0x4cd   :  { %v605_v12 = vmul.f32 1.442695, %v599_v10  ;;  %v730_v10 = vld [vmem:[%s5312_s2 + $0x1cc] sm:$0xf]  ;;  %v916_v61 = vld [vmem:[%s5312_s2 + $0x78] sm:$0xff] }
 0x4ce   :  { %v596_v13 = vpop.xlane.xlu0 %595 }
 0x4cf   :  { %4200 = vpow2.f32 %v605_v12  ;;  %v600_v14 = vsub.f32 %v582_v5, %v596_v13  ;;  %v3445_v5 = vcombine.low %v724_v42, %v725_v4  ;;  %v3457_v4 = vcombine.low %v914_v60, %v916_v61 }
 0x4d0   :  { %4202 = vpow2.f32 %v601_v35  ;;  %v731_v35 = vld [vmem:[%s5312_s2 + $0x1ec] sm:$0xf] }
 0x4d1   :  { %v607_v32 = vmul.f32 1.442695, %v600_v14  ;;  %v3448_v11 = vcombine.low %v730_v10, %v731_v35 }
 0x4d3   :  { %4204 = vpow2.f32 %v607_v32 }
 0x4d4   :  { %4206 = vpow2.f32 %v603_v15 }
 0x4d9   :  { %v4201_v16 = vpop.eup %4200 }
 0x4da   :  { %v615_v17 = vsel %vm408_vm1, %v4201_v16, 0.0  ;;  %v4203_v18 = vpop.eup %4202 }
 0x4db   :  { %616 = vadd.xlane.f32.xlu0 %v615_v17  ;;  %v609_v20 = vsel %vm408_vm1, %v4203_v18, 0.0 }
 0x4dd   :  { %v4205_v19 = vpop.eup %4204 }
 0x4de   :  { %v618_v21 = vsel %vm408_vm1, %v4205_v19, 0.0  ;;  %v4207_v22 = vpop.eup %4206 }
 0x4df   :  { %610 = vadd.xlane.f32.xlu0 %v609_v20  ;;  %619 = vadd.xlane.f32.xlu1 %v618_v21  ;;  %v612_v23 = vsel %vm408_vm1, %v4207_v22, 0.0 }
 0x4e3   :  { %613 = vadd.xlane.f32.xlu1 %v612_v23 }
 0x4f4   :  { %635 = vrot.lane.b32.xlu1 %v4612_v63, %s4355_s7 }
 0x4f5   :  { %633 = vrot.lane.b32.xlu0 %v4614_v1, %s4355_s7 }
 0x568   :  { %v617_v24 = vpop.xlane.xlu0 %616 }
 0x56c   :  { %v620_v25 = vpop.xlane.xlu1 %619  ;;  %v611_v26 = vpop.xlane.xlu0 %610 }
 0x56d   :  { %4208 = vrcp.f32 %v620_v25 }
 0x56e   :  { %4210 = vrcp.f32 %v611_v26 }
 0x56f   :  { %4212 = vrcp.f32 %v617_v24 }
 0x570   :  { %v614_v27 = vpop.xlane.xlu1 %613  ;;  %v634_v55 = vpop.permute.xlu0 %633 }
 0x571   :  { %4214 = vrcp.f32 %v614_v27  ;;  %3954 = vmatprep.subr.bf16.mxu0 %v634_v55 }
 0x572   :  { %3955 = vmatpush3.bf16.msra.mxu0 %v634_v55 }
 0x574   :  { %v636_v28 = vpop.permute.xlu1 %635 }
 0x575   :  { %3956 = vmatprep.subr.bf16.mxu0 %v636_v28 }
 0x576   :  { %3957 = vmatpush3.bf16.msra.mxu0 %v636_v28  ;;  %v3440_v28 = vld [vmem:[#allocation5 + $0x3] ss:$0 sm:$0xff] }
 0x577   :  { %v4209_v3 = vpop.eup %4208  ;;  %3962 = vmatprep.subr.bf16.mxu0 %v3441_v47 }
 0x578   :  { %v4211_v31 = vpop.eup %4210  ;;  %v628_v54 = vmul.f32 %v4209_v3, %v4205_v19 }
 0x579   :  { %v4213_v63 = vpop.eup %4212  ;;  %v625_v1 = vmul.f32 %v4211_v31, %v4203_v18 }
 0x57a   :  { %v627_v38 = vmul.f32 %v4213_v63, %v4201_v16 }
 0x57b   :  { %v4215_v33 = vpop.eup %4214 }
 0x57c   :  { %v626_v34 = vmul.f32 %v4215_v33, %v4207_v22  ;;  %v630_v39 = vpack.c.bf16 %v628_v54, %v627_v38 }
 0x57e   :  { %v629_v2 = vpack.c.bf16 %v626_v34, %v625_v1  ;;  %v4276_v1 = vld [vmem:[%s5310_s0] sm:$0xff] }
 0x580   :  { %3958 = vmatprep.mubr.msk.bf16.mxu0 %vm408_vm1, %v629_v2 }
 0x581   :  { %3959 = vmatmul.mubr.msk.bf16.vlgmr.msra.gmra.mrb[12].mxu0 %vm408_vm1, %v630_v39 }
 0x582   :  { %3963 = vmatpush3.bf16.msra.mxu0 %v3441_v47  ;;  %v3451_v47 = vcombine.low %v909_v44, %v911_v45  ;;  %v932_v45 = vld [vmem:[%s5312_s2 + $0x178] sm:$0xff] }
 0x583   :  { %3964 = vmatprep.subr.bf16.mxu0 %v3442_v56 }
 0x584   :  { %1124 = vmatpush1.bf16.msra.mxu1 %v3451_v47 }
 0x586   :  { %3965 = vmatpush3.bf16.msra.mxu0 %v3442_v56  ;;  %v915_v56 = vld [vmem:[%s5312_s2 + $0x70] sm:$0xff] }
 0x587   :  { %3966 = vmatprep.subr.bf16.mxu0 %v3443_v59 }
 0x58a   :  { %3967 = vmatpush3.bf16.msra.mxu0 %v3443_v59 }
 0x58b   :  { %3968 = vmatprep.subr.bf16.mxu0 %v3444_v62 }
 0x58e   :  { %3969 = vmatpush3.bf16.msra.mxu0 %v3444_v62  ;;  %v3458_v62 = vcombine.high %v914_v60, %v916_v61 }
 0x58f   :  { %3970 = vmatprep.subr.bf16.mxu0 %v3445_v5 }
 0x592   :  { %3971 = vmatpush3.bf16.msra.mxu0 %v3445_v5 }
 0x593   :  { %3972 = vmatprep.subr.bf16.mxu0 %v3446_v30 }
 0x596   :  { %3973 = vmatpush3.bf16.msra.mxu0 %v3446_v30 }
 0x597   :  { %3974 = vmatprep.subr.bf16.mxu0 %v3447_v29 }
 0x59a   :  { %3975 = vmatpush3.bf16.msra.mxu0 %v3447_v29 }
 0x59b   :  { %3976 = vmatprep.subr.bf16.mxu0 %v3448_v11 }
 0x59e   :  { %3977 = vmatpush3.bf16.msra.mxu0 %v3448_v11 }
 0x654   :  { %v3960_v12 = vpop.f32.mrb[12].mxu0 }
 0x655   :  { %v679_v13 = vpop.f32.mrb[13].mxu0 }
 0x656   :  { %v3961_v14 = vpop.f32.mrb[14].mxu0 }
 0x657   :  { %v4097_v15 = vpack.i.bf16 %v3961_v14, %v3960_v12  ;;  %v682_v32 = vpop.f32.mrb[15].mxu0 }
 0x658   :  { %v4092_v16 = vpack.i.bf16 %v682_v32, %v679_v13 }
 0x65a   :  { %4093 = vrot.lane.b32.xlu1 %v4092_v16, %s4355_s7 }
 0x65e   :  { %4098 = vrot.lane.b32.xlu1 %v4097_v15, %s4355_s7 }
 0x6cc   :  { %v4094_v17 = vpop.permute.xlu1 %4093 }
 0x6cd   :  { %v4096_v18 = vunpack.i.h.bf16 %v4094_v17  ;;  %v4095_v19 = vunpack.i.l.bf16 %v4094_v17  ;;  %v917_v17 = vld [vmem:[%s5312_s2 + $0x90] sm:$0xff] }
 0x6cf   :  { %v710_v20 = vsel %vm346_vm0, %v4643_v50, %v4095_v19  ;;  %v711_v21 = vsel %vm346_vm0, %v4647_v53, %v4096_v18  ;;  %v919_v18 = vld [vmem:[%s5312_s2 + $0xb0] sm:$0xff]  ;;  %v918_v19 = vld [vmem:[%s5312_s2 + $0x98] sm:$0xff] }
 0x6d0   :  { %v4099_v22 = vpop.permute.xlu1 %4098  ;;  %v714_v23 = vpack.c.bf16 %v711_v21, %v710_v20  ;;  %v3460_v20 = vcombine.high %v917_v17, %v919_v18  ;;  %v920_v21 = vld [vmem:[%s5312_s2 + $0xb8] sm:$0xff] }
 0x6d1   :  { %v4101_v24 = vunpack.i.h.bf16 %v4099_v22  ;;  %v4100_v25 = vunpack.i.l.bf16 %v4099_v22  ;;  %v3459_v22 = vcombine.low %v917_v17, %v919_v18 }
 0x6d2   :  { %3978 = vmatprep.mubr.bf16.mxu0 %v714_v23  ;;  %v3461_v23 = vcombine.low %v918_v19, %v920_v21 }
 0x6d3   :  { %v713_v26 = vsel %vm346_vm0, %v4645_v52, %v4101_v24  ;;  %v712_v27 = vsel %vm346_vm0, %v4641_v49, %v4100_v25  ;;  %v4277_v49 = vld [vmem:[%s5310_s0 + $0x8] sm:$0xff]  ;;  %v3462_v24 = vcombine.high %v918_v19, %v920_v21  ;;  %v921_v25 = vld [vmem:[%s5312_s2 + $0xd0] sm:$0xff] }
 0x6d4   :  { %v715_v55 = vpack.c.bf16 %v713_v26, %v712_v27  ;;  %v923_v26 = vld [vmem:[%s5312_s2 + $0xf0] sm:$0xff]  ;;  %v922_v27 = vld [vmem:[%s5312_s2 + $0xd8] sm:$0xff] }
 0x6d6   :  { %3979 = vmatmul.mubr.bf16.vlgmr.msra.gmra.mrb[16].mxu0 %v715_v55  ;;  %v3464_v55 = vcombine.high %v921_v25, %v923_v26 }
 0x6d7   :  { %1208 = vmatprep.mubr.bf16.mxu0 %v4360_v0 }
 0x7a9   :  { %v3980_v50 = vpop.f32.mrb[16].mxu0 }
 0x7aa   :  { %v821_v3 = vpop.f32.mrb[17].mxu0  ;;  %v830_v33 = vadd.f32 %v3980_v50, %v3440_v28  ;;  %v3463_v50 = vcombine.low %v921_v25, %v923_v26  ;;  %v3449_v25 = vld [vmem:[#allocation5 + $0x4] ss:$0 sm:$0xff] }
 0x7ab   :  { %v822_v31 = vadd.f32 %v3440_v28, %v821_v3  ;;  %v3981_v53 = vpop.f32.mrb[18].mxu0 }
 0x7ac   :  { %v824_v63 = vpop.f32.mrb[19].mxu0  ;;  %v833_v38 = vadd.f32 %v3981_v53, %v3440_v28  ;;  %v838_v2 = vadd.f32 %v830_v33, %v4483_v36  ;;  %v912_v36 = vld [vmem:[%s5312_s2 + $0x38] sm:$0xff]  ;;  %v925_v53 = vld [vmem:[%s5312_s2 + $0x110] sm:$0xff] }
 0x7ad   :  { %v825_v54 = vadd.f32 %v3440_v28, %v824_v63  ;;  %v836_v52 = vadd.f32 %v4276_v1, %v822_v31  ;;  %v3453_v57 = vcombine.low %v910_v46, %v912_v36  ;;  %v3454_v58 = vcombine.high %v910_v46, %v912_v36  ;;  %v924_v28 = vld [vmem:[%s5312_s2 + $0xf8] sm:$0xff]  ;;  %v927_v63 = vld [vmem:[%s5312_s2 + $0x130] sm:$0xff] }
 0x7ae   :  { %v839_v39 = vadd.f32 %v833_v38, %v4488_v37  ;;  %v913_v37 = vld [vmem:[%s5312_s2 + $0x50] sm:$0xff]  ;;  %v3465_v3 = vcombine.low %v922_v27, %v924_v28  ;;  %v3466_v31 = vcombine.high %v922_v27, %v924_v28  ;;  %v926_v33 = vld [vmem:[%s5312_s2 + $0x118] sm:$0xff] }
 0x7af   :  { %842 = vadd.xlane.f32.xlu0 %v836_v52  ;;  %v837_v34 = vadd.f32 %v4277_v49, %v825_v54  ;;  %v3456_v59 = vcombine.high %v913_v37, %v915_v56  ;;  %1176 = vmatprep.subr.bf16.mxu0 %v3454_v58  ;;  %v3455_v42 = vcombine.low %v913_v37, %v915_v56  ;;  %v928_v1 = vld [vmem:[%s5312_s2 + $0x138] sm:$0xff]  ;;  %v929_v38 = vld [vmem:[%s5312_s2 + $0x150] sm:$0xff] }
 0x7b0   :  { %1177 = vmatpush1.bf16.msra.mxu0 %v3453_v57  ;;  %v3468_v54 = vcombine.high %v925_v53, %v927_v63  ;;  %v3469_v49 = vcombine.low %v926_v33, %v928_v1  ;;  %v933_v36 = vld [vmem:[%s5312_s2 + $0x190] sm:$0xff]  ;;  %v934_v56 = vld [vmem:[%s5312_s2 + $0x198] sm:$0xff] }
 0x7b1   :  { %844 = vadd.xlane.f32.xlu1 %v837_v34  ;;  %1125 = vmatprep.subr.bf16.mxu1 %v3456_v59  ;;  %v935_v37 = vld [vmem:[%s5312_s2 + $0x1b0] sm:$0xff]  ;;  %v936_v58 = vld [vmem:[%s5312_s2 + $0x1b8] sm:$0xff] }
 0x7b2   :  { %1178 = vmatprep.subr.bf16.mxu0 %v3458_v62  ;;  %1126 = vmatpush1.bf16.msra.mxu1 %v3455_v42  ;;  %v3476_v57 = vcombine.high %v933_v36, %v935_v37  ;;  %v3475_v59 = vcombine.low %v933_v36, %v935_v37  ;;  %v3477_v60 = vcombine.low %v934_v56, %v936_v58  ;;  %v937_v62 = vld [vmem:[%s5312_s2 + $0x1d0] sm:$0xff]  ;;  %v4124_v37 = vld [vmem:[#allocation2 + $0x58] sm:$0xff]  }
 0x7b3   :  { %846 = vadd.xlane.f32.xlu0 %v838_v2  ;;  %1127 = vmatprep.subr.bf16.mxu1 %v3460_v20  ;;  %v3478_v61 = vcombine.high %v934_v56, %v936_v58  ;;  %v939_v42 = vld [vmem:[%s5312_s2 + $0x1f0] sm:$0xff]  ;;  %v4125_v56 = vld [vmem:[#allocation2 + $0xd8] sm:$0xff]  }
 0x7b4   :  { %1179 = vmatpush1.bf16.msra.mxu0 %v3457_v4  ;;  %v938_v4 = vld [vmem:[%s5312_s2 + $0x1d8] sm:$0xff]  ;;  %v4123_v36 = vld [vmem:[#allocation2 + $0x90] sm:$0xff]  }
 0x7b5   :  { %1180 = vmatprep.subr.bf16.mxu0 %v3462_v24  ;;  %v4127_v58 = vld [vmem:[#allocation2 + $0x98] sm:$0xff]  }
 0x7b6   :  { %1128 = vmatpush1.bf16.msra.mxu1 %v3459_v22 }
 0x7b7   :  { %848 = vadd.xlane.f32.xlu0 %v839_v39  ;;  %1129 = vmatprep.subr.bf16.mxu1 %v3464_v55 }
 0x7b8   :  { %1181 = vmatpush1.bf16.msra.mxu0 %v3461_v23 }
 0x7b9   :  { %1182 = vmatprep.subr.bf16.mxu0 %v3466_v31 }
 0x7ba   :  { %1130 = vmatpush1.bf16.msra.mxu1 %v3463_v50 }
 0x7bb   :  { %1131 = vmatprep.subr.bf16.mxu1 %v3468_v54 }
 0x7bc   :  { %1183 = vmatpush1.bf16.msra.mxu0 %v3465_v3  ;;  %v3450_v3 = vld [vmem:[#allocation5 + $0x5] ss:$0 sm:$0xff] }
 0x83c   :  { %v843_v5 = vpop.xlane.xlu0 %842 }
 0x83d   :  { %v851_v6 = vmul.f32 0.0078125, %v843_v5  ;;  %v3480_v5 = vcombine.high %v937_v62, %v939_v42 }
 0x83e   :  { %v845_v7 = vpop.xlane.xlu1 %844 }
 0x83f   :  { %v4758_v30 = vsub.f32 %v836_v52, %v851_v6  ;;  %v852_v8 = vmul.f32 0.0078125, %v845_v7  ;;  %v3467_v52 = vcombine.low %v925_v53, %v927_v63  ;;  %v940_v6 = vld [vmem:[%s5312_s2 + $0x1f8] sm:$0xff]  ;;  %v3479_v7 = vcombine.low %v937_v62, %v939_v42  ;;  %v4131_v62 = vld [vmem:[#allocation2 + $0xa0] sm:$0xff]   ;;  %v4132_v42 = vld [vmem:[#allocation2 + $0x68] sm:$0xff]  }
 0x840   :  { %v847_v9 = vpop.xlane.xlu0 %846 }
 0x841   :  { %v4760_v29 = vsub.f32 %v837_v34, %v852_v8  ;;  %v853_v10 = vmul.f32 0.0078125, %v847_v9  ;;  %v859_v35 = vmul.f32 %v4758_v30, %v4758_v30  ;;  %v3470_v34 = vcombine.high %v926_v33, %v928_v1  ;;  %1132 = vmatpush1.bf16.msra.mxu1 %v3467_v52 }
 0x842   :  { %v3482_v8 = vcombine.high %v938_v4, %v940_v6  ;;  %v3481_v9 = vcombine.low %v938_v4, %v940_v6  ;;  %v4133_v4 = vld [vmem:[#allocation2 + $0xe8] sm:$0xff]  }
 0x843   :  { %v4764_v11 = vsub.f32 %v838_v2, %v853_v10  ;;  %863 = vadd.xlane.f32.xlu0 %v859_v35  ;;  %v860_v12 = vmul.f32 %v4760_v29, %v4760_v29  ;;  %1184 = vmatprep.subr.bf16.mxu0 %v3470_v34  ;;  %v931_v2 = vld [vmem:[%s5312_s2 + $0x170] sm:$0xff]  ;;  %v4112_v10 = vld [vmem:[#allocation2 + $0x40] sm:$0xff]   ;;  %v4116_v34 = vld [vmem:[#allocation2 + $0x48] sm:$0xff]  }
 0x844   :  { %v849_v13 = vpop.xlane.xlu0 %848  ;;  %1185 = vmatpush1.bf16.msra.mxu0 %v3469_v49  ;;  %v3472_v44 = vcombine.high %v929_v38, %v931_v2  ;;  %v3471_v46 = vcombine.low %v929_v38, %v931_v2  ;;  %v4113_v35 = vld [vmem:[#allocation2 + $0xc0] sm:$0xff]   ;;  %v4135_v6 = vld [vmem:[#allocation2 + $0xa8] sm:$0xff]  }
 0x845   :  { %v854_v14 = vmul.f32 0.0078125, %v849_v13  ;;  %865 = vadd.xlane.f32.xlu1 %v860_v12  ;;  %v861_v15 = vmul.f32 %v4764_v11, %v4764_v11  ;;  %v4115_v49 = vld [vmem:[#allocation2 + $0x80] sm:$0xff]  }
 0x846   :  { %1133 = vmatprep.subr.bf16.mxu1 %v3472_v44  ;;  %v4119_v44 = vld [vmem:[#allocation2 + $0x88] sm:$0xff]  }
 0x847   :  { %v4770_v32 = vsub.f32 %v839_v39, %v854_v14  ;;  %867 = vadd.xlane.f32.xlu0 %v861_v15  ;;  %v930_v39 = vld [vmem:[%s5312_s2 + $0x158] sm:$0xff]  ;;  %1134 = vmatpush1.bf16.msra.mxu1 %v3471_v46 }
 0x848   :  { %v3473_v47 = vcombine.low %v930_v39, %v932_v45  ;;  %v3474_v48 = vcombine.high %v930_v39, %v932_v45  ;;  %1135 = vmatprep.subr.bf16.mxu1 %v3476_v57  ;;  %v4121_v45 = vld [vmem:[#allocation2 + $0xd0] sm:$0xff]   ;;  %v4126_v57 = vld [vmem:[#allocation2 + $0x18] sm:$0xff]  }
 0x849   :  { %v862_v16 = vmul.f32 %v4770_v32, %v4770_v32 }
 0x84a   :  { %1186 = vmatprep.subr.bf16.mxu0 %v3474_v48  ;;  %v4122_v48 = vld [vmem:[#allocation2 + $0x10] sm:$0xff]  }
 0x84b   :  { %869 = vadd.xlane.f32.xlu1 %v862_v16  ;;  %1187 = vmatpush1.bf16.msra.mxu0 %v3473_v47 }
 0x84c   :  { %1188 = vmatprep.subr.bf16.mxu0 %v3478_v61  ;;  %1136 = vmatpush1.bf16.msra.mxu1 %v3475_v59  ;;  %v4128_v59 = vld [vmem:[#allocation2 + $0x60] sm:$0xff]  }
 0x84d   :  { %1137 = vmatprep.subr.bf16.mxu1 %v3480_v5  ;;  %v4130_v61 = vld [vmem:[#allocation2 + $0x20] sm:$0xff]   ;;  %v4134_v5 = vld [vmem:[#allocation2 + $0x28] sm:$0xff]  }
 0x84f   :  { %1189 = vmatpush1.bf16.msra.mxu0 %v3477_v60  ;;  %v4129_v60 = vld [vmem:[#allocation2 + $0xe0] sm:$0xff]  }
 0x850   :  { %1190 = vmatprep.subr.bf16.mxu0 %v3482_v8  ;;  %1138 = vmatpush1.bf16.msra.mxu1 %v3479_v7  ;;  %v4136_v7 = vld [vmem:[#allocation2 + $0x70] sm:$0xff]  }
 0x851   :  { %3753 = vmatprep.subr.bf16.mxu1 %v4112_v10  ;;  %v4137_v8 = vld [vmem:[#allocation2 + $0xf0] sm:$0xff]  }
 0x852   :  { %v4139_v10 = vld [vmem:[#allocation2 + $0xb0] sm:$0xff]  }
 0x853   :  { %1191 = vmatpush1.bf16.msra.mxu0 %v3481_v9  ;;  %v4138_v9 = vld [vmem:[#allocation2 + $0x30] sm:$0xff]  }
 0x854   :  { %3781 = vmatprep.subr.bf16.mxu0 %v4113_v35  ;;  %v4140_v35 = vld [vmem:[#allocation2 + $0x78] sm:$0xff]  }
 0x8d0   :  { %v864_v12 = vpop.xlane.xlu0 %863 }
 0x8d1   :  { %v871_v13 = vmul.f32 0.0078125, %v864_v12  ;;  %v4141_v12 = vld [vmem:[#allocation2 + $0xf8] sm:$0xff]  }
 0x8d2   :  { %v866_v14 = vpop.xlane.xlu1 %865 }
 0x8d3   :  { %v875_v15 = vadd.f32 1e-06, %v871_v13  ;;  %v872_v16 = vmul.f32 0.0078125, %v866_v14  ;;  %v4142_v13 = vld [vmem:[#allocation2 + $0x38] sm:$0xff]  }
 0x8d4   :  { %v868_v17 = vpop.xlane.xlu0 %867  ;;  %v4143_v14 = vld [vmem:[#allocation2 + $0xb8] sm:$0xff]  }
 0x8d5   :  { %4216 = vrsqrt.f32 %v875_v15  ;;  %v876_v18 = vadd.f32 1e-06, %v872_v16  ;;  %v873_v19 = vmul.f32 0.0078125, %v868_v17  ;;  %v941_v15 = vld [vmem:[#allocation5 + $0x6] sm:$0xf]  ;;  %v957_v16 = vsub.s32 3, %v4496_v40 }
 0x8d6   :  { %v946_v17 = vrot.slane %v941_v15, %v4499_v41 }
 0x8d7   :  { %4218 = vrsqrt.f32 %v876_v18  ;;  %v877_v20 = vadd.f32 1e-06, %v873_v19  ;;  %v954_v18 = vrot.slane %v941_v15, %v4608_v51  ;;  %v950_v19 = vrot.slane %v941_v15, %v4504_v43 }
 0x8d8   :  { %v870_v21 = vpop.xlane.xlu1 %869 }
 0x8d9   :  { %4220 = vrsqrt.f32 %v877_v20  ;;  %v874_v22 = vmul.f32 0.0078125, %v870_v21  ;;  %v958_v20 = vrot.slane %v941_v15, %v957_v16 }
 0x8db   :  { %v878_v23 = vadd.f32 1e-06, %v874_v22 }
 0x8dd   :  { %4222 = vrsqrt.f32 %v878_v23 }
 0x8df   :  { %v4217_v24 = vpop.eup %4216 }
 0x8e0   :  { %v883_v26 = vmul.f32 %v4217_v24, %v4758_v30  ;;  %v4114_v30 = vld [vmem:[#allocation2] sm:$0xff]  }
 0x8e1   :  { %v4219_v27 = vpop.eup %4218 }
 0x8e2   :  { %v884_v55 = vmul.f32 %v4219_v27, %v4760_v29  ;;  %v893_v28 = vmul.f32 %v3449_v25, %v883_v26  ;;  %v4117_v29 = vld [vmem:[#allocation2 + $0xc8] sm:$0xff]  }
 0x8e3   :  { %v4221_v50 = vpop.eup %4220 }
 0x8e4   :  { %v894_v31 = vmul.f32 %v3449_v25, %v884_v55  ;;  %v4848_v53 = vadd.f32 %v3450_v3, %v893_v28  ;;  %v885_v33 = vmul.f32 %v4221_v50, %v4764_v11  ;;  %v4118_v11 = vld [vmem:[#allocation2 + $0x8] sm:$0xff]  }
 0x8e6   :  { %v4850_v63 = vadd.f32 %v3450_v3, %v894_v31  ;;  %v895_v38 = vmul.f32 %v3449_v25, %v885_v33 }
 0x8e7   :  { %v4223_v54 = vpop.eup %4222 }
 0x8e8   :  { %v907_v1 = vpack.c.bf16 %v4850_v63, %v4848_v53  ;;  %v886_v52 = vmul.f32 %v4223_v54, %v4770_v32  ;;  %v4120_v32 = vld [vmem:[#allocation2 + $0x50] sm:$0xff]   ;;  %v4860_v46 = vadd.f32 %v3450_v3, %v895_v38 }
 0x8ea   :  { %1156 = vmatmul.mubr.bf16.vlgmr.msra.gmra.mrb[12].mxu1 %v907_v1  ;;  %1209 = vmatmul.mubr.bf16.vlgmr.msra.gmra.mrb[20].mxu0 %v907_v1  ;;  %v896_v2 = vmul.f32 %v3449_v25, %v886_v52 }
 0x8eb   :  { %1165 = vmatprep.mubr.bf16.mxu1 %v4360_v0  ;;  %1218 = vmatprep.mubr.bf16.mxu0 %v4360_v0 }
 0x8ec   :  { %v4858_v39 = vadd.f32 %v3450_v3, %v896_v2  ;;  %3754 = vmatpush3.bf16.msra.mxu1 %v4114_v30  ;;  %3782 = vmatpush3.bf16.msra.mxu0 %v4115_v49 }
 0x8ed   :  { %3755 = vmatprep.subr.bf16.mxu1 %v4116_v34  ;;  %3783 = vmatprep.subr.bf16.mxu0 %v4117_v29 }
 0x8ee   :  { %v908_v47 = vpack.c.bf16 %v4858_v39, %v4860_v46 }
 0x8f0   :  { %3756 = vmatpush3.bf16.msra.mxu1 %v4118_v11  ;;  %3784 = vmatpush3.bf16.msra.mxu0 %v4119_v44 }
 0x8f1   :  { %3757 = vmatprep.subr.bf16.mxu1 %v4120_v32  ;;  %3785 = vmatprep.subr.bf16.mxu0 %v4121_v45 }
 0x8f2   :  { %1166 = vmatmul.mubr.bf16.gmra.mrb[16].mxu1 %v908_v47  ;;  %1219 = vmatmul.mubr.bf16.gmra.mrb[24].mxu0 %v908_v47 }
 0x8f4   :  { %3758 = vmatpush3.bf16.msra.mxu1 %v4122_v48  ;;  %3786 = vmatpush3.bf16.msra.mxu0 %v4123_v36 }
 0x8f5   :  { %3759 = vmatprep.subr.bf16.mxu1 %v4124_v37  ;;  %3787 = vmatprep.subr.bf16.mxu0 %v4125_v56 }
 0x8f8   :  { %3760 = vmatpush3.bf16.msra.mxu1 %v4126_v57  ;;  %3788 = vmatpush3.bf16.msra.mxu0 %v4127_v58 }
 0x8f9   :  { %3761 = vmatprep.subr.bf16.mxu1 %v4128_v59  ;;  %3789 = vmatprep.subr.bf16.mxu0 %v4129_v60 }
 0x8fc   :  { %3762 = vmatpush3.bf16.msra.mxu1 %v4130_v61  ;;  %3790 = vmatpush3.bf16.msra.mxu0 %v4131_v62 }
 0x8fd   :  { %3763 = vmatprep.subr.bf16.mxu1 %v4132_v42  ;;  %3791 = vmatprep.subr.bf16.mxu0 %v4133_v4 }
 0x900   :  { %3764 = vmatpush3.bf16.msra.mxu1 %v4134_v5  ;;  %3792 = vmatpush3.bf16.msra.mxu0 %v4135_v6 }
 0x901   :  { %3765 = vmatprep.subr.bf16.mxu1 %v4136_v7  ;;  %3793 = vmatprep.subr.bf16.mxu0 %v4137_v8 }
 0x904   :  { %3766 = vmatpush3.bf16.msra.mxu1 %v4138_v9  ;;  %3794 = vmatpush3.bf16.msra.mxu0 %v4139_v10 }
 0x905   :  { %3767 = vmatprep.subr.bf16.mxu1 %v4140_v35  ;;  %3795 = vmatprep.subr.bf16.mxu0 %v4141_v12 }
 0x908   :  { %3768 = vmatpush3.bf16.msra.mxu1 %v4142_v13  ;;  %3796 = vmatpush3.bf16.msra.mxu0 %v4143_v14 }
 0x9bd   :  { %v1157_v21 = vpop.f32.mrb[12].mxu1  ;;  %v1210_v22 = vpop.f32.mrb[20].mxu0 }
 0x9be   :  { %v1158_v23 = vadd.f32 %v1157_v21, %v946_v17  ;;  %v1211_v24 = vadd.f32 %v1210_v22, %v954_v18  ;;  %v1159_v25 = vpop.f32.mrb[13].mxu1  ;;  %v1212_v26 = vpop.f32.mrb[21].mxu0 }
 0x9bf   :  { %v1160_v27 = vadd.f32 %v1159_v25, %v950_v19  ;;  %v1213_v55 = vadd.f32 %v1212_v26, %v958_v20  ;;  %v1161_v28 = vpop.f32.mrb[14].mxu1  ;;  %v1214_v50 = vpop.f32.mrb[22].mxu0 }
 0x9c0   :  { %v1162_v3 = vadd.f32 %v1161_v28, %v946_v17  ;;  %v1215_v31 = vadd.f32 %v1214_v50, %v954_v18  ;;  %v1163_v33 = vpop.f32.mrb[15].mxu1  ;;  %v1216_v54 = vpop.f32.mrb[23].mxu0  ;;  %v1229_v30 = vmax.f32 %v1158_v23, 0.0  ;;  %v1231_v49 = vmax.f32 %v1211_v24, 0.0 }
 0x9c1   :  { %v1164_v1 = vadd.f32 %v1163_v33, %v950_v19  ;;  %v1217_v52 = vadd.f32 %v1216_v54, %v958_v20  ;;  %v1230_v38 = vmax.f32 %v1160_v27, 0.0  ;;  %v1232_v2 = vmax.f32 %v1213_v55, 0.0 }
 0x9c2   :  { %v1233_v34 = vmax.f32 %v1162_v3, 0.0  ;;  %v1235_v29 = vmax.f32 %v1215_v31, 0.0 }
 0x9c3   :  { %v1234_v11 = vmax.f32 %v1164_v1, 0.0  ;;  %v1236_v44 = vmax.f32 %v1217_v52, 0.0 }
 0x9c4   :  { %v1245_v32 = vpack.c.bf16 %v1233_v34, %v1229_v30  ;;  %v1247_v45 = vpack.c.bf16 %v1235_v29, %v1231_v49 }
 0x9c5   :  { %v1246_v47 = vpack.c.bf16 %v1234_v11, %v1230_v38  ;;  %v1248_v48 = vpack.c.bf16 %v1236_v44, %v1232_v2  ;;  %v1167_v36 = vpop.f32.mrb[16].mxu1  ;;  %v1220_v37 = vpop.f32.mrb[24].mxu0 }
 0x9c6   :  { %v1168_v56 = vadd.f32 %v1167_v36, %v946_v17  ;;  %v1221_v57 = vadd.f32 %v1220_v37, %v954_v18  ;;  %v1169_v58 = vpop.f32.mrb[17].mxu1  ;;  %v1222_v59 = vpop.f32.mrb[25].mxu0 }
 0x9c7   :  { %v1170_v60 = vadd.f32 %v1169_v58, %v950_v19  ;;  %v1223_v61 = vadd.f32 %v1222_v59, %v958_v20  ;;  %v1171_v62 = vpop.f32.mrb[18].mxu1  ;;  %v1224_v42 = vpop.f32.mrb[26].mxu0  ;;  %1548 = vmatprep.mubr.bf16.mxu1 %v1246_v47  ;;  %1597 = vmatprep.mubr.bf16.mxu0 %v1248_v48 }
 0x9c8   :  { %v1172_v4 = vadd.f32 %v1171_v62, %v946_v17  ;;  %v1225_v5 = vadd.f32 %v1224_v42, %v954_v18  ;;  %v1173_v6 = vpop.f32.mrb[19].mxu1  ;;  %v1226_v7 = vpop.f32.mrb[27].mxu0  ;;  %1549 = vmatmul.mubr.bf16.vlgmr.msra.gmra.mrb[20].mxu1 %v1245_v32  ;;  %1598 = vmatmul.mubr.bf16.vlgmr.msra.gmra.mrb[28].mxu0 %v1247_v45  ;;  %v1237_v10 = vmax.f32 %v1168_v56, 0.0  ;;  %v1239_v35 = vmax.f32 %v1221_v57, 0.0 }
 0x9c9   :  { %v1174_v8 = vadd.f32 %v1173_v6, %v950_v19  ;;  %v1227_v9 = vadd.f32 %v1226_v7, %v958_v20  ;;  %v1238_v14 = vmax.f32 %v1170_v60, 0.0  ;;  %v1240_v15 = vmax.f32 %v1223_v61, 0.0  ;;  %v3483_v19 = vld [vmem:[#allocation5 + $0xa] ss:$0 sm:$0xff] }
 0x9ca   :  { %v1241_v12 = vmax.f32 %v1172_v4, 0.0  ;;  %v1243_v13 = vmax.f32 %v1225_v5, 0.0  ;;  %v3518_v4 = vld [vmem:[%s5312_s2 + $0x200] sm:$0xff] }
 0x9cb   :  { %v1242_v21 = vmax.f32 %v1174_v8, 0.0  ;;  %v1244_v22 = vmax.f32 %v1227_v9, 0.0  ;;  %v3522_v5 = vld [vmem:[%s5312_s2 + $0x240] sm:$0xff] }
 0x9cc   :  { %v1249_v23 = vpack.c.bf16 %v1241_v12, %v1237_v10  ;;  %v1251_v24 = vpack.c.bf16 %v1243_v13, %v1239_v35 }
 0x9cd   :  { %v1250_v25 = vpack.c.bf16 %v1242_v21, %v1238_v14  ;;  %v1252_v26 = vpack.c.bf16 %v1244_v22, %v1240_v15 }
 0x9cf   :  { %1556 = vmatprep.mubr.bf16.mxu1 %v1250_v25  ;;  %1605 = vmatprep.mubr.bf16.mxu0 %v1252_v26 }
 0x9d0   :  { %1557 = vmatmul.mubr.bf16.gmra.mrb[24].mxu1 %v1249_v23  ;;  %1606 = vmatmul.mubr.bf16.gmra.mrb[32].mxu0 %v1251_v24 }
 0x9d1   :  { %1897 = vmatprep.mubr.bf16.mxu1 %v4360_v0 }
 0xa9b   :  { %v3769_v17 = vpop.f32.mrb[20].mxu1  ;;  %v3797_v18 = vpop.f32.mrb[28].mxu0 }
 0xa9c   :  { %v3770_v20 = vpop.f32.mrb[21].mxu1  ;;  %v3798_v27 = vpop.f32.mrb[29].mxu0 }
 0xa9d   :  { %v3771_v55 = vadd.f32 %v3770_v20, %v3769_v17  ;;  %v3799_v28 = vadd.f32 %v3798_v27, %v3797_v18  ;;  %v3772_v50 = vpop.f32.mrb[22].mxu1  ;;  %v3800_v3 = vpop.f32.mrb[30].mxu0  ;;  %v3526_v20 = vld [vmem:[%s5312_s2 + $0x280] sm:$0xff] }
 0xa9e   :  { %v3773_v31 = vpop.f32.mrb[23].mxu1  ;;  %v3801_v33 = vpop.f32.mrb[31].mxu0  ;;  %v3528_v27 = vld [vmem:[%s5312_s2 + $0x2a0] sm:$0xff] }
 0xa9f   :  { %v1551_v54 = vadd.f32 %v3771_v55, %v3483_v19  ;;  %v3774_v1 = vadd.f32 %v3773_v31, %v3772_v50  ;;  %v3802_v52 = vadd.f32 %v3801_v33, %v3800_v3  ;;  %v3519_v55 = vld [vmem:[%s5312_s2 + $0x208] sm:$0xf]  ;;  %v3556_v3 = vcombine.low %v3526_v20, %v3528_v27  ;;  %v3530_v33 = vld [vmem:[%s5312_s2 + $0x2c0] sm:$0xff] }
 0xaa0   :  { %v3521_v50 = vld [vmem:[%s5312_s2 + $0x228] sm:$0xf] }
 0xaa1   :  { %v1600_v30 = vadd.f32 %v3799_v28, %v1551_v54  ;;  %v1554_v49 = vadd.f32 %v3774_v1, %v3483_v19  ;;  %v3557_v28 = vcombine.high %v3526_v20, %v3528_v27  ;;  %v3552_v31 = vcombine.low %v3519_v55, %v3521_v50  ;;  %v3532_v54 = vld [vmem:[%s5312_s2 + $0x2e0] sm:$0xff]  ;;  %v3523_v1 = vld [vmem:[%s5312_s2 + $0x248] sm:$0xf] }
 0xaa3   :  { %v1603_v34 = vadd.f32 %v3802_v52, %v1554_v49  ;;  %v3775_v29 = vpop.f32.mrb[24].mxu1  ;;  %v3803_v38 = vpop.f32.mrb[32].mxu0  ;;  %v1614_v2 = vadd.f32 %v1600_v30, %v4848_v53  ;;  %3982 = vmatprep.subr.bf16.mxu0 %v3552_v31  ;;  %v3560_v52 = vcombine.high %v3530_v33, %v3532_v54  ;;  %v3525_v30 = vld [vmem:[%s5312_s2 + $0x268] sm:$0xf]  ;;  %v3559_v49 = vcombine.low %v3530_v33, %v3532_v54 }
 0xaa4   :  { %v3776_v11 = vpop.f32.mrb[25].mxu1  ;;  %v3804_v44 = vpop.f32.mrb[33].mxu0  ;;  %3983 = vmatpush3.bf16.msra.mxu0 %v3552_v31  ;;  %v3516_v33 = vld [vmem:[#allocation5 + $0xb] ss:$0 sm:$0xff] }
 0xaa5   :  { %v3777_v32 = vadd.f32 %v3776_v11, %v3775_v29  ;;  %v3805_v45 = vadd.f32 %v3804_v44, %v3803_v38  ;;  %v3806_v47 = vpop.f32.mrb[34].mxu0  ;;  %1620 = vadd.xlane.f32.xlu0 %v1614_v2  ;;  %v3778_v48 = vpop.f32.mrb[26].mxu1  ;;  %v1615_v36 = vadd.f32 %v1603_v34, %v4850_v63  ;;  %v3520_v63 = vld [vmem:[%s5312_s2 + $0x220] sm:$0xff]  ;;  %v3555_v34 = vcombine.low %v3523_v1, %v3525_v30  ;;  %v3529_v44 = vld [vmem:[%s5312_s2 + $0x2a8] sm:$0xf] }
 0xaa6   :  { %v3779_v37 = vpop.f32.mrb[27].mxu1  ;;  %v3807_v56 = vpop.f32.mrb[35].mxu0  ;;  %v3550_v6 = vcombine.low %v3518_v4, %v3520_v63  ;;  %v3551_v7 = vcombine.high %v3518_v4, %v3520_v63  ;;  %v3534_v29 = vld [vmem:[%s5312_s2 + $0x300] sm:$0xff] }
 0xaa7   :  { %v1559_v57 = vadd.f32 %v3777_v32, %v3483_v19  ;;  %v3780_v58 = vadd.f32 %v3779_v37, %v3778_v48  ;;  %v3808_v59 = vadd.f32 %v3807_v56, %v3806_v47  ;;  %1622 = vadd.xlane.f32.xlu1 %v1615_v36  ;;  %3984 = vmatprep.subr.bf16.mxu0 %v3555_v34  ;;  %v3536_v38 = vld [vmem:[%s5312_s2 + $0x320] sm:$0xff]  ;;  %v3533_v56 = vld [vmem:[%s5312_s2 + $0x2e8] sm:$0xf] }
 0xaa8   :  { %1865 = vmatprep.subr.bf16.mxu1 %v3551_v7  ;;  %3985 = vmatpush3.bf16.msra.mxu0 %v3555_v34  ;;  %v3563_v11 = vcombine.high %v3534_v29, %v3536_v38  ;;  %v3562_v32 = vcombine.low %v3534_v29, %v3536_v38  ;;  %v3538_v47 = vld [vmem:[%s5312_s2 + $0x340] sm:$0xff] }
 0xaa9   :  { %v1608_v60 = vadd.f32 %v3805_v45, %v1559_v57  ;;  %v1562_v61 = vadd.f32 %v3780_v58, %v3483_v19  ;;  %1866 = vmatpush1.bf16.msra.mxu1 %v3550_v6  ;;  %v3540_v48 = vld [vmem:[%s5312_s2 + $0x360] sm:$0xff]  ;;  %v3539_v6 = vld [vmem:[%s5312_s2 + $0x348] sm:$0xf] }
 0xaaa   :  { %v3566_v37 = vcombine.high %v3538_v47, %v3540_v48  ;;  %v3565_v57 = vcombine.low %v3538_v47, %v3540_v48  ;;  %v3546_v63 = vld [vmem:[%s5312_s2 + $0x3c0] sm:$0xff] }
 0xaab   :  { %v1611_v62 = vadd.f32 %v3808_v59, %v1562_v61  ;;  %v1616_v53 = vadd.f32 %v1608_v60, %v4860_v46  ;;  %v3524_v46 = vld [vmem:[%s5312_s2 + $0x260] sm:$0xff]  ;;  %v3535_v61 = vld [vmem:[%s5312_s2 + $0x308] sm:$0xf] }
 0xaac   :  { %v3553_v8 = vcombine.low %v3522_v5, %v3524_v46  ;;  %v3542_v59 = vld [vmem:[%s5312_s2 + $0x380] sm:$0xff] }
 0xaad   :  { %1624 = vadd.xlane.f32.xlu0 %v1616_v53  ;;  %v1617_v42 = vadd.f32 %v1611_v62, %v4858_v39  ;;  %v3554_v39 = vcombine.high %v3522_v5, %v3524_v46  ;;  %v3544_v60 = vld [vmem:[%s5312_s2 + $0x3a0] sm:$0xff] }
 0xaae   :  { %v3569_v62 = vcombine.high %v3542_v59, %v3544_v60  ;;  %v3548_v5 = vld [vmem:[%s5312_s2 + $0x3e0] sm:$0xff] }
 0xaaf   :  { %1626 = vadd.xlane.f32.xlu1 %v1617_v42  ;;  %1867 = vmatprep.subr.bf16.mxu1 %v3554_v39  ;;  %v3571_v7 = vcombine.low %v3546_v63, %v3548_v5  ;;  %v3572_v46 = vcombine.high %v3546_v63, %v3548_v5  ;;  %v3541_v39 = vld [vmem:[%s5312_s2 + $0x368] sm:$0xf] }
 0xab0   :  { %1868 = vmatpush1.bf16.msra.mxu1 %v3553_v8  ;;  %v3567_v8 = vcombine.low %v3539_v6, %v3541_v39 }
 0xab1   :  { %1869 = vmatprep.subr.bf16.mxu1 %v3557_v28 }
 0xab4   :  { %1870 = vmatpush1.bf16.msra.mxu1 %v3556_v3 }
 0xab5   :  { %1871 = vmatprep.subr.bf16.mxu1 %v3560_v52 }
 0xab8   :  { %1872 = vmatpush1.bf16.msra.mxu1 %v3559_v49  ;;  %v3517_v49 = vld [vmem:[#allocation5 + $0xc] ss:$0 sm:$0xff] }
 0xab9   :  { %1873 = vmatprep.subr.bf16.mxu1 %v3563_v11 }
 0xabc   :  { %1874 = vmatpush1.bf16.msra.mxu1 %v3562_v32 }
 0xabd   :  { %1875 = vmatprep.subr.bf16.mxu1 %v3566_v37  ;;  %v1720_v37 = vld [vmem:[#allocation5 + $0xd] sm:$0x7] }
 0xabe   :  { %v1733_v63 = vrot.slane %v1720_v37, %v4608_v51 }
 0xac0   :  { %1876 = vmatpush1.bf16.msra.mxu1 %v3565_v57  ;;  %v1729_v57 = vrot.slane %v1720_v37, %v4504_v43 }
 0xac1   :  { %1877 = vmatprep.subr.bf16.mxu1 %v3569_v62 }
 0xb32   :  { %v1621_v9 = vpop.xlane.xlu0 %1620 }
 0xb33   :  { %v1628_v10 = vmul.f32 0.0078125, %v1621_v9  ;;  %v3543_v9 = vld [vmem:[%s5312_s2 + $0x388] sm:$0xf] }
 0xb34   :  { %v1623_v35 = vpop.xlane.xlu1 %1622 }
 0xb35   :  { %v4887_v12 = vsub.f32 %v1614_v2, %v1628_v10  ;;  %v1629_v13 = vmul.f32 0.0078125, %v1623_v35  ;;  %v3527_v2 = vld [vmem:[%s5312_s2 + $0x288] sm:$0xf] }
 0xb36   :  { %v3558_v45 = vcombine.low %v3527_v2, %v3529_v44  ;;  %v3545_v10 = vld [vmem:[%s5312_s2 + $0x3a8] sm:$0xf] }
 0xb37   :  { %v4889_v14 = vsub.f32 %v1615_v36, %v1629_v13  ;;  %v1636_v15 = vmul.f32 %v4887_v12, %v4887_v12  ;;  %v3531_v36 = vld [vmem:[%s5312_s2 + $0x2c8] sm:$0xf]  ;;  %v3570_v35 = vcombine.low %v3543_v9, %v3545_v10 }
 0xb38   :  { %3986 = vmatprep.subr.bf16.mxu0 %v3558_v45  ;;  %v3561_v58 = vcombine.low %v3531_v36, %v3533_v56  ;;  %v3547_v13 = vld [vmem:[%s5312_s2 + $0x3c8] sm:$0xf] }
 0xb39   :  { %1640 = vadd.xlane.f32.xlu0 %v1636_v15  ;;  %v1637_v21 = vmul.f32 %v4889_v14, %v4889_v14  ;;  %3987 = vmatpush3.bf16.msra.mxu0 %v3558_v45  ;;  %v3549_v15 = vld [vmem:[%s5312_s2 + $0x3e8] sm:$0xf] }
 0xb3a   :  { %v1625_v22 = vpop.xlane.xlu0 %1624  ;;  %3988 = vmatprep.subr.bf16.mxu0 %v3561_v58 }
 0xb3b   :  { %v1630_v23 = vmul.f32 0.0078125, %v1625_v22  ;;  %1642 = vadd.xlane.f32.xlu1 %v1637_v21  ;;  %v3573_v21 = vcombine.low %v3547_v13, %v3549_v15 }
 0xb3c   :  { %v1627_v24 = vpop.xlane.xlu1 %1626 }
 0xb3d   :  { %v4895_v25 = vsub.f32 %v1616_v53, %v1630_v23  ;;  %v1631_v26 = vmul.f32 0.0078125, %v1627_v24  ;;  %3989 = vmatpush3.bf16.msra.mxu0 %v3561_v58  ;;  %v3537_v53 = vld [vmem:[%s5312_s2 + $0x328] sm:$0xf] }
 0xb3e   :  { %v3564_v4 = vcombine.low %v3535_v61, %v3537_v53 }
 0xb3f   :  { %v4897_v17 = vsub.f32 %v1617_v42, %v1631_v26  ;;  %v1638_v18 = vmul.f32 %v4895_v25, %v4895_v25  ;;  %v3568_v42 = vcombine.low %v3542_v59, %v3544_v60 }
 0xb40   :  { %3990 = vmatprep.subr.bf16.mxu0 %v3564_v4 }
 0xb41   :  { %1644 = vadd.xlane.f32.xlu0 %v1638_v18  ;;  %v1639_v19 = vmul.f32 %v4897_v17, %v4897_v17  ;;  %1878 = vmatpush1.bf16.msra.mxu1 %v3568_v42 }
 0xb42   :  { %3991 = vmatpush3.bf16.msra.mxu0 %v3564_v4  ;;  %1879 = vmatprep.subr.bf16.mxu1 %v3572_v46 }
 0xb43   :  { %1646 = vadd.xlane.f32.xlu1 %v1639_v19  ;;  %3992 = vmatprep.subr.bf16.mxu0 %v3567_v8 }
 0xb45   :  { %1880 = vmatpush1.bf16.msra.mxu1 %v3571_v7 }
 0xb46   :  { %3993 = vmatpush3.bf16.msra.mxu0 %v3567_v8 }
 0xb47   :  { %3994 = vmatprep.subr.bf16.mxu0 %v3570_v35 }
 0xb4a   :  { %3995 = vmatpush3.bf16.msra.mxu0 %v3570_v35 }
 0xb4b   :  { %3996 = vmatprep.subr.bf16.mxu0 %v3573_v21 }
 0xb4e   :  { %3997 = vmatpush3.bf16.msra.mxu0 %v3573_v21 }
 0xbc6   :  { %v1641_v22 = vpop.xlane.xlu0 %1640 }
 0xbc7   :  { %v1648_v23 = vmul.f32 0.0078125, %v1641_v22 }
 0xbc8   :  { %v1643_v24 = vpop.xlane.xlu1 %1642 }
 0xbc9   :  { %v1652_v26 = vadd.f32 1e-06, %v1648_v23  ;;  %v1649_v18 = vmul.f32 0.0078125, %v1643_v24 }
 0xbcb   :  { %4224 = vrsqrt.f32 %v1652_v26  ;;  %v1653_v19 = vadd.f32 1e-06, %v1649_v18 }
 0xbcd   :  { %4226 = vrsqrt.f32 %v1653_v19 }
 0xbce   :  { %v1645_v20 = vpop.xlane.xlu0 %1644 }
 0xbcf   :  { %v1650_v27 = vmul.f32 0.0078125, %v1645_v20 }
 0xbd0   :  { %v1647_v55 = vpop.xlane.xlu1 %1646 }
 0xbd1   :  { %v1654_v28 = vadd.f32 1e-06, %v1650_v27  ;;  %v1651_v50 = vmul.f32 0.0078125, %v1647_v55 }
 0xbd3   :  { %4228 = vrsqrt.f32 %v1654_v28  ;;  %v1655_v3 = vadd.f32 1e-06, %v1651_v50 }
 0xbd5   :  { %v4225_v31 = vpop.eup %4224  ;;  %4230 = vrsqrt.f32 %v1655_v3 }
 0xbd6   :  { %v1660_v54 = vmul.f32 %v4225_v31, %v4887_v12  ;;  %v5031_v31 = vld [vmem:[%s5311_s1] sm:$0xff] }
 0xbd7   :  { %v4227_v1 = vpop.eup %4226 }
 0xbd8   :  { %v1670_v52 = vmul.f32 %v3516_v33, %v1660_v54  ;;  %v1661_v30 = vmul.f32 %v4227_v1, %v4889_v14 }
 0xbda   :  { %v1671_v34 = vmul.f32 %v3516_v33, %v1661_v30  ;;  %v4989_v29 = vadd.f32 %v3517_v49, %v1670_v52  ;;  %v5037_v52 = vld [vmem:[%s5311_s1 + $0x10] sm:$0xff] }
 0xbdc   :  { %v4991_v38 = vadd.f32 %v3517_v49, %v1671_v34 }
 0xbdd   :  { %v4229_v2 = vpop.eup %4228 }
 0xbde   :  { %v1684_v11 = vpack.c.bf16 %v4991_v38, %v4989_v29  ;;  %v1662_v44 = vmul.f32 %v4229_v2, %v4895_v25  ;;  %v1725_v25 = vrot.slane %v1720_v37, %v4499_v41 }
 0xbdf   :  { %v4231_v32 = vpop.eup %4230 }
 0xbe0   :  { %1898 = vmatmul.mubr.bf16.vlgmr.msra.gmra.mrb[28].mxu1 %v1684_v11  ;;  %3998 = vmatprep.mubr.bf16.mxu0 %v1684_v11  ;;  %v1663_v12 = vmul.f32 %v4231_v32, %v4897_v17  ;;  %v1672_v45 = vmul.f32 %v3516_v33, %v1662_v44  ;;  %v5050_v11 = vld [vmem:[%s5311_s1 + $0x18] sm:$0xff] }
 0xbe1   :  { %1907 = vmatprep.mubr.bf16.mxu1 %v4360_v0 }
 0xbe2   :  { %v1673_v14 = vmul.f32 %v3516_v33, %v1663_v12  ;;  %v4998_v47 = vadd.f32 %v3517_v49, %v1672_v45 }
 0xbe4   :  { %v5000_v48 = vadd.f32 %v3517_v49, %v1673_v14  ;;  %v5043_v49 = vld [vmem:[%s5311_s1 + $0x8] sm:$0xff] }
 0xbe6   :  { %v1685_v36 = vpack.c.bf16 %v5000_v48, %v4998_v47 }
 0xbe8   :  { %1908 = vmatmul.mubr.bf16.gmra.mrb[32].mxu1 %v1685_v36  ;;  %3999 = vmatmul.mubr.bf16.vlgmr.msra.gmra.mrb[36].mxu0 %v1685_v36 }
 0xcb3   :  { %v1899_v56 = vpop.f32.mrb[28].mxu1 }
 0xcb4   :  { %v1901_v17 = vpop.f32.mrb[29].mxu1  ;;  %v1900_v59 = vadd.f32 %v1899_v56, %v1725_v25 }
 0xcb5   :  { %v1903_v58 = vpop.f32.mrb[30].mxu1  ;;  %v1902_v62 = vadd.f32 %v1901_v17, %v1729_v57 }
 0xcb6   :  { %v1904_v60 = vadd.f32 %v1903_v58, %v1725_v25  ;;  %v1905_v61 = vpop.f32.mrb[31].mxu1 }
 0xcb7   :  { %v1906_v53 = vadd.f32 %v1905_v61, %v1729_v57 }
 0xcb8   :  { %v5006_v42 = vpack.c.bf16 %v1904_v60, %v1900_v59 }
 0xcb9   :  { %v5008_v4 = vpack.c.bf16 %v1906_v53, %v1902_v62 }
 0xcba   :  { %4006 = vmatprep.mubr.msk.bf16.mxu1 %vm346_vm0, %v5006_v42 }
 0xcbb   :  { %v1909_v5 = vpop.f32.mrb[32].mxu1  ;;  %v4000_v6 = vpop.f32.mrb[36].mxu0  ;;  %4078 = vmatprep.subr.msk.bf16.mxu1 %vm346_vm0, %v5008_v4  ;;  %v1978_v7 = vsel %vm346_vm0, %v5008_v4, 0 }
 0xcbc   :  { %v1911_v46 = vpop.f32.mrb[33].mxu1  ;;  %v1952_v39 = vpop.f32.mrb[37].mxu0  ;;  %4003 = vmatpush3.bf16.xpose.msra.mxu1 %v1978_v7  ;;  %v1910_v10 = vadd.f32 %v1909_v5, %v1725_v25  ;;  %v1961_v35 = vadd.f32 %v4000_v6, %v1733_v63 }
 0xcbd   :  { %v1913_v8 = vpop.f32.mrb[34].mxu1  ;;  %v4001_v9 = vpop.f32.mrb[38].mxu0  ;;  %v1912_v23 = vadd.f32 %v1911_v46, %v1729_v57  ;;  %v1953_v24 = vadd.f32 %v1952_v39, %v1733_v63 }
 0xcbe   :  { %v1914_v13 = vadd.f32 %v1913_v8, %v1725_v25  ;;  %v1964_v15 = vadd.f32 %v4001_v9, %v1733_v63  ;;  %v1915_v21 = vpop.f32.mrb[35].mxu1  ;;  %v1955_v22 = vpop.f32.mrb[39].mxu0 }
 0xcbf   :  { %v1916_v26 = vadd.f32 %v1915_v21, %v1729_v57  ;;  %v1956_v18 = vadd.f32 %v1955_v22, %v1733_v63 }
 0xcc0   :  { %v1968_v19 = vpack.c.bf16 %v1914_v13, %v1910_v10  ;;  %v5017_v20 = vpack.c.bf16 %v1964_v15, %v1961_v35 }
 0xcc1   :  { %v1970_v27 = vpack.c.bf16 %v1916_v26, %v1912_v23  ;;  %v5019_v55 = vpack.c.bf16 %v1956_v18, %v1953_v24 }
 0xcc3   :  { %4079 = vmatprep.subr.msk.bf16.mxu1 %vm346_vm0, %v1970_v27  ;;  %v1981_v28 = vsel %vm346_vm0, %v1970_v27, 0 }
 0xcc4   :  { %4005 = vmatpush3.bf16.xpose.msra.mxu1 %v1981_v28 }
 0xcc5   :  { %4010 = vmatprep.subr.bf16.mxu1 %v5019_v55 }
 0xccb   :  { %4007 = vmatmul.mubr.msk.bf16.vlgmr.msra.gmra.mrb[36].mxu1 %vm346_vm0, %v1968_v19 }
 0xccc   :  { %4011 = vmatpush3.bf16.msra.mxu1 %v5019_v55 }
 0xccd   :  { %4012 = vmatprep.subr.bf16.mxu1 %v5017_v20 }
 0xcd0   :  { %4013 = vmatpush3.bf16.msra.mxu1 %v5017_v20 }
 0xd9e   :  { %v4008_v50 = vpop.f32.mrb[36].mxu1 }
 0xd9f   :  { %v2017_v3 = vpop.f32.mrb[37].mxu1  ;;  %v2026_v30 = vadd.f32 %v5037_v52, %v4008_v50 }
 0xda0   :  { %v2018_v33 = vadd.f32 %v5031_v31, %v2017_v3  ;;  %v4009_v54 = vpop.f32.mrb[38].mxu1 }
 0xda1   :  { %v2020_v1 = vpop.f32.mrb[39].mxu1  ;;  %v2029_v44 = vadd.f32 %v5050_v11, %v4009_v54  ;;  %v2038_v12 = vsel %vm408_vm1, %v2026_v30, -inf }
 0xda2   :  { %v2021_v34 = vadd.f32 %v5043_v49, %v2020_v1  ;;  %v2032_v2 = vsel %vm408_vm1, %v2018_v33, -inf }
 0xda3   :  { %2033 = vmax.xlane.f32.xlu0 %v2032_v2  ;;  %v2041_v45 = vsel %vm408_vm1, %v2029_v44, -inf }
 0xda4   :  { %v2035_v32 = vsel %vm408_vm1, %v2021_v34, -inf }
 0xda5   :  { %2036 = vmax.xlane.f32.xlu1 %v2035_v32 }
 0xda7   :  { %2039 = vmax.xlane.f32.xlu0 %v2038_v12 }
 0xda9   :  { %2042 = vmax.xlane.f32.xlu1 %v2041_v45 }
 0xe30   :  { %v2034_v14 = vpop.xlane.xlu0 %2033 }
 0xe31   :  { %v2044_v36 = vsub.f32 %v2018_v33, %v2034_v14 }
 0xe32   :  { %v2037_v37 = vpop.xlane.xlu1 %2036 }
 0xe33   :  { %v2045_v25 = vsub.f32 %v2021_v34, %v2037_v37  ;;  %v2048_v58 = vmul.f32 1.442695, %v2044_v36 }
 0xe34   :  { %v2040_v56 = vpop.xlane.xlu0 %2039 }
 0xe35   :  { %v2050_v57 = vmul.f32 1.442695, %v2045_v25  ;;  %v2046_v17 = vsub.f32 %v2026_v30, %v2040_v56 }
 0xe36   :  { %v2043_v59 = vpop.xlane.xlu1 %2042 }
 0xe37   :  { %4232 = vpow2.f32 %v2050_v57  ;;  %v2052_v60 = vmul.f32 1.442695, %v2046_v17  ;;  %v2047_v61 = vsub.f32 %v2029_v44, %v2043_v59 }
 0xe39   :  { %4234 = vpow2.f32 %v2052_v60  ;;  %v2054_v62 = vmul.f32 1.442695, %v2047_v61 }
 0xe3a   :  { %4236 = vpow2.f32 %v2048_v58 }
 0xe3b   :  { %4238 = vpow2.f32 %v2054_v62 }
 0xe41   :  { %v4233_v53 = vpop.eup %4232 }
 0xe42   :  { %v2059_v63 = vsel %vm408_vm1, %v4233_v53, 0.0 }
 0xe43   :  { %v4235_v5 = vpop.eup %4234  ;;  %2060 = vadd.xlane.f32.xlu1 %v2059_v63 }
 0xe44   :  { %v4237_v6 = vpop.eup %4236  ;;  %v2062_v7 = vsel %vm408_vm1, %v4235_v5, 0.0 }
 0xe45   :  { %v4239_v46 = vpop.eup %4238  ;;  %2063 = vadd.xlane.f32.xlu0 %v2062_v7  ;;  %v2056_v8 = vsel %vm408_vm1, %v4237_v6, 0.0 }
 0xe46   :  { %v2065_v39 = vsel %vm408_vm1, %v4239_v46, 0.0 }
 0xe47   :  { %2066 = vadd.xlane.f32.xlu1 %v2065_v39 }
 0xe49   :  { %2057 = vadd.xlane.f32.xlu0 %v2056_v8 }
 0xe58   :  { %2145 = vrot.lane.b32.xlu1 %v1970_v27, %s4355_s7 }
 0xe5c   :  { %2137 = vrot.lane.b32.xlu1 %v5006_v42, %s4355_s7 }
 0xe5f   :  { %2143 = vrot.lane.b32.xlu0 %v5008_v4, %s4355_s7 }
 0xe60   :  { %2139 = vrot.lane.b32.xlu1 %v1968_v19, %s4355_s7 }
 0xed0   :  { %v2061_v9 = vpop.xlane.xlu1 %2060 }
 0xed1   :  { %4240 = vrcp.f32 %v2061_v9 }
 0xed2   :  { %v2064_v10 = vpop.xlane.xlu0 %2063 }
 0xed4   :  { %v2067_v35 = vpop.xlane.xlu1 %2066 }
 0xed5   :  { %4242 = vrcp.f32 %v2067_v35 }
 0xed6   :  { %4244 = vrcp.f32 %v2064_v10  ;;  %v2058_v13 = vpop.xlane.xlu0 %2057 }
 0xed7   :  { %4246 = vrcp.f32 %v2058_v13 }
 0xed8   :  { %v2146_v26 = vpop.permute.xlu1 %2145 }
 0xed9   :  { %v2157_v33 = vsel %vm346_vm0, %v2146_v26, 0 }
 0xeda   :  { %v2144_v15 = vpop.permute.xlu0 %2143 }
 0xedb   :  { %4080 = vmatprep.subr.msk.bf16.mxu1 %vm346_vm0, %v2144_v15  ;;  %v4241_v21 = vpop.eup %4240  ;;  %v2154_v50 = vsel %vm346_vm0, %v2144_v15, 0 }
 0xedc   :  { %v2073_v18 = vmul.f32 %v4241_v21, %v4233_v53  ;;  %v2138_v3 = vpop.permute.xlu1 %2137 }
 0xedf   :  { %v4243_v22 = vpop.eup %4242 }
 0xee0   :  { %v4245_v23 = vpop.eup %4244  ;;  %v2075_v24 = vmul.f32 %v4243_v22, %v4239_v46  ;;  %v2140_v54 = vpop.permute.xlu1 %2139 }
 0xee1   :  { %v4247_v42 = vpop.eup %4246  ;;  %v2074_v19 = vmul.f32 %v4245_v23, %v4235_v5 }
 0xee2   :  { %v2072_v4 = vmul.f32 %v4247_v42, %v4237_v6 }
 0xee3   :  { %v2077_v28 = vpack.c.bf16 %v2075_v24, %v2074_v19 }
 0xee4   :  { %v2076_v27 = vpack.c.bf16 %v2073_v18, %v2072_v4 }
 0xee6   :  { %4014 = vmatprep.mubr.msk.bf16.mxu1 %vm408_vm1, %v2076_v27 }
 0xee7   :  { %4015 = vmatmul.mubr.msk.bf16.vlgmr.msra.gmra.mrb[40].mxu1 %vm408_vm1, %v2077_v28 }
 0xee8   :  { %4019 = vmatpush3.bf16.xpose.msra.mxu1 %v2154_v50  ;;  %4022 = vmatprep.mubr.msk.bf16.mxu1 %vm346_vm0, %v2138_v3 }
 0xee9   :  { %4081 = vmatprep.subr.msk.bf16.mxu1 %vm346_vm0, %v2146_v26 }
 0xef0   :  { %4021 = vmatpush3.bf16.xpose.msra.mxu1 %v2157_v33  ;;  %v3582_v33 = vld [vmem:[%s5312_s2 + $0x20c] sm:$0xf] }
 0xef7   :  { %4023 = vmatmul.mubr.msk.bf16.vlgmr.msra.gmra.mrb[44].mxu1 %vm346_vm0, %v2140_v54  ;;  %v3583_v54 = vld [vmem:[%s5312_s2 + $0x22c] sm:$0xf] }
 0xef8   :  { %2777 = vmatprep.mubr.bf16.mxu1 %v4360_v0 }
 0xfba   :  { %v5075_v1 = vpop.f32.mrb[40].mxu1 }
 0xfbb   :  { %v5077_v30 = vpop.f32.mrb[41].mxu1 }
 0xfbc   :  { %v5079_v34 = vpop.f32.mrb[42].mxu1 }
 0xfbd   :  { %v5081_v2 = vpop.f32.mrb[43].mxu1 }
 0xfca   :  { %v4024_v44 = vpop.f32.mrb[44].mxu1 }
 0xfcb   :  { %v2193_v32 = vpop.f32.mrb[45].mxu1  ;;  %v2202_v36 = vadd.f32 %v5037_v52, %v4024_v44  ;;  %v3584_v44 = vld [vmem:[%s5312_s2 + $0x24c] sm:$0xf] }
 0xfcc   :  { %v2194_v12 = vadd.f32 %v5031_v31, %v2193_v32  ;;  %v4025_v45 = vpop.f32.mrb[46].mxu1  ;;  %v3599_v32 = vcombine.low %v3582_v33, %v3583_v54  ;;  %v3609_v54 = vld [vmem:[%s5312_s2 + $0x210] sm:$0xff] }
 0xfcd   :  { %v2196_v14 = vpop.f32.mrb[47].mxu1  ;;  %v2205_v57 = vadd.f32 %v5050_v11, %v4025_v45  ;;  %v2214_v17 = vsel %vm408_vm1, %v2202_v36, -inf }
 0xfce   :  { %v2197_v37 = vadd.f32 %v5043_v49, %v2196_v14  ;;  %v2208_v25 = vsel %vm408_vm1, %v2194_v12, -inf  ;;  %v3586_v14 = vld [vmem:[%s5312_s2 + $0x28c] sm:$0xf] }
 0xfcf   :  { %2209 = vmax.xlane.f32.xlu0 %v2208_v25  ;;  %v2217_v58 = vsel %vm408_vm1, %v2205_v57, -inf  ;;  %v3588_v25 = vld [vmem:[%s5312_s2 + $0x2cc] sm:$0xf] }
 0xfd0   :  { %v2211_v56 = vsel %vm408_vm1, %v2197_v37, -inf }
 0xfd1   :  { %2212 = vmax.xlane.f32.xlu1 %v2211_v56  ;;  %v3589_v56 = vld [vmem:[%s5312_s2 + $0x2ec] sm:$0xf] }
 0xfd3   :  { %2215 = vmax.xlane.f32.xlu0 %v2214_v17  ;;  %v3590_v17 = vld [vmem:[%s5312_s2 + $0x30c] sm:$0xf] }
 0xfd7   :  { %2218 = vmax.xlane.f32.xlu0 %v2217_v58  ;;  %v3591_v58 = vld [vmem:[%s5312_s2 + $0x32c] sm:$0xf] }
0x105c   :  { %v2210_v31 = vpop.xlane.xlu0 %2209 }
0x105d   :  { %v2220_v59 = vsub.f32 %v2194_v12, %v2210_v31  ;;  %v3585_v12 = vld [vmem:[%s5312_s2 + $0x26c] sm:$0xf]  ;;  %v3603_v31 = vcombine.low %v3590_v17, %v3591_v58 }
0x105e   :  { %v2213_v60 = vpop.xlane.xlu1 %2212  ;;  %v3600_v45 = vcombine.low %v3584_v44, %v3585_v12  ;;  %v3611_v44 = vld [vmem:[%s5312_s2 + $0x230] sm:$0xff] }
0x105f   :  { %v2224_v49 = vmul.f32 1.442695, %v2220_v59  ;;  %v2221_v62 = vsub.f32 %v2197_v37, %v2213_v60  ;;  %v3592_v59 = vld [vmem:[%s5312_s2 + $0x34c] sm:$0xf]  ;;  %v3615_v12 = vld [vmem:[%s5312_s2 + $0x270] sm:$0xff] }
0x1060   :  { %v2216_v52 = vpop.xlane.xlu0 %2215  ;;  %v3593_v60 = vld [vmem:[%s5312_s2 + $0x36c] sm:$0xf] }
0x1061   :  { %v2222_v61 = vsub.f32 %v2202_v36, %v2216_v52  ;;  %v2226_v6 = vmul.f32 1.442695, %v2221_v62  ;;  %v3587_v36 = vld [vmem:[%s5312_s2 + $0x2ac] sm:$0xf]  ;;  %v3604_v52 = vcombine.low %v3592_v59, %v3593_v60 }
0x1062   :  { %v3601_v37 = vcombine.low %v3586_v14, %v3587_v36 }
0x1063   :  { %v2228_v53 = vmul.f32 1.442695, %v2222_v61  ;;  %v3594_v61 = vld [vmem:[%s5312_s2 + $0x38c] sm:$0xf] }
0x1064   :  { %v2219_v63 = vpop.xlane.xlu0 %2218 }
0x1065   :  { %4248 = vpow2.f32 %v2228_v53  ;;  %v2223_v5 = vsub.f32 %v2205_v57, %v2219_v63  ;;  %v3602_v57 = vcombine.low %v3588_v25, %v3589_v56  ;;  %v3596_v53 = vld [vmem:[%s5312_s2 + $0x3cc] sm:$0xf]  ;;  %v3616_v25 = vld [vmem:[%s5312_s2 + $0x278] sm:$0xff] }
0x1066   :  { %4250 = vpow2.f32 %v2224_v49  ;;  %v3595_v49 = vld [vmem:[%s5312_s2 + $0x3ac] sm:$0xf] }
0x1067   :  { %v2230_v11 = vmul.f32 1.442695, %v2223_v5  ;;  %v3605_v62 = vcombine.low %v3594_v61, %v3595_v49  ;;  %v3597_v63 = vld [vmem:[%s5312_s2 + $0x3ec] sm:$0xf] }
0x1068   :  { %v3606_v5 = vcombine.low %v3596_v53, %v3597_v63 }
0x1069   :  { %4252 = vpow2.f32 %v2230_v11 }
0x106a   :  { %4254 = vpow2.f32 %v2226_v6 }
0x106f   :  { %v4249_v7 = vpop.eup %4248 }
0x1070   :  { %v2238_v46 = vsel %vm408_vm1, %v4249_v7, 0.0  ;;  %v4251_v39 = vpop.eup %4250 }
0x1071   :  { %2239 = vadd.xlane.f32.xlu0 %v2238_v46  ;;  %v2232_v9 = vsel %vm408_vm1, %v4251_v39, 0.0 }
0x1073   :  { %v4253_v8 = vpop.eup %4252 }
0x1074   :  { %v2241_v10 = vsel %vm408_vm1, %v4253_v8, 0.0  ;;  %v4255_v35 = vpop.eup %4254 }
0x1075   :  { %2233 = vadd.xlane.f32.xlu0 %v2232_v9  ;;  %2242 = vadd.xlane.f32.xlu1 %v2241_v10  ;;  %v2235_v13 = vsel %vm408_vm1, %v4255_v35, 0.0 }
0x1079   :  { %2236 = vadd.xlane.f32.xlu1 %v2235_v13 }
0x108a   :  { %2258 = vrot.lane.b32.xlu1 %v5017_v20, %s4355_s7 }
0x108b   :  { %2256 = vrot.lane.b32.xlu0 %v5019_v55, %s4355_s7 }
0x10fe   :  { %v2240_v15 = vpop.xlane.xlu0 %2239 }
0x1102   :  { %v2243_v21 = vpop.xlane.xlu1 %2242  ;;  %v2234_v22 = vpop.xlane.xlu0 %2233 }
0x1103   :  { %4256 = vrcp.f32 %v2243_v21 }
0x1104   :  { %4258 = vrcp.f32 %v2234_v22 }
0x1105   :  { %4260 = vrcp.f32 %v2240_v15 }
0x1106   :  { %v2237_v23 = vpop.xlane.xlu1 %2236  ;;  %v2257_v42 = vpop.permute.xlu0 %2256 }
0x1107   :  { %4262 = vrcp.f32 %v2237_v23  ;;  %4026 = vmatprep.subr.bf16.mxu0 %v2257_v42 }
0x1108   :  { %4027 = vmatpush3.bf16.msra.mxu0 %v2257_v42 }
0x110a   :  { %v2259_v24 = vpop.permute.xlu1 %2258 }
0x110b   :  { %4028 = vmatprep.subr.bf16.mxu0 %v2259_v24 }
0x110c   :  { %4029 = vmatpush3.bf16.msra.mxu0 %v2259_v24 }
0x110d   :  { %v4257_v26 = vpop.eup %4256  ;;  %4034 = vmatprep.subr.bf16.mxu0 %v3599_v32 }
0x110e   :  { %v4259_v4 = vpop.eup %4258  ;;  %v2251_v19 = vmul.f32 %v4257_v26, %v4253_v8 }
0x110f   :  { %v4261_v20 = vpop.eup %4260  ;;  %v2248_v55 = vmul.f32 %v4259_v4, %v4251_v39 }
0x1110   :  { %v2250_v28 = vmul.f32 %v4261_v20, %v4249_v7  ;;  %v3598_v20 = vld [vmem:[#allocation5 + $0x10] ss:$0 sm:$0xff] }
0x1111   :  { %v4263_v18 = vpop.eup %4262 }
0x1112   :  { %v2249_v27 = vmul.f32 %v4263_v18, %v4255_v35  ;;  %v2253_v3 = vpack.c.bf16 %v2251_v19, %v2250_v28 }
0x1114   :  { %v2252_v50 = vpack.c.bf16 %v2249_v27, %v2248_v55 }
0x1116   :  { %4030 = vmatprep.mubr.msk.bf16.mxu0 %vm408_vm1, %v2252_v50 }
0x1117   :  { %4031 = vmatmul.mubr.msk.bf16.vlgmr.msra.gmra.mrb[40].mxu0 %vm408_vm1, %v2253_v3 }
0x1118   :  { %4035 = vmatpush3.bf16.msra.mxu0 %v3599_v32  ;;  %v3642_v32 = vcombine.high %v3609_v54, %v3611_v44 }
0x1119   :  { %4036 = vmatprep.subr.bf16.mxu0 %v3600_v45 }
0x111a   :  { %2745 = vmatprep.subr.bf16.mxu1 %v3642_v32 }
0x111c   :  { %4037 = vmatpush3.bf16.msra.mxu0 %v3600_v45 }
0x111d   :  { %4038 = vmatprep.subr.bf16.mxu0 %v3601_v37 }
0x1120   :  { %4039 = vmatpush3.bf16.msra.mxu0 %v3601_v37  ;;  %v3614_v37 = vld [vmem:[%s5312_s2 + $0x258] sm:$0xff] }
0x1121   :  { %4040 = vmatprep.subr.bf16.mxu0 %v3602_v57  ;;  %v3648_v56 = vcombine.high %v3614_v37, %v3616_v25  ;;  %v3647_v17 = vcombine.low %v3614_v37, %v3616_v25 }
0x1124   :  { %4041 = vmatpush3.bf16.msra.mxu0 %v3602_v57 }
0x1125   :  { %4042 = vmatprep.subr.bf16.mxu0 %v3603_v31 }
0x1128   :  { %4043 = vmatpush3.bf16.msra.mxu0 %v3603_v31 }
0x1129   :  { %4044 = vmatprep.subr.bf16.mxu0 %v3604_v52 }
0x112c   :  { %4045 = vmatpush3.bf16.msra.mxu0 %v3604_v52 }
0x112d   :  { %4046 = vmatprep.subr.bf16.mxu0 %v3605_v62 }
0x1130   :  { %4047 = vmatpush3.bf16.msra.mxu0 %v3605_v62 }
0x1131   :  { %4048 = vmatprep.subr.bf16.mxu0 %v3606_v5 }
0x1134   :  { %4049 = vmatpush3.bf16.msra.mxu0 %v3606_v5 }
0x11ea   :  { %v4032_v6 = vpop.f32.mrb[40].mxu0 }
0x11eb   :  { %v2302_v11 = vpop.f32.mrb[41].mxu0 }
0x11ec   :  { %v4033_v7 = vpop.f32.mrb[42].mxu0 }
0x11ed   :  { %v4107_v46 = vpack.i.bf16 %v4033_v7, %v4032_v6  ;;  %v2305_v39 = vpop.f32.mrb[43].mxu0 }
0x11ee   :  { %v4102_v8 = vpack.i.bf16 %v2305_v39, %v2302_v11 }
0x11f0   :  { %4103 = vrot.lane.b32.xlu1 %v4102_v8, %s4355_s7  ;;  %v3617_v8 = vld [vmem:[%s5312_s2 + $0x290] sm:$0xff] }
0x11f4   :  { %4108 = vrot.lane.b32.xlu1 %v4107_v46, %s4355_s7 }
0x1262   :  { %v4104_v9 = vpop.permute.xlu1 %4103 }
0x1263   :  { %v4106_v10 = vunpack.i.h.bf16 %v4104_v9  ;;  %v4105_v35 = vunpack.i.l.bf16 %v4104_v9  ;;  %v3619_v9 = vld [vmem:[%s5312_s2 + $0x2b0] sm:$0xff] }
0x1265   :  { %v2333_v13 = vsel %vm346_vm0, %v5077_v30, %v4105_v35  ;;  %v2334_v15 = vsel %vm346_vm0, %v5081_v2, %v4106_v10  ;;  %v3618_v10 = vld [vmem:[%s5312_s2 + $0x298] sm:$0xff]  ;;  %v3650_v35 = vcombine.high %v3617_v8, %v3619_v9 }
0x1266   :  { %v4109_v21 = vpop.permute.xlu1 %4108  ;;  %v2337_v22 = vpack.c.bf16 %v2334_v15, %v2333_v13  ;;  %v3620_v13 = vld [vmem:[%s5312_s2 + $0x2b8] sm:$0xff]  ;;  %v3649_v15 = vcombine.low %v3617_v8, %v3619_v9 }
0x1267   :  { %v4111_v23 = vunpack.i.h.bf16 %v4109_v21  ;;  %v4110_v42 = vunpack.i.l.bf16 %v4109_v21  ;;  %v3651_v21 = vcombine.low %v3618_v10, %v3620_v13 }
0x1268   :  { %4050 = vmatprep.mubr.bf16.mxu0 %v2337_v22  ;;  %v3652_v22 = vcombine.high %v3618_v10, %v3620_v13 }
0x1269   :  { %v2336_v24 = vsel %vm346_vm0, %v5079_v34, %v4111_v23  ;;  %v2335_v26 = vsel %vm346_vm0, %v5075_v1, %v4110_v42  ;;  %v3621_v23 = vld [vmem:[%s5312_s2 + $0x2d0] sm:$0xff] }
0x126a   :  { %v2338_v4 = vpack.c.bf16 %v2336_v24, %v2335_v26  ;;  %v3623_v42 = vld [vmem:[%s5312_s2 + $0x2f0] sm:$0xff]  ;;  %v3622_v24 = vld [vmem:[%s5312_s2 + $0x2d8] sm:$0xff] }
0x126b   :  { %v3654_v26 = vcombine.high %v3621_v23, %v3623_v42 }
0x126c   :  { %4051 = vmatmul.mubr.bf16.vlgmr.msra.gmra.mrb[44].mxu0 %v2338_v4  ;;  %v3624_v4 = vld [vmem:[%s5312_s2 + $0x2f8] sm:$0xff] }
0x126d   :  { %2830 = vmatprep.mubr.bf16.mxu0 %v4360_v0 }
0x133f   :  { %v4052_v30 = vpop.f32.mrb[44].mxu0 }
0x1340   :  { %v2444_v18 = vpop.f32.mrb[45].mxu0  ;;  %v2453_v27 = vadd.f32 %v4052_v30, %v3598_v20  ;;  %v3655_v30 = vcombine.low %v3622_v24, %v3624_v4 }
0x1341   :  { %v2445_v19 = vadd.f32 %v3598_v20, %v2444_v18  ;;  %v4053_v2 = vpop.f32.mrb[46].mxu0  ;;  %v3656_v18 = vcombine.high %v3622_v24, %v3624_v4 }
0x1342   :  { %v2447_v55 = vpop.f32.mrb[47].mxu0  ;;  %v2456_v3 = vadd.f32 %v4053_v2, %v3598_v20  ;;  %v2461_v1 = vadd.f32 %v2453_v27, %v4998_v47  ;;  %v3612_v47 = vld [vmem:[%s5312_s2 + $0x238] sm:$0xff]  ;;  %v3627_v2 = vld [vmem:[%s5312_s2 + $0x330] sm:$0xff] }
0x1343   :  { %v2448_v28 = vadd.f32 %v3598_v20, %v2447_v55  ;;  %v2459_v50 = vadd.f32 %v2445_v19, %v4989_v29  ;;  %v3610_v29 = vld [vmem:[%s5312_s2 + $0x218] sm:$0xff]  ;;  %v3653_v20 = vcombine.low %v3621_v23, %v3623_v42  ;;  %v3625_v19 = vld [vmem:[%s5312_s2 + $0x310] sm:$0xff] }
0x1344   :  { %v2462_v33 = vadd.f32 %v2456_v3, %v5000_v48  ;;  %v3613_v48 = vld [vmem:[%s5312_s2 + $0x250] sm:$0xff]  ;;  %v3643_v45 = vcombine.low %v3610_v29, %v3612_v47  ;;  %v3644_v14 = vcombine.high %v3610_v29, %v3612_v47  ;;  %v3626_v55 = vld [vmem:[%s5312_s2 + $0x318] sm:$0xff]  ;;  %v3658_v27 = vcombine.high %v3625_v19, %v3627_v2 }
0x1345   :  { %2465 = vadd.xlane.f32.xlu0 %v2459_v50  ;;  %v2460_v34 = vadd.f32 %v2448_v28, %v4991_v38  ;;  %v3641_v38 = vcombine.low %v3609_v54, %v3611_v44  ;;  %v3646_v36 = vcombine.high %v3613_v48, %v3615_v12  ;;  %v3645_v57 = vcombine.low %v3613_v48, %v3615_v12  ;;  %v3628_v28 = vld [vmem:[%s5312_s2 + $0x338] sm:$0xff]  ;;  %v3633_v48 = vld [vmem:[%s5312_s2 + $0x390] sm:$0xff] }
0x1346   :  { %2798 = vmatprep.subr.bf16.mxu0 %v3644_v14  ;;  %v3660_v3 = vcombine.high %v3626_v55, %v3628_v28  ;;  %v3630_v54 = vld [vmem:[%s5312_s2 + $0x358] sm:$0xff]  ;;  %v3635_v12 = vld [vmem:[%s5312_s2 + $0x3b0] sm:$0xff] }
0x1347   :  { %2467 = vadd.xlane.f32.xlu1 %v2460_v34  ;;  %2746 = vmatpush1.bf16.msra.mxu1 %v3641_v38  ;;  %v3632_v29 = vld [vmem:[%s5312_s2 + $0x378] sm:$0xff]  ;;  %v3666_v14 = vcombine.high %v3633_v48, %v3635_v12  ;;  %v3665_v37 = vcombine.low %v3633_v48, %v3635_v12  ;;  %v3607_v42 = vld [vmem:[#allocation5 + $0x11] ss:$0 sm:$0xff] }
0x1348   :  { %2799 = vmatpush1.bf16.msra.mxu0 %v3643_v45  ;;  %2747 = vmatprep.subr.bf16.mxu1 %v3646_v36  ;;  %v3663_v32 = vcombine.low %v3630_v54, %v3632_v29  ;;  %v3664_v47 = vcombine.high %v3630_v54, %v3632_v29  ;;  %v3634_v45 = vld [vmem:[%s5312_s2 + $0x398] sm:$0xff]  ;;  %v4151_v29 = vld [vmem:[#allocation2 + $0x188] sm:$0xff]   ;;  %v4154_v48 = vld [vmem:[#allocation2 + $0x110] sm:$0xff]  }
0x1349   :  { %2469 = vadd.xlane.f32.xlu0 %v2461_v1  ;;  %2800 = vmatprep.subr.bf16.mxu0 %v3648_v56  ;;  %v3636_v36 = vld [vmem:[%s5312_s2 + $0x3b8] sm:$0xff]  ;;  %v4155_v12 = vld [vmem:[#allocation2 + $0x190] sm:$0xff]  }
0x134a   :  { %v3667_v25 = vcombine.low %v3634_v45, %v3636_v36  ;;  %v3668_v56 = vcombine.high %v3634_v45, %v3636_v36  ;;  %v4157_v45 = vld [vmem:[#allocation2 + $0x1d8] sm:$0xff]  }
0x134b   :  { %2748 = vmatpush1.bf16.msra.mxu1 %v3645_v57  ;;  %v3637_v57 = vld [vmem:[%s5312_s2 + $0x3d0] sm:$0xff]  ;;  %v4159_v36 = vld [vmem:[#allocation2 + $0x198] sm:$0xff]  }
0x134c   :  { %2801 = vmatpush1.bf16.msra.mxu0 %v3647_v17  ;;  %2749 = vmatprep.subr.bf16.mxu1 %v3650_v35  ;;  %v3639_v17 = vld [vmem:[%s5312_s2 + $0x3f0] sm:$0xff] }
0x134d   :  { %2471 = vadd.xlane.f32.xlu0 %v2462_v33  ;;  %2802 = vmatprep.subr.bf16.mxu0 %v3652_v22 }
0x134f   :  { %2750 = vmatpush1.bf16.msra.mxu1 %v3649_v15 }
0x1350   :  { %2803 = vmatpush1.bf16.msra.mxu0 %v3651_v21  ;;  %2751 = vmatprep.subr.bf16.mxu1 %v3654_v26 }
0x1351   :  { %2804 = vmatprep.subr.bf16.mxu0 %v3656_v18  ;;  %v3608_v18 = vld [vmem:[#allocation5 + $0x12] ss:$0 sm:$0xff] }
0x1353   :  { %2752 = vmatpush1.bf16.msra.mxu1 %v3653_v20 }
0x1354   :  { %2805 = vmatpush1.bf16.msra.mxu0 %v3655_v30  ;;  %2753 = vmatprep.subr.bf16.mxu1 %v3658_v27 }
0x1355   :  { %2806 = vmatprep.subr.bf16.mxu0 %v3660_v3  ;;  %v4146_v3 = vld [vmem:[#allocation2 + $0x100] sm:$0xff]  }
0x13d2   :  { %v2466_v58 = vpop.xlane.xlu0 %2465 }
0x13d3   :  { %v2473_v31 = vmul.f32 0.0078125, %v2466_v58  ;;  %v3638_v58 = vld [vmem:[%s5312_s2 + $0x3d8] sm:$0xff] }
0x13d4   :  { %v2468_v59 = vpop.xlane.xlu1 %2467 }
0x13d5   :  { %v5188_v60 = vsub.f32 %v2459_v50, %v2473_v31  ;;  %v2474_v52 = vmul.f32 0.0078125, %v2468_v59  ;;  %v3657_v50 = vcombine.low %v3625_v19, %v3627_v2  ;;  %v3670_v31 = vcombine.high %v3637_v57, %v3639_v17  ;;  %v3640_v59 = vld [vmem:[%s5312_s2 + $0x3f8] sm:$0xff] }
0x13d6   :  { %v2470_v61 = vpop.xlane.xlu0 %2469 }
0x13d7   :  { %v5190_v49 = vsub.f32 %v2460_v34, %v2474_v52  ;;  %v2475_v62 = vmul.f32 0.0078125, %v2470_v61  ;;  %v2481_v53 = vmul.f32 %v5188_v60, %v5188_v60  ;;  %v3659_v34 = vcombine.low %v3626_v55, %v3628_v28  ;;  %2754 = vmatpush1.bf16.msra.mxu1 %v3657_v50 }
0x13d8   :  { %v3669_v52 = vcombine.low %v3637_v57, %v3639_v17  ;;  %v3672_v61 = vcombine.high %v3638_v58, %v3640_v59  ;;  %v4163_v57 = vld [vmem:[#allocation2 + $0x1a0] sm:$0xff]   ;;  %v4164_v17 = vld [vmem:[#allocation2 + $0x168] sm:$0xff]  }
0x13d9   :  { %v5194_v63 = vsub.f32 %v2461_v1, %v2475_v62  ;;  %2485 = vadd.xlane.f32.xlu0 %v2481_v53  ;;  %v2482_v5 = vmul.f32 %v5190_v49, %v5190_v49  ;;  %v3629_v1 = vld [vmem:[%s5312_s2 + $0x350] sm:$0xff]  ;;  %2807 = vmatpush1.bf16.msra.mxu0 %v3659_v34  ;;  %v3671_v62 = vcombine.low %v3638_v58, %v3640_v59  ;;  %v4144_v53 = vld [vmem:[#allocation2 + $0x140] sm:$0xff]   ;;  %v4165_v58 = vld [vmem:[#allocation2 + $0x1e8] sm:$0xff]  }
0x13da   :  { %v2472_v6 = vpop.xlane.xlu0 %2471  ;;  %2808 = vmatprep.subr.bf16.mxu0 %v3664_v47  ;;  %v4167_v59 = vld [vmem:[#allocation2 + $0x1a8] sm:$0xff]  }
0x13db   :  { %v2476_v11 = vmul.f32 0.0078125, %v2472_v6  ;;  %2487 = vadd.xlane.f32.xlu1 %v2482_v5  ;;  %v2483_v7 = vmul.f32 %v5194_v63, %v5194_v63  ;;  %v4145_v5 = vld [vmem:[#allocation2 + $0x1c0] sm:$0xff]  }
0x13dd   :  { %v5200_v46 = vsub.f32 %v2462_v33, %v2476_v11  ;;  %2489 = vadd.xlane.f32.xlu0 %v2483_v7  ;;  %v3631_v33 = vld [vmem:[%s5312_s2 + $0x370] sm:$0xff]  ;;  %2809 = vmatpush1.bf16.msra.mxu0 %v3663_v32 }
0x13de   :  { %v3662_v44 = vcombine.high %v3629_v1, %v3631_v33  ;;  %v3661_v38 = vcombine.low %v3629_v1, %v3631_v33  ;;  %2810 = vmatprep.subr.bf16.mxu0 %v3668_v56  ;;  %v4147_v1 = vld [vmem:[#allocation2 + $0x180] sm:$0xff]   ;;  %v4149_v33 = vld [vmem:[#allocation2 + $0x1c8] sm:$0xff]  }
0x13df   :  { %v2484_v39 = vmul.f32 %v5200_v46, %v5200_v46  ;;  %v4162_v56 = vld [vmem:[#allocation2 + $0x120] sm:$0xff]  }
0x13e0   :  { %2755 = vmatprep.subr.bf16.mxu1 %v3662_v44 }
0x13e1   :  { %2491 = vadd.xlane.f32.xlu1 %v2484_v39  ;;  %2756 = vmatpush1.bf16.msra.mxu1 %v3661_v38  ;;  %v4153_v38 = vld [vmem:[#allocation2 + $0x1d0] sm:$0xff]  }
0x13e2   :  { %2757 = vmatprep.subr.bf16.mxu1 %v3666_v14  ;;  %2811 = vmatpush1.bf16.msra.mxu0 %v3667_v25  ;;  %v4158_v14 = vld [vmem:[#allocation2 + $0x118] sm:$0xff]   ;;  %v4161_v25 = vld [vmem:[#allocation2 + $0x1e0] sm:$0xff]  }
0x13e3   :  { %2812 = vmatprep.subr.bf16.mxu0 %v3672_v61  ;;  %v4169_v61 = vld [vmem:[#allocation2 + $0x1f0] sm:$0xff]  }
0x13e5   :  { %2758 = vmatpush1.bf16.msra.mxu1 %v3665_v37  ;;  %v4160_v37 = vld [vmem:[#allocation2 + $0x160] sm:$0xff]  }
0x13e6   :  { %2759 = vmatprep.subr.bf16.mxu1 %v3670_v31  ;;  %2813 = vmatpush1.bf16.msra.mxu0 %v3671_v62  ;;  %v4166_v31 = vld [vmem:[#allocation2 + $0x128] sm:$0xff]   ;;  %v4170_v62 = vld [vmem:[#allocation2 + $0x130] sm:$0xff]  }
0x13e7   :  { %3873 = vmatprep.subr.bf16.mxu0 %v4145_v5  ;;  %v4172_v5 = vld [vmem:[#allocation2 + $0x178] sm:$0xff]  }
0x13e9   :  { %2760 = vmatpush1.bf16.msra.mxu1 %v3669_v52  ;;  %v4168_v52 = vld [vmem:[#allocation2 + $0x170] sm:$0xff]  }
0x13ea   :  { %3845 = vmatprep.subr.bf16.mxu1 %v4144_v53  ;;  %v4171_v53 = vld [vmem:[#allocation2 + $0x1b0] sm:$0xff]  }
0x1466   :  { %v2486_v6 = vpop.xlane.xlu0 %2485 }
0x1467   :  { %v2493_v11 = vmul.f32 0.0078125, %v2486_v6  ;;  %v4173_v6 = vld [vmem:[#allocation2 + $0x1f8] sm:$0xff]  }
0x1468   :  { %v2488_v7 = vpop.xlane.xlu1 %2487 }
0x1469   :  { %v2497_v39 = vadd.f32 1e-06, %v2493_v11  ;;  %v2494_v8 = vmul.f32 0.0078125, %v2488_v7  ;;  %v4174_v11 = vld [vmem:[#allocation2 + $0x138] sm:$0xff]  }
0x146a   :  { %v2490_v9 = vpop.xlane.xlu0 %2489  ;;  %v4175_v7 = vld [vmem:[#allocation2 + $0x1b8] sm:$0xff]  }
0x146b   :  { %4264 = vrsqrt.f32 %v2497_v39  ;;  %v2498_v10 = vadd.f32 1e-06, %v2494_v8  ;;  %v2495_v35 = vmul.f32 0.0078125, %v2490_v9  ;;  %v2563_v39 = vld [vmem:[#allocation5 + $0x13] sm:$0xf] }
0x146c   :  { %v2568_v8 = vrot.slane %v2563_v39, %v4499_v41  ;;  %v2576_v9 = vrot.slane %v2563_v39, %v4608_v51 }
0x146d   :  { %4266 = vrsqrt.f32 %v2498_v10  ;;  %v2499_v13 = vadd.f32 1e-06, %v2495_v35  ;;  %v2572_v10 = vrot.slane %v2563_v39, %v4504_v43  ;;  %v2580_v35 = vrot.slane %v2563_v39, %v957_v16 }
0x146e   :  { %v2492_v15 = vpop.xlane.xlu1 %2491 }
0x146f   :  { %4268 = vrsqrt.f32 %v2499_v13  ;;  %v2496_v21 = vmul.f32 0.0078125, %v2492_v15 }
0x1471   :  { %v2500_v22 = vadd.f32 1e-06, %v2496_v21 }
0x1473   :  { %4270 = vrsqrt.f32 %v2500_v22 }
0x1475   :  { %v4265_v23 = vpop.eup %4264 }
0x1476   :  { %v2505_v24 = vmul.f32 %v4265_v23, %v5188_v60  ;;  %v4148_v60 = vld [vmem:[#allocation2 + $0x148] sm:$0xff]  }
0x1477   :  { %v4267_v26 = vpop.eup %4266 }
0x1478   :  { %v2506_v4 = vmul.f32 %v4267_v26, %v5190_v49  ;;  %v2515_v20 = vmul.f32 %v3607_v42, %v2505_v24 }
0x1479   :  { %v4269_v30 = vpop.eup %4268 }
0x147a   :  { %v2516_v19 = vmul.f32 %v3607_v42, %v2506_v4  ;;  %v5278_v2 = vadd.f32 %v3608_v18, %v2515_v20  ;;  %v2507_v27 = vmul.f32 %v4269_v30, %v5194_v63  ;;  %v4150_v63 = vld [vmem:[#allocation2 + $0x108] sm:$0xff]  }
0x147c   :  { %v2526_v55 = vadd.f32 %v3608_v18, %v2516_v19  ;;  %v2517_v49 = vmul.f32 %v3607_v42, %v2507_v27 }
0x147d   :  { %v4271_v28 = vpop.eup %4270 }
0x147e   :  { %v2529_v50 = vpack.c.bf16 %v2526_v55, %v5278_v2  ;;  %v2508_v34 = vmul.f32 %v4271_v28, %v5200_v46  ;;  %v4152_v46 = vld [vmem:[#allocation2 + $0x150] sm:$0xff]   ;;  %v5285_v32 = vadd.f32 %v3608_v18, %v2517_v49 }
0x1480   :  { %2778 = vmatmul.mubr.bf16.vlgmr.msra.gmra.mrb[48].mxu1 %v2529_v50  ;;  %2831 = vmatmul.mubr.bf16.vlgmr.msra.gmra.mrb[48].mxu0 %v2529_v50  ;;  %v2518_v54 = vmul.f32 %v3607_v42, %v2508_v34 }
0x1481   :  { %2787 = vmatprep.mubr.bf16.mxu1 %v4360_v0  ;;  %2840 = vmatprep.mubr.bf16.mxu0 %v4360_v0  ;;  %v4156_v0 = vld [vmem:[#allocation2 + $0x158] sm:$0xff]  }
0x1482   :  { %v2528_v44 = vadd.f32 %v3608_v18, %v2518_v54  ;;  %3846 = vmatpush3.bf16.msra.mxu1 %v4146_v3  ;;  %3874 = vmatpush3.bf16.msra.mxu0 %v4147_v1 }
0x1483   :  { %3847 = vmatprep.subr.bf16.mxu1 %v4148_v60  ;;  %3875 = vmatprep.subr.bf16.mxu0 %v4149_v33 }
0x1484   :  { %v2530_v47 = vpack.c.bf16 %v2528_v44, %v5285_v32 }
0x1486   :  { %3848 = vmatpush3.bf16.msra.mxu1 %v4150_v63  ;;  %3876 = vmatpush3.bf16.msra.mxu0 %v4151_v29 }
0x1487   :  { %3849 = vmatprep.subr.bf16.mxu1 %v4152_v46  ;;  %3877 = vmatprep.subr.bf16.mxu0 %v4153_v38 }
0x1488   :  { %2788 = vmatmul.mubr.bf16.gmra.mrb[52].mxu1 %v2530_v47  ;;  %2841 = vmatmul.mubr.bf16.gmra.mrb[52].mxu0 %v2530_v47 }
0x148a   :  { %3850 = vmatpush3.bf16.msra.mxu1 %v4154_v48  ;;  %3878 = vmatpush3.bf16.msra.mxu0 %v4155_v12 }
0x148b   :  { %3851 = vmatprep.subr.bf16.mxu1 %v4156_v0  ;;  %3879 = vmatprep.subr.bf16.mxu0 %v4157_v45 }
0x148e   :  { %3852 = vmatpush3.bf16.msra.mxu1 %v4158_v14  ;;  %3880 = vmatpush3.bf16.msra.mxu0 %v4159_v36 }
0x148f   :  { %3853 = vmatprep.subr.bf16.mxu1 %v4160_v37  ;;  %3881 = vmatprep.subr.bf16.mxu0 %v4161_v25 }
0x1492   :  { %3854 = vmatpush3.bf16.msra.mxu1 %v4162_v56  ;;  %3882 = vmatpush3.bf16.msra.mxu0 %v4163_v57 }
0x1493   :  { %3855 = vmatprep.subr.bf16.mxu1 %v4164_v17  ;;  %3883 = vmatprep.subr.bf16.mxu0 %v4165_v58 }
0x1496   :  { %3856 = vmatpush3.bf16.msra.mxu1 %v4166_v31  ;;  %3884 = vmatpush3.bf16.msra.mxu0 %v4167_v59 }
0x1497   :  { %3857 = vmatprep.subr.bf16.mxu1 %v4168_v52  ;;  %3885 = vmatprep.subr.bf16.mxu0 %v4169_v61 }
0x149a   :  { %3858 = vmatpush3.bf16.msra.mxu1 %v4170_v62  ;;  %3886 = vmatpush3.bf16.msra.mxu0 %v4171_v53 }
0x149b   :  { %3859 = vmatprep.subr.bf16.mxu1 %v4172_v5  ;;  %3887 = vmatprep.subr.bf16.mxu0 %v4173_v6 }
0x149e   :  { %3860 = vmatpush3.bf16.msra.mxu1 %v4174_v11  ;;  %3888 = vmatpush3.bf16.msra.mxu0 %v4175_v7 }
0x1553   :  { %v2779_v13 = vpop.f32.mrb[48].mxu1  ;;  %v2832_v15 = vpop.f32.mrb[48].mxu0 }
0x1554   :  { %v2780_v21 = vadd.f32 %v2779_v13, %v2568_v8  ;;  %v2833_v22 = vadd.f32 %v2832_v15, %v2576_v9  ;;  %v2781_v23 = vpop.f32.mrb[49].mxu1  ;;  %v2834_v42 = vpop.f32.mrb[49].mxu0 }
0x1555   :  { %v2782_v24 = vadd.f32 %v2781_v23, %v2572_v10  ;;  %v2835_v26 = vadd.f32 %v2834_v42, %v2580_v35  ;;  %v2783_v4 = vpop.f32.mrb[50].mxu1  ;;  %v2836_v20 = vpop.f32.mrb[50].mxu0 }
0x1556   :  { %v2784_v30 = vadd.f32 %v2783_v4, %v2568_v8  ;;  %v2837_v18 = vadd.f32 %v2836_v20, %v2576_v9  ;;  %v2785_v41 = vpop.f32.mrb[51].mxu1  ;;  %v2838_v19 = vpop.f32.mrb[51].mxu0  ;;  %v2851_v43 = vmax.f32 %v2780_v21, 0.0  ;;  %v2853_v27 = vmax.f32 %v2833_v22, 0.0 }
0x1557   :  { %v2786_v51 = vadd.f32 %v2785_v41, %v2572_v10  ;;  %v2839_v55 = vadd.f32 %v2838_v19, %v2580_v35  ;;  %v2852_v28 = vmax.f32 %v2782_v24, 0.0  ;;  %v2854_v50 = vmax.f32 %v2835_v26, 0.0 }
0x1558   :  { %v2855_v40 = vmax.f32 %v2784_v30, 0.0  ;;  %v2857_v16 = vmax.f32 %v2837_v18, 0.0 }
0x1559   :  { %v2856_v34 = vmax.f32 %v2786_v51, 0.0  ;;  %v2858_v3 = vmax.f32 %v2839_v55, 0.0 }
0x155a   :  { %v2867_v1 = vpack.c.bf16 %v2855_v40, %v2851_v43  ;;  %v2869_v60 = vpack.c.bf16 %v2857_v16, %v2853_v27 }
0x155b   :  { %v2868_v33 = vpack.c.bf16 %v2856_v34, %v2852_v28  ;;  %v2870_v49 = vpack.c.bf16 %v2858_v3, %v2854_v50  ;;  %v2789_v54 = vpop.f32.mrb[52].mxu1  ;;  %v2842_v44 = vpop.f32.mrb[52].mxu0 }
0x155c   :  { %v2790_v63 = vadd.f32 %v2789_v54, %v2568_v8  ;;  %v2843_v29 = vadd.f32 %v2842_v44, %v2576_v9  ;;  %v2791_v46 = vpop.f32.mrb[53].mxu1  ;;  %v2844_v38 = vpop.f32.mrb[53].mxu0  ;;  %v4176_v54 = vld [vmem:[#allocation2 + $0x200] sm:$0xff]   ;;  %v4361_v44 = vmov 0.0  }
0x155d   :  { %v2792_v47 = vadd.f32 %v2791_v46, %v2572_v10  ;;  %v2845_v48 = vadd.f32 %v2844_v38, %v2580_v35  ;;  %v2793_v12 = vpop.f32.mrb[54].mxu1  ;;  %v2846_v0 = vpop.f32.mrb[54].mxu0  ;;  %3170 = vmatprep.mubr.bf16.mxu1 %v2868_v33  ;;  %3217 = vmatprep.mubr.bf16.mxu0 %v2870_v49  ;;  %v4180_v46 = vld [vmem:[#allocation2 + $0x220] sm:$0xff]   ;;  %v4181_v38 = vld [vmem:[#allocation2 + $0x228] sm:$0xff]  }
0x155e   :  { %v2794_v45 = vadd.f32 %v2793_v12, %v2568_v8  ;;  %v2847_v14 = vadd.f32 %v2846_v0, %v2576_v9  ;;  %v2795_v36 = vpop.f32.mrb[55].mxu1  ;;  %v2848_v37 = vpop.f32.mrb[55].mxu0  ;;  %3171 = vmatmul.mubr.bf16.vlgmr.msra.gmra.mrb[56].mxu1 %v2867_v1  ;;  %3218 = vmatmul.mubr.bf16.vlgmr.msra.gmra.mrb[56].mxu0 %v2869_v60  ;;  %v2859_v57 = vmax.f32 %v2790_v63, 0.0  ;;  %v2861_v17 = vmax.f32 %v2843_v29, 0.0  ;;  %v3673_v8 = vld [vmem:[#allocation5 + $0x17] ss:$0 sm:$0xff] }
0x155f   :  { %v2796_v25 = vadd.f32 %v2795_v36, %v2572_v10  ;;  %v2849_v56 = vadd.f32 %v2848_v37, %v2580_v35  ;;  %v2860_v59 = vmax.f32 %v2792_v47, 0.0  ;;  %v2862_v52 = vmax.f32 %v2845_v48, 0.0  ;;  %4054 = vmatprep.subr.bf16.mxu1 %v4361_v44  ;;  %v4177_v63 = vld [vmem:[#allocation2 + $0x208] sm:$0xff]   ;;  %v4179_v29 = vld [vmem:[#allocation2 + $0x218] sm:$0xff]   ;;  %v4182_v47 = vld [vmem:[#allocation2 + $0x230] sm:$0xff]  }
0x1560   :  { %v2863_v58 = vmax.f32 %v2794_v45, 0.0  ;;  %v2865_v31 = vmax.f32 %v2847_v14, 0.0  ;;  %4055 = vmatpush3.bf16.msra.mxu1 %v4176_v54  ;;  %v4183_v48 = vld [vmem:[#allocation2 + $0x238] sm:$0xff]  }
0x1561   :  { %v2864_v61 = vmax.f32 %v2796_v25, 0.0  ;;  %v2866_v62 = vmax.f32 %v2849_v56, 0.0  ;;  %4056 = vmatprep.subr.bf16.mxu1 %v4361_v44 }
0x1562   :  { %v2871_v53 = vpack.c.bf16 %v2863_v58, %v2859_v57  ;;  %v2873_v5 = vpack.c.bf16 %v2865_v31, %v2861_v17  ;;  %v3706_v17 = vld [vmem:[#allocation5 + $0x18] ss:$0 sm:$0xff] }
0x1563   :  { %v2872_v6 = vpack.c.bf16 %v2864_v61, %v2860_v59  ;;  %v2874_v11 = vpack.c.bf16 %v2866_v62, %v2862_v52  ;;  %v3707_v52 = vld [vmem:[#allocation5 + $0x19] ss:$0 sm:$0xff] }
0x1564   :  { %4057 = vmatpush3.bf16.msra.mxu1 %v4177_v63 }
0x1565   :  { %3177 = vmatprep.mubr.bf16.mxu1 %v2872_v6  ;;  %3224 = vmatprep.mubr.bf16.mxu0 %v2874_v11  ;;  %v3708_v11 = vld [vmem:[%s5315_s5] ss:$0 sm:$0xff] }
0x1566   :  { %3178 = vmatmul.mubr.bf16.gmra.mrb[60].mxu1 %v2871_v53  ;;  %3225 = vmatmul.mubr.bf16.gmra.mrb[60].mxu0 %v2873_v5 }
0x1567   :  { %4058 = vmatprep.subr.bf16.mxu1 %v4361_v44  ;;  %4070 = vmatprep.mubr.msk.bf16.mxu1 %vm4362_vm2, %v4361_v44 }
0x1631   :  { %v3861_v7 = vpop.f32.mrb[56].mxu1  ;;  %v3889_v39 = vpop.f32.mrb[56].mxu0 }
0x1632   :  { %v3862_v9 = vpop.f32.mrb[57].mxu1  ;;  %v3890_v10 = vpop.f32.mrb[57].mxu0 }
0x1633   :  { %v3863_v35 = vadd.f32 %v3862_v9, %v3861_v7  ;;  %v3891_v13 = vadd.f32 %v3890_v10, %v3889_v39  ;;  %v3864_v15 = vpop.f32.mrb[58].mxu1  ;;  %v3892_v21 = vpop.f32.mrb[58].mxu0 }
0x1634   :  { %v3865_v22 = vpop.f32.mrb[59].mxu1  ;;  %v3893_v23 = vpop.f32.mrb[59].mxu0 }
0x1635   :  { %v3173_v42 = vadd.f32 %v3863_v35, %v3673_v8 }
0x1637   :  { %v3220_v24 = vadd.f32 %v3891_v13, %v3173_v42 }
0x1639   :  { %v3867_v26 = vpop.f32.mrb[60].mxu1  ;;  %v3895_v4 = vpop.f32.mrb[60].mxu0  ;;  %v3232_v20 = vadd.f32 %v3220_v24, %v5278_v2 }
0x163a   :  { %v3868_v30 = vpop.f32.mrb[61].mxu1  ;;  %v3896_v18 = vpop.f32.mrb[61].mxu0 }
0x163b   :  { %v3869_v41 = vadd.f32 %v3868_v30, %v3867_v26  ;;  %v3897_v19 = vadd.f32 %v3896_v18, %v3895_v4  ;;  %v3898_v51 = vpop.f32.mrb[62].mxu0  ;;  %3236 = vadd.xlane.f32.xlu1 %v3232_v20  ;;  %v3870_v55 = vpop.f32.mrb[62].mxu1 }
0x163c   :  { %v3871_v43 = vpop.f32.mrb[63].mxu1  ;;  %v3899_v27 = vpop.f32.mrb[63].mxu0 }
0x163d   :  { %v3180_v40 = vadd.f32 %v3869_v41, %v3673_v8 }
0x163f   :  { %v3227_v16 = vadd.f32 %v3897_v19, %v3180_v40 }
0x1641   :  { %v3233_v28 = vadd.f32 %v3227_v16, %v5285_v32  ;;  %v4178_v32 = vld [vmem:[#allocation2 + $0x210] sm:$0xff]  }
0x1642   :  { %4059 = vmatpush3.bf16.msra.mxu1 %v4178_v32 }
0x1643   :  { %3238 = vadd.xlane.f32.xlu0 %v3233_v28  ;;  %4060 = vmatprep.subr.bf16.mxu1 %v4361_v44 }
0x1646   :  { %4061 = vmatpush3.bf16.msra.mxu1 %v4179_v29 }
0x1647   :  { %4062 = vmatprep.subr.bf16.mxu1 %v4361_v44 }
0x164a   :  { %4063 = vmatpush3.bf16.msra.mxu1 %v4180_v46 }
0x164b   :  { %4064 = vmatprep.subr.bf16.mxu1 %v4361_v44 }
0x164e   :  { %4065 = vmatpush3.bf16.msra.mxu1 %v4181_v38 }
0x164f   :  { %4066 = vmatprep.subr.bf16.mxu1 %v4361_v44 }
0x1652   :  { %4067 = vmatpush3.bf16.msra.mxu1 %v4182_v47 }
0x1653   :  { %4068 = vmatprep.subr.bf16.mxu1 %v4361_v44 }
0x1656   :  { %4069 = vmatpush3.bf16.msra.mxu1 %v4183_v48 }
0x16c8   :  { %v3237_v50 = vpop.xlane.xlu1 %3236 }
0x16c9   :  { %v3240_v34 = vmul.f32 0.0078125, %v3237_v50 }
0x16cb   :  { %v3242_v3 = vsub.f32 %v3232_v20, %v3240_v34 }
0x16cd   :  { %v3244_v1 = vmul.f32 %v3242_v3, %v3242_v3 }
0x16cf   :  { %3246 = vadd.xlane.f32.xlu1 %v3244_v1 }
0x16d0   :  { %v3239_v2 = vpop.xlane.xlu0 %3238 }
0x16d1   :  { %v3241_v60 = vmul.f32 0.0078125, %v3239_v2 }
0x16d3   :  { %v3243_v33 = vsub.f32 %v3233_v28, %v3241_v60 }
0x16d5   :  { %v3245_v49 = vmul.f32 %v3243_v33, %v3243_v33 }
0x16d7   :  { %3248 = vadd.xlane.f32.xlu0 %v3245_v49 }
0x175c   :  { %v3247_v12 = vpop.xlane.xlu1 %3246 }
0x175d   :  { %v3250_v0 = vmul.f32 0.0078125, %v3247_v12 }
0x175f   :  { %v3252_v45 = vadd.f32 1e-06, %v3250_v0 }
0x1761   :  { %4272 = vrsqrt.f32 %v3252_v45 }
0x1764   :  { %v3249_v14 = vpop.xlane.xlu0 %3248 }
0x1765   :  { %v3251_v36 = vmul.f32 0.0078125, %v3249_v14 }
0x1767   :  { %v3253_v37 = vadd.f32 1e-06, %v3251_v36 }
0x1769   :  { %4274 = vrsqrt.f32 %v3253_v37 }
0x176b   :  { %v4273_v25 = vpop.eup %4272 }
0x176c   :  { %v3256_v56 = vmul.f32 %v4273_v25, %v3242_v3 }
0x176e   :  { %v3264_v31 = vmul.f32 %v3706_v17, %v3256_v56 }
0x1770   :  { %v3272_v62 = vadd.f32 %v3707_v52, %v3264_v31 }
0x1773   :  { %v4275_v57 = vpop.eup %4274 }
0x1774   :  { %v3257_v58 = vmul.f32 %v4275_v57, %v3243_v33 }
0x1776   :  { %v3265_v59 = vmul.f32 %v3706_v17, %v3257_v58 }
0x1778   :  { %v3273_v61 = vadd.f32 %v3707_v52, %v3265_v59 }
0x177a   :  { %v3275_v53 = vrot.slane %v3273_v61, 7 }
0x177c   :  { %v3278_v5 = vsel %vm3277_vm3, %v3272_v62, %v3275_v53 }
0x177d   :  { %v3295_v6 = vpack.c.bf16 %v3278_v5, %v3278_v5 }
0x177f   :  { %4071 = vmatmul.mubr.bf16.vlgmr.msra.gmra.mrb[64].mxu1 %v3295_v6 }
0x1852   :  { %v3385_v7 = vpop.f32.mrb[64].mxu1 }
0x1853   :  { %v3386_v39 = vadd.f32 %v3708_v11, %v3385_v7  ;;  %v4072_v8 = vpop.f32.mrb[65].mxu1 }
0x1854   :  { %v3388_v9 = vpop.f32.mrb[66].mxu1 }
0x1855   :  { %3391 = vst [vmem:[#allocation7] sm:$0x3] %v3386_v39  ;;  %v4073_v10 = vpop.f32.mrb[67].mxu1 }
0x1856   :  { %4337 = shalt.err (!%p4334_p6)
}
0x1857   :  { %s4338_s5 = scalar_lea.hbm %s5316_s6, 32 }
0x1858   :  { %p4339_p7 = scmp.ne.s32.totalorder %s5316_s6, %s4338_s5  ;;  %p4342_p8 = scmp.lt.u32.totalorder %s4338_s5, %s5316_s6 }
0x185a   :  { %p4344_p9 = pnand %p4342_p8, %p4339_p7 }
0x185c   :  { %4347 = shalt.err (!%p4344_p9)
}
0x185d   :  { %3401 = dma.vmem_to_hbm [thread:$0]  %s3399_s9, 32, %s5316_s6, [#allocation4]  }
0x185e   :  { %4352 = dma.done.wait [#allocation4], 32  }
0x185f   :  { %4353 = vsyncadd [#allocation4], 4294967264 }
0x1860   :  { %3405 = vsyncpa [#allocation3], 1 }
0x1861   :  { %3406 = vsyncpa [#allocation6], 1 }
0x1862   :  { %3407 = vsyncpa [#allocation4], 1 }

</bundles_post_ra>
